<compile_context>
chip_gen: v5e
topology: v5e:2x2
jax: 0.10.0
libtpu: 0.0.40
codegen_flags: <defaults>
</compile_context>

<pallas_src>
import functools
import math

import jax
import jax.numpy as jnp
from jax.experimental import pallas as pl
from jax.experimental.pallas import tpu as pltpu

_EPS = 1e-5


# ----------------------------- Pallas kernel -------------------------------

def _conv3x3_instancenorm(x_pad, w, H, W, C):
    """3x3 VALID conv (single K=9C MXU matmul) + affine-free instance norm.

    x_pad: (H+2, W+2, C) value (any float dtype); w: (9C, C) bf16 tap-major.
    Returns (H*W, C) f32, zero-mean / unit-variance per channel.
    """
    taps = [x_pad[i:i + H, j:j + W, :] for i in range(3) for j in range(3)]
    slab = jnp.concatenate(taps, axis=-1)                      # (H, W, 9C)
    slab = slab.reshape(H * W, 9 * C).astype(jnp.bfloat16)     # one relayout
    acc = jnp.dot(slab, w, preferred_element_type=jnp.float32)  # (H*W, C) f32
    mean = jnp.mean(acc, axis=0, keepdims=True)
    centered = acc - mean
    var = jnp.mean(centered * centered, axis=0, keepdims=True)
    return centered * jax.lax.rsqrt(var + _EPS)


def _residual_block_kernel(xp_ref, w1_ref, w2_ref, o_ref, *, H, W):
    """Fused conv+IN+ReLU -> in-kernel reflect-pad -> conv+IN -> +x (1 instance)."""
    C = o_ref.shape[-1]
    xp = xp_ref[0]                                             # (H+2, W+2, C) f32

    # ---- stage 1: conv + instance norm + ReLU (bf16 intermediate) ----
    y1 = jnp.maximum(_conv3x3_instancenorm(xp, w1_ref[...], H, W, C), 0.0)
    y1 = y1.astype(jnp.bfloat16).reshape(H, W, C)

    # ---- in-kernel ReflectionPad2d(1) of the stage-1 activation ----
    cols = jnp.concatenate([y1[:, 1:2, :], y1, y1[:, W - 2:W - 1, :]], axis=1)
    h1p = jnp.concatenate([cols[1:2, :, :], cols, cols[H - 2:H - 1, :, :]],
                          axis=0)                              # (H+2, W+2, C) bf16

    # ---- stage 2: conv + instance norm + fused residual add (f32) ----
    y2 = _conv3x3_instancenorm(h1p, w2_ref[...], H, W, C).reshape(H, W, C)
    res = xp[1:H + 1, 1:W + 1, :]                              # f32, already resident
    o_ref[0] = (res + y2).astype(o_ref.dtype)


# ------------------------------ wrappers ------------------------------------

def _vmem_limit_bytes():
    """Tight budget on v7x (64 MiB/TC), headroom on v5e/v6e (128 MiB)."""
    default = 32 * 1024 * 1024
    try:
        cap = getattr(pltpu.get_tpu_info(), "vmem_capacity_bytes", None)
    except Exception:
        cap = None
    if not cap:
        return default
    return int(min(96 * 1024 * 1024, max(default, cap // 2)))


def residual_block_nhwc(x, w1, w2):
    """x + block(x) on NHWC f32 activations. w*: (Cout, Cin, 3, 3) PyTorch layout.

    Use this entry point directly when chaining residual blocks so activations
    stay NHWC across the chain (no per-block NCHW<->NHWC HBM transposes).
    """
    N, H, W, C = x.shape

    def prep_w(w):   # (Cout,Cin,3,3) -> (9*Cin, Cout), tap-major, bf16 MXU operand
        return jnp.transpose(w, (2, 3, 1, 0)).reshape(9 * C, C).astype(jnp.bfloat16)

    xp = jnp.pad(x, ((0, 0), (1, 1), (1, 1), (0, 0)), mode="reflect")
    Hp, Wp = H + 2, W + 2

    cost = pl.CostEstimate(
        flops=2 * 2 * N * H * W * 9 * C * C,               # two 3x3 convs
        transcendentals=2 * N * C,                         # rsqrt per (instance, ch, stage)
        bytes_accessed=(N * Hp * Wp * C * 4                # padded f32 input
                        + 2 * 9 * C * C * 2                # two bf16 weight slabs
                        + N * H * W * C * 4),              # f32 output
    )

    kernel = functools.partial(_residual_block_kernel, H=H, W=W)
    return pl.pallas_call(
        kernel,
        out_shape=jax.ShapeDtypeStruct((N, H, W, C), jnp.float32),
        grid=(N,),
        in_specs=[
            pl.BlockSpec((1, Hp, Wp, C), lambda n: (n, 0, 0, 0)),
            pl.BlockSpec((9 * C, C), lambda n: (0, 0)),
            pl.BlockSpec((9 * C, C), lambda n: (0, 0)),
        ],
        out_specs=pl.BlockSpec((1, H, W, C), lambda n: (n, 0, 0, 0)),
        compiler_params=pltpu.CompilerParams(
            dimension_semantics=("parallel",),             # one instance per core step
            vmem_limit_bytes=_vmem_limit_bytes(),
        ),
        cost_estimate=cost,
    )(xp, prep_w(w1), prep_w(w2))


def residual_block_forward(x_nchw, w1, b1, w2, b2):
    """PyTorch-layout entry: x (N,C,H,W); w (Cout,Cin,3,3); b (Cout,).

    Conv biases are accepted for API parity but unused: the affine-free
    InstanceNorm2d right after each conv cancels a per-channel constant
    exactly, so the bias adds are dead work (numerically identical result).
    """
    del b1, b2
    x = jnp.transpose(x_nchw, (0, 2, 3, 1)).astype(jnp.float32)     # NHWC
    y = residual_block_nhwc(x, w1, w2)
    return jnp.transpose(y, (0, 3, 1, 2))                           # back to NCHW


# ------------------------------ reference ------------------------------------

def _reference(x, w1, b1, w2, b2):
    """Pure-JAX f32 reference of the PyTorch ResidualBlock forward (with bias)."""
    def conv(h, w, b):
        hp = jnp.pad(h, ((0, 0), (0, 0), (1, 1), (1, 1)), mode="reflect")
        y = jax.lax.conv_general_dilated(
            hp, w, window_strides=(1, 1), padding="VALID",
            dimension_numbers=("NCHW", "OIHW", "NCHW"),
            precision=jax.lax.Precision.HIGHEST)
        return y + b[None, :, None, None]

    def inorm(h):
        m = jnp.mean(h, axis=(2, 3), keepdims=True)
        v = jnp.mean(jnp.square(h - m), axis=(2, 3), keepdims=True)
        return (h - m) * jax.lax.rsqrt(v + _EPS)

    h = jnp.maximum(inorm(conv(x, w1, b1)), 0.0)
    h = inorm(conv(h, w2, b2))
    return x + h


# --------------------------------- main --------------------------------------

if __name__ == "__main__":
    N, C, H, W = 2, 128, 16, 16        # small but lane-dense (C multiple of 128)
    key = jax.random.PRNGKey(0)
    k_x, k_w1, k_b1, k_w2, k_b2 = jax.random.split(key, 5)

    x = jax.random.normal(k_x, (N, C, H, W), jnp.float32)
    fan = C * 9
    w1 = jax.random.normal(k_w1, (C, C, 3, 3), jnp.float32) / math.sqrt(fan)
    b1 = jax.random.normal(k_b1, (C,), jnp.float32) * 0.01
    w2 = jax.random.normal(k_w2, (C, C, 3, 3), jnp.float32) / math.sqrt(fan)
    b2 = jax.random.normal(k_b2, (C,), jnp.float32) * 0.01

    fwd = jax.jit(residual_block_forward)
    y = fwd(x, w1, b1, w2, b2)
    jax.block_until_ready(y)

    assert y.shape == (N, C, H, W), y.shape
    assert y.dtype == jnp.float32
    assert bool(jnp.all(jnp.isfinite(y)))

    # Per-element atol + rtol check vs f32 reference (bf16 MXU operands).
    y_ref = _reference(x, w1, b1, w2, b2)
    err = jnp.abs(y - y_ref)
    tol = 1e-1 + 5e-2 * jnp.abs(y_ref)
    max_err = float(jnp.max(err))
    assert bool(jnp.all(err <= tol)), f"max abs error {max_err}"

    print("KERNEL_OK")
</pallas_src>

<mosaic_0001>
module attributes {stable_mosaic.version = 11 : i64} {
  func.func @_residual_block_kernel(%arg0: i32, %arg1: memref<1x18x18x128xf32, #tpu.memory_space<vmem>>, %arg2: memref<1152x128xbf16, #tpu.memory_space<vmem>>, %arg3: memref<1152x128xbf16, #tpu.memory_space<vmem>>, %arg4: memref<1x16x16x128xf32, #tpu.memory_space<vmem>>) attributes {dimension_semantics = [#tpu.dimension_semantics<parallel>], iteration_bounds = array<i64: 2>, scalar_prefetch = 0 : i64, scratch_operands = 0 : i64, tpu.core_type = #tpu.core_type<tc>, window_params = [{transform_indices = @transform_0, window_bounds = array<i64: 1, 18, 18, 128>}, {pipeline_mode = #tpu.pipeline_mode<synchronous>, transform_indices = @transform_1, window_bounds = array<i64: 1152, 128>}, {pipeline_mode = #tpu.pipeline_mode<synchronous>, transform_indices = @transform_2, window_bounds = array<i64: 1152, 128>}, {transform_indices = @transform_3, window_bounds = array<i64: 1, 16, 16, 128>}]} {
    %c0 = arith.constant 0 : index
    %c0_0 = arith.constant 0 : index
    %c0_1 = arith.constant 0 : index
    %c0_2 = arith.constant 0 : index
    %0 = vector.load %arg1[%c0, %c0_0, %c0_1, %c0_2] : memref<1x18x18x128xf32, #tpu.memory_space<vmem>>, vector<1x18x18x128xf32>
    %1 = vector.shape_cast %0 : vector<1x18x18x128xf32> to vector<18x18x128xf32>
    %c0_3 = arith.constant 0 : index
    %c0_4 = arith.constant 0 : index
    %2 = vector.load %arg2[%c0_3, %c0_4] : memref<1152x128xbf16, #tpu.memory_space<vmem>>, vector<1152x128xbf16>
    %3 = vector.extract_strided_slice %1 {offsets = [0, 0, 0], sizes = [16, 16, 128], strides = [1, 1, 1]} : vector<18x18x128xf32> to vector<16x16x128xf32>
    %4 = vector.extract_strided_slice %1 {offsets = [0, 1, 0], sizes = [16, 16, 128], strides = [1, 1, 1]} : vector<18x18x128xf32> to vector<16x16x128xf32>
    %5 = vector.extract_strided_slice %1 {offsets = [0, 2, 0], sizes = [16, 16, 128], strides = [1, 1, 1]} : vector<18x18x128xf32> to vector<16x16x128xf32>
    %6 = vector.extract_strided_slice %1 {offsets = [1, 0, 0], sizes = [16, 16, 128], strides = [1, 1, 1]} : vector<18x18x128xf32> to vector<16x16x128xf32>
    %7 = vector.extract_strided_slice %1 {offsets = [1, 1, 0], sizes = [16, 16, 128], strides = [1, 1, 1]} : vector<18x18x128xf32> to vector<16x16x128xf32>
    %8 = vector.extract_strided_slice %1 {offsets = [1, 2, 0], sizes = [16, 16, 128], strides = [1, 1, 1]} : vector<18x18x128xf32> to vector<16x16x128xf32>
    %9 = vector.extract_strided_slice %1 {offsets = [2, 0, 0], sizes = [16, 16, 128], strides = [1, 1, 1]} : vector<18x18x128xf32> to vector<16x16x128xf32>
    %10 = vector.extract_strided_slice %1 {offsets = [2, 1, 0], sizes = [16, 16, 128], strides = [1, 1, 1]} : vector<18x18x128xf32> to vector<16x16x128xf32>
    %11 = vector.extract_strided_slice %1 {offsets = [2, 2, 0], sizes = [16, 16, 128], strides = [1, 1, 1]} : vector<18x18x128xf32> to vector<16x16x128xf32>
    %12 = tpu.concatenate %3, %4, %5, %6, %7, %8, %9, %10, %11 in 2 : vector<16x16x128xf32>, vector<16x16x128xf32>, vector<16x16x128xf32>, vector<16x16x128xf32>, vector<16x16x128xf32>, vector<16x16x128xf32>, vector<16x16x128xf32>, vector<16x16x128xf32>, vector<16x16x128xf32> -> vector<16x16x1152xf32>
    %13 = vector.shape_cast %12 : vector<16x16x1152xf32> to vector<256x1152xf32>
    %14 = arith.truncf %13 : vector<256x1152xf32> to vector<256x1152xbf16>
    %cst = arith.constant dense<0.000000e+00> : vector<256x128xf32>
    %15 = tpu.matmul %14, %2, %cst {dimension_numbers = #tpu.dot_dimension_numbers<[1], [0], [0], [1], [0, 0, 1, 1], [], []>} : vector<256x1152xbf16>, vector<1152x128xbf16>, vector<256x128xf32> -> vector<256x128xf32>
    %cst_5 = arith.constant dense<0.000000e+00> : vector<128xf32>
    %16 = vector.multi_reduction <add>, %15, %cst_5 [0] : vector<256x128xf32> to vector<128xf32>
    %17 = vector.shape_cast %16 : vector<128xf32> to vector<1x128xf32>
    %cst_6 = arith.constant 2.560000e+02 : f32
    %18 = vector.broadcast %cst_6 : f32 to vector<1x128xf32>
    %19 = arith.divf %17, %18 : vector<1x128xf32>
    %20 = vector.broadcast %19 : vector<1x128xf32> to vector<256x128xf32>
    %21 = arith.subf %15, %20 : vector<256x128xf32>
    %22 = arith.mulf %21, %21 : vector<256x128xf32>
    %cst_7 = arith.constant dense<0.000000e+00> : vector<128xf32>
    %23 = vector.multi_reduction <add>, %22, %cst_7 [0] : vector<256x128xf32> to vector<128xf32>
    %24 = vector.shape_cast %23 : vector<128xf32> to vector<1x128xf32>
    %cst_8 = arith.constant 2.560000e+02 : f32
    %25 = vector.broadcast %cst_8 : f32 to vector<1x128xf32>
    %26 = arith.divf %24, %25 : vector<1x128xf32>
    %cst_9 = arith.constant 9.99999974E-6 : f32
    %27 = vector.broadcast %cst_9 : f32 to vector<1x128xf32>
    %28 = arith.addf %26, %27 : vector<1x128xf32>
    %29 = math.rsqrt %28 : vector<1x128xf32>
    %30 = vector.broadcast %29 : vector<1x128xf32> to vector<256x128xf32>
    %31 = arith.mulf %21, %30 : vector<256x128xf32>
    %cst_10 = arith.constant 0.000000e+00 : f32
    %32 = vector.broadcast %cst_10 : f32 to vector<256x128xf32>
    %33 = arith.maximumf %31, %32 : vector<256x128xf32>
    %34 = arith.truncf %33 : vector<256x128xf32> to vector<256x128xbf16>
    %35 = vector.shape_cast %34 : vector<256x128xbf16> to vector<16x16x128xbf16>
    %36 = vector.extract_strided_slice %35 {offsets = [0, 1, 0], sizes = [16, 1, 128], strides = [1, 1, 1]} : vector<16x16x128xbf16> to vector<16x1x128xbf16>
    %37 = vector.extract_strided_slice %35 {offsets = [0, 14, 0], sizes = [16, 1, 128], strides = [1, 1, 1]} : vector<16x16x128xbf16> to vector<16x1x128xbf16>
    %38 = tpu.concatenate %36, %35, %37 in 1 : vector<16x1x128xbf16>, vector<16x16x128xbf16>, vector<16x1x128xbf16> -> vector<16x18x128xbf16>
    %39 = vector.extract_strided_slice %38 {offsets = [1, 0, 0], sizes = [1, 18, 128], strides = [1, 1, 1]} : vector<16x18x128xbf16> to vector<1x18x128xbf16>
    %40 = vector.extract_strided_slice %38 {offsets = [14, 0, 0], sizes = [1, 18, 128], strides = [1, 1, 1]} : vector<16x18x128xbf16> to vector<1x18x128xbf16>
    %41 = tpu.concatenate %39, %38, %40 in 0 : vector<1x18x128xbf16>, vector<16x18x128xbf16>, vector<1x18x128xbf16> -> vector<18x18x128xbf16>
    %c0_11 = arith.constant 0 : index
    %c0_12 = arith.constant 0 : index
    %42 = vector.load %arg3[%c0_11, %c0_12] : memref<1152x128xbf16, #tpu.memory_space<vmem>>, vector<1152x128xbf16>
    %43 = vector.extract_strided_slice %41 {offsets = [0, 0, 0], sizes = [16, 16, 128], strides = [1, 1, 1]} : vector<18x18x128xbf16> to vector<16x16x128xbf16>
    %44 = vector.extract_strided_slice %41 {offsets = [0, 1, 0], sizes = [16, 16, 128], strides = [1, 1, 1]} : vector<18x18x128xbf16> to vector<16x16x128xbf16>
    %45 = vector.extract_strided_slice %41 {offsets = [0, 2, 0], sizes = [16, 16, 128], strides = [1, 1, 1]} : vector<18x18x128xbf16> to vector<16x16x128xbf16>
    %46 = vector.extract_strided_slice %41 {offsets = [1, 0, 0], sizes = [16, 16, 128], strides = [1, 1, 1]} : vector<18x18x128xbf16> to vector<16x16x128xbf16>
    %47 = vector.extract_strided_slice %41 {offsets = [1, 1, 0], sizes = [16, 16, 128], strides = [1, 1, 1]} : vector<18x18x128xbf16> to vector<16x16x128xbf16>
    %48 = vector.extract_strided_slice %41 {offsets = [1, 2, 0], sizes = [16, 16, 128], strides = [1, 1, 1]} : vector<18x18x128xbf16> to vector<16x16x128xbf16>
    %49 = vector.extract_strided_slice %41 {offsets = [2, 0, 0], sizes = [16, 16, 128], strides = [1, 1, 1]} : vector<18x18x128xbf16> to vector<16x16x128xbf16>
    %50 = vector.extract_strided_slice %41 {offsets = [2, 1, 0], sizes = [16, 16, 128], strides = [1, 1, 1]} : vector<18x18x128xbf16> to vector<16x16x128xbf16>
    %51 = vector.extract_strided_slice %41 {offsets = [2, 2, 0], sizes = [16, 16, 128], strides = [1, 1, 1]} : vector<18x18x128xbf16> to vector<16x16x128xbf16>
    %52 = tpu.concatenate %43, %44, %45, %46, %47, %48, %49, %50, %51 in 2 : vector<16x16x128xbf16>, vector<16x16x128xbf16>, vector<16x16x128xbf16>, vector<16x16x128xbf16>, vector<16x16x128xbf16>, vector<16x16x128xbf16>, vector<16x16x128xbf16>, vector<16x16x128xbf16>, vector<16x16x128xbf16> -> vector<16x16x1152xbf16>
    %53 = vector.shape_cast %52 : vector<16x16x1152xbf16> to vector<256x1152xbf16>
    %cst_13 = arith.constant dense<0.000000e+00> : vector<256x128xf32>
    %54 = tpu.matmul %53, %42, %cst_13 {dimension_numbers = #tpu.dot_dimension_numbers<[1], [0], [0], [1], [0, 0, 1, 1], [], []>} : vector<256x1152xbf16>, vector<1152x128xbf16>, vector<256x128xf32> -> vector<256x128xf32>
    %cst_14 = arith.constant dense<0.000000e+00> : vector<128xf32>
    %55 = vector.multi_reduction <add>, %54, %cst_14 [0] : vector<256x128xf32> to vector<128xf32>
    %56 = vector.shape_cast %55 : vector<128xf32> to vector<1x128xf32>
    %cst_15 = arith.constant 2.560000e+02 : f32
    %57 = vector.broadcast %cst_15 : f32 to vector<1x128xf32>
    %58 = arith.divf %56, %57 : vector<1x128xf32>
    %59 = vector.broadcast %58 : vector<1x128xf32> to vector<256x128xf32>
    %60 = arith.subf %54, %59 : vector<256x128xf32>
    %61 = arith.mulf %60, %60 : vector<256x128xf32>
    %cst_16 = arith.constant dense<0.000000e+00> : vector<128xf32>
    %62 = vector.multi_reduction <add>, %61, %cst_16 [0] : vector<256x128xf32> to vector<128xf32>
    %63 = vector.shape_cast %62 : vector<128xf32> to vector<1x128xf32>
    %cst_17 = arith.constant 2.560000e+02 : f32
    %64 = vector.broadcast %cst_17 : f32 to vector<1x128xf32>
    %65 = arith.divf %63, %64 : vector<1x128xf32>
    %cst_18 = arith.constant 9.99999974E-6 : f32
    %66 = vector.broadcast %cst_18 : f32 to vector<1x128xf32>
    %67 = arith.addf %65, %66 : vector<1x128xf32>
    %68 = math.rsqrt %67 : vector<1x128xf32>
    %69 = vector.broadcast %68 : vector<1x128xf32> to vector<256x128xf32>
    %70 = arith.mulf %60, %69 : vector<256x128xf32>
    %71 = vector.shape_cast %70 : vector<256x128xf32> to vector<16x16x128xf32>
    %72 = vector.extract_strided_slice %1 {offsets = [1, 1, 0], sizes = [16, 16, 128], strides = [1, 1, 1]} : vector<18x18x128xf32> to vector<16x16x128xf32>
    %73 = arith.addf %72, %71 : vector<16x16x128xf32>
    %c0_19 = arith.constant 0 : index
    %c0_20 = arith.constant 0 : index
    %c0_21 = arith.constant 0 : index
    %c0_22 = arith.constant 0 : index
    %74 = vector.load %arg4[%c0_19, %c0_20, %c0_21, %c0_22] : memref<1x16x16x128xf32, #tpu.memory_space<vmem>>, vector<1x16x16x128xf32>
    %75 = vector.shape_cast %74 : vector<1x16x16x128xf32> to vector<16x16x128xf32>
    %76 = vector.shape_cast %73 : vector<16x16x128xf32> to vector<1x16x16x128xf32>
    tpu.vector_store %arg4[%c0_19, %c0_20, %c0_21, %c0_22], %76 {strides = array<i32>} : memref<1x16x16x128xf32, #tpu.memory_space<vmem>>, vector<1x16x16x128xf32>,
    return
  }
  func.func @transform_0(%arg0: i32) -> (i32, i32, i32, i32) {
    %c0_i32 = arith.constant 0 : i32
    %c0_i32_0 = arith.constant 0 : i32
    %c0_i32_1 = arith.constant 0 : i32
    %c0_i32_2 = arith.constant 0 : i32
    return %arg0, %c0_i32, %c0_i32_0, %c0_i32_1 : i32, i32, i32, i32
  }
  func.func @transform_1(%arg0: i32) -> (i32, i32) {
    %c0_i32 = arith.constant 0 : i32
    %c0_i32_0 = arith.constant 0 : i32
    %c0_i32_1 = arith.constant 0 : i32
    return %c0_i32, %c0_i32_0 : i32, i32
  }
  func.func @transform_2(%arg0: i32) -> (i32, i32) {
    %c0_i32 = arith.constant 0 : i32
    %c0_i32_0 = arith.constant 0 : i32
    %c0_i32_1 = arith.constant 0 : i32
    return %c0_i32, %c0_i32_0 : i32, i32
  }
  func.func @transform_3(%arg0: i32) -> (i32, i32, i32, i32) {
    %c0_i32 = arith.constant 0 : i32
    %c0_i32_0 = arith.constant 0 : i32
    %c0_i32_1 = arith.constant 0 : i32
    %c0_i32_2 = arith.constant 0 : i32
    return %arg0, %c0_i32, %c0_i32_0, %c0_i32_1 : i32, i32, i32, i32
  }
}

</mosaic_0001>

<bundles_post_ra>
// kernel: residual_block_forward.1
= control target key start
LH: loop header
LB: loop body
LE: loop exit
PB: predicated region body
PF: predicated region fallthrough
CT: control target
= control target key end

     0   :  { %8 = vsyncpa [#allocation3], 0  ;;  %s9017_s0 = inlined_call_operand.vmem [shape: f32[2,18,18,128], index: 0, kind: input, shape index: {}]   ;;  %s9018_s1 = inlined_call_operand.vmem [shape: bf16[1152,128], index: 1, kind: input, shape index: {}]   ;;  %s9019_s2 = inlined_call_operand.vmem [shape: bf16[1152,128], index: 2, kind: input, shape index: {}]   ;;  %s9020_s3 = inlined_call_operand.hbm [shape: f32[2,16,16,128], index: 3, kind: output, shape index: {}]  }
   0x1   :  { %10 = vsyncpa [#allocation3 + $0x1], 0  ;;  %s5752_s12 = smov 0   ;;  %s5754_s13 = smov 0  }
   0x2   :  { %s5756_s14 = smov 0   ;;  %s5758_s15 = smov 0  }
   0x3 LB: > { %s5773_s16 = sadd.s32 4294967295, %s5727_s15   ;;  %s4820_s17 = sadd.s32 4294967294, %s5727_s15   ;;  %s5727_s15 = sphi %s5758_s15, %s9337_s15   ;;  %s5723_s14 = sphi %s5756_s14, %s9336_s14   ;;  %s5719_s13 = sphi %s5754_s13, %s9335_s13   ;;  %s5715_s12 = sphi %s5752_s12, %s9334_s12  }
   0x4   : > { %s5777_s18 = sadd.s32 1, %s5727_s15   ;;  %s91_s19 = sadd.s32 1, %s5723_s14 }
   0x5   : > { %s88_s20 = ssub.s32 %s5727_s15, %s5777_s18  ;;  %p101_p0 = scmp.ne.s32.totalorder %s5723_s14, %s5719_s13 }
   0x6   : > { %p89_p1 = scmp.eq.s32.totalorder %s88_s20, 0  ;;  %p102_p2 = scmp.eq.s32.totalorder %s5773_s16, 1 }
   0x7   : > { %p107_p3 = scmp.ne.s32.totalorder %s5719_s13, %s5715_s12  ;;  %p108_p4 = scmp.eq.s32.totalorder %s4820_s17, 1 }
   0x8   : > { %s5788_s21 = scalar_select %p89_p1, %s5723_s14, %s91_s19  }
   0x9   : > { %p5790_p5 = por %p102_p2, %p101_p0  ;;  %p5794_p6 = por %p108_p4, %p107_p3 }
   0xa   : > { %p4823_p7 = scmp.ge.s32.totalorder %s5727_s15, 1  ;;  %p140_p8 = scmp.lt.s32.totalorder %s5727_s15, 3 }
   0xc   : > { %p141_p9 = pnand %p4823_p7, %p140_p8 }
   0xe   : > { %144 = sbr.rel (%p141_p9) target bundleno = 2052 (0x804), region = 32 }
  0x13   : > { %v5414_v0 = vld [vmem:[%s9018_s1 + $0x38] sm:$0xff]  ;;  %v5413_v2 = vld [vmem:[%s9018_s1 + $0x30] sm:$0xff]  ;;  %p164_p10 = scmp.lt.s32.totalorder %s5773_s16, 1  ;;  %v5412_v4 = vld [vmem:[%s9018_s1 + $0x28] sm:$0xff]  ;;  %vm415_vm0 = vcmask 1046528   ;;  %vm528_vm1 = vcmask 1045504  }
  0x14   : > { %v5422_v1 = vld [vmem:[%s9018_s1 + $0x78] sm:$0xff]  ;;  %5552 = vmatpush.bf16.msra.mxu2 %v5414_v0  ;;  %v5421_v3 = vld [vmem:[%s9018_s1 + $0x70] sm:$0xff]  ;;  %1161 = vmatpush.bf16.msra.mxu0 %v5414_v0  ;;  %v5420_v5 = vld [vmem:[%s9018_s1 + $0x68] sm:$0xff]  ;;  %vm2616_vm6 = vcmask 1040384   ;;  %vm2617_vm7 = vsmask.f32 256 }
  0x15   : > { %5560 = vmatpush.bf16.msra.mxu3 %v5422_v1  ;;  %1250 = vmatpush.bf16.msra.mxu1 %v5422_v1  ;;  %s165_s9 = scalar_select %p164_p10, %s5773_s16, 1  ;;  %v5411_v6 = vld [vmem:[%s9018_s1 + $0x20] sm:$0xff]  ;;  %v5410_v8 = vld [vmem:[%s9018_s1 + $0x18] sm:$0xff]  ;;  %v5409_v10 = vld [vmem:[%s9018_s1 + $0x10] sm:$0xff]  ;;  %vm2795_vm9 = vsmask.f32 7424 }
  0x16   : > { %v5419_v7 = vld [vmem:[%s9018_s1 + $0x60] sm:$0xff]  ;;  %v5418_v9 = vld [vmem:[%s9018_s1 + $0x58] sm:$0xff]  ;;  %v5417_v11 = vld [vmem:[%s9018_s1 + $0x50] sm:$0xff]  ;;  %s161_s26 = sand.u32 1, %s5719_s13   ;;  %s5551_s29 = sshll.u32 %s5773_s16, 8 }
  0x17   : > { %s5568_s20 = smul.u32 432, %s165_s9  ;;  %v5408_v18 = vld [vmem:[%s9018_s1 + $0x8] sm:$0xff]  ;;  %v5407_v26 = vld [vmem:[%s9018_s1] sm:$0xff]  ;;  %v5430_v32 = vld [vmem:[%s9018_s1 + $0xb8] sm:$0xff]  ;;  %s4824_s27 = sshll.u32 %s161_s26, 8 }
  0x18   : > { %5553 = vmatpush.bf16.msra.mxu2 %v5413_v2  ;;  %1162 = vmatpush.bf16.msra.mxu0 %v5413_v2  ;;  %v5416_v19 = vld [vmem:[%s9018_s1 + $0x48] sm:$0xff]  ;;  %v5415_v27 = vld [vmem:[%s9018_s1 + $0x40] sm:$0xff]  ;;  %v5438_v33 = vld [vmem:[%s9018_s1 + $0xf8] sm:$0xff]  ;;  %s8812_s28 = scalar_lea.vmem [#allocation2], %s4824_s27  ;;  %s4754_s16 = scalar_lea.hbm %s9020_s3, %s5551_s29 }
  0x19   : > { %5561 = vmatpush.bf16.msra.mxu3 %v5421_v3  ;;  %1251 = vmatpush.bf16.msra.mxu1 %v5421_v3  ;;  %s5835_s30 = scalar_lea.vmem %s9017_s0, %s5568_s20  ;;  %v5446_v38 = vld [vmem:[%s9018_s1 + $0x138] sm:$0xff]  ;;  %v5429_v39 = vld [vmem:[%s9018_s1 + $0xb0] sm:$0xff]  ;;  %v5428_v48 = vld [vmem:[%s9018_s1 + $0xa8] sm:$0xff]  ;;  %s4755_s6 = sshll.u32 %s8812_s28, 4  ;;  %s4756_s6 = int_to_ptr.vmem [resolvable:$true] %s4755_s6 }
  0x1a   : > { %v5844_v12 = vld [vmem:[%s5835_s30 + $0xc0] sm:$0xff]  ;;  %v5847_v13 = vld [vmem:[%s5835_s30 + $0xc8] sm:$0xff]  ;;  %v5850_v14 = vld [vmem:[%s5835_s30 + $0xd0] sm:$0x3]  ;;  %s4757_s7 = sshll.u32 %s4754_s16, 4  ;;  %s4743_s8 = scalar_lea.sflag [#allocation3], %s161_s26  ;;  %s4758_s7 = int_to_ptr.hbm [resolvable:$true] %s4757_s7 }
  0x1b   : > { %v5853_v15 = vld [vmem:[%s5835_s30] sm:$0xff]  ;;  %v5856_v16 = vld [vmem:[%s5835_s30 + $0x8] sm:$0xff]  ;;  %v5859_v17 = vld [vmem:[%s5835_s30 + $0x10] sm:$0x3]  ;;  %v456_v20 = vrot.slane %v5844_v12, 1  ;;  %v457_v21 = vrot.slane %v5847_v13, 1  ;;  %v5891_v34 = vpack.c.bf16 %v5847_v13, %v5844_v12 }
  0x1c   : > { %5554 = vmatpush.bf16.msra.mxu2 %v5412_v4  ;;  %1163 = vmatpush.bf16.msra.mxu0 %v5412_v4  ;;  %v459_v22 = vrot.slane %v5850_v14, 1  ;;  %v416_v23 = vrot.slane %v5853_v15, 1  ;;  %v417_v24 = vrot.slane %v5856_v16, 1  ;;  %v419_v25 = vrot.slane %v5859_v17, 1  ;;  %v5437_v40 = vld [vmem:[%s9018_s1 + $0xf0] sm:$0xff]  ;;  %v5909_v41 = vld [vmem:[%s5835_s30 + $0xd8] sm:$0xff]  ;;  %vm7644_vm8 = vmand %vm2616_vm6, %vm2617_vm7 }
  0x1d   : > { %5562 = vmatpush.bf16.msra.mxu3 %v5420_v5  ;;  %1252 = vmatpush.bf16.msra.mxu1 %v5420_v5  ;;  %v458_v28 = vsel %vm415_vm0, %v456_v20, %v457_v21  ;;  %v675_v36 = vpack.c.bf16 %v5856_v16, %v5853_v15  ;;  %v5912_v42 = vld [vmem:[%s5835_s30 + $0xe0] sm:$0xff]  ;;  %v5915_v43 = vld [vmem:[%s5835_s30 + $0xe8] sm:$0x3]  ;;  %v5918_v44 = vld [vmem:[%s5835_s30 + $0x18] sm:$0xff]  ;;  %v461_v50 = vrot.slane %v5909_v41, 1  ;;  %s5679_s9 = sshra.s32 %s4758_s7, 4  ;;  %s5680_s9 = int_to_ptr.hbm [resolvable:$true] %s5679_s9 }
  0x1e   : > { %v460_v29 = vsel %vm415_vm0, %v457_v21, %v459_v22  ;;  %v418_v30 = vsel %vm415_vm0, %v416_v23, %v417_v24  ;;  %v420_v31 = vsel %vm415_vm0, %v417_v24, %v419_v25  ;;  %v5921_v45 = vld [vmem:[%s5835_s30 + $0x20] sm:$0xff]  ;;  %v5445_v46 = vld [vmem:[%s9018_s1 + $0x130] sm:$0xff]  ;;  %v5927_v47 = vld [vmem:[%s5835_s30 + $0x28] sm:$0x3]  ;;  %v462_v51 = vrot.slane %v5912_v42, 1  ;;  %s5681_s10 = scalar_lea.hbm %s5680_s9, 256  ;;  %p5686_p0 = scmp.lt.s32.totalorder %s5680_s9, %s9020_s3 }
  0x1f   : > { %v5893_v35 = vpack.c.bf16 %v460_v29, %v458_v28  ;;  %v676_v37 = vpack.c.bf16 %v420_v31, %v418_v30  ;;  %v5436_v49 = vld [vmem:[%s9018_s1 + $0xe8] sm:$0xff]  ;;  %v464_v52 = vrot.slane %v5915_v43, 1  ;;  %v421_v53 = vrot.slane %v5918_v44, 1  ;;  %v5427_v1 = vld [vmem:[%s9018_s1 + $0xa0] sm:$0xff]  ;;  %v5974_v4 = vld [vmem:[%s5835_s30 + $0xf0] sm:$0xff]  ;;  %p5682_p11 = scmp.ne.s32.totalorder %s5680_s9, %s5681_s10 }
  0x20   : > { %5555 = vmatpush.bf16.msra.mxu2 %v5411_v6  ;;  %1164 = vmatpush.bf16.msra.mxu0 %v5411_v6  ;;  %v422_v54 = vrot.slane %v5921_v45, 1  ;;  %v424_v55 = vrot.slane %v5927_v47, 1  ;;  %v5444_v56 = vld [vmem:[%s9018_s1 + $0x128] sm:$0xff]  ;;  %v463_v57 = vsel %vm415_vm0, %v461_v50, %v462_v51  ;;  %v5950_v61 = vpack.c.bf16 %v5912_v42, %v5909_v41  ;;  %v5435_v2 = vld [vmem:[%s9018_s1 + $0xe0] sm:$0xff]  ;;  %v5977_v5 = vld [vmem:[%s5835_s30 + $0xf8] sm:$0xff] }
  0x21   : > { %5563 = vmatpush.bf16.msra.mxu3 %v5419_v7  ;;  %1253 = vmatpush.bf16.msra.mxu1 %v5419_v7  ;;  %v465_v58 = vsel %vm415_vm0, %v462_v51, %v464_v52  ;;  %v5956_v63 = vpack.c.bf16 %v5921_v45, %v5918_v44  ;;  %v5443_v3 = vld [vmem:[%s9018_s1 + $0x120] sm:$0xff]  ;;  %v5983_v7 = vld [vmem:[%s5835_s30 + $0x30] sm:$0xff]  ;;  %v5426_v30 = vld [vmem:[%s9018_s1 + $0x98] sm:$0xff]  ;;  %p5683_p12 = pnand %p5682_p11, %p5790_p5 }
  0x22   : > { %v423_v59 = vsel %vm415_vm0, %v421_v53, %v422_v54  ;;  %v425_v60 = vsel %vm415_vm0, %v422_v54, %v424_v55  ;;  %9108 = vst [vmem:[#allocation5_spill] sm:$0xff] %v5950_v61  ;;  %v5952_v62 = vpack.c.bf16 %v465_v58, %v463_v57  ;;  %v5980_v6 = vld [vmem:[%s5835_s30 + $0x100] sm:$0x3]  ;;  %v5434_v31 = vld [vmem:[%s9018_s1 + $0xd8] sm:$0xff] }
  0x23   : > { %v5958_v0 = vpack.c.bf16 %v425_v60, %v423_v59  ;;  %9110 = vst [vmem:[#allocation7_spill] sm:$0xff] %v5980_v6  ;;  %p5684_p13 = pneg %p5683_p12 }
  0x24   : > { %5556 = vmatpush.bf16.msra.mxu2 %v5410_v8  ;;  %1165 = vmatpush.bf16.msra.mxu0 %v5410_v8  ;;  %9109 = vst [vmem:[#allocation6_spill] sm:$0xff] %v5952_v62  ;;  %v5986_v8 = vld [vmem:[%s5835_s30 + $0x38] sm:$0xff] }
  0x25   : > { %5564 = vmatpush.bf16.msra.mxu3 %v5418_v9  ;;  %1254 = vmatpush.bf16.msra.mxu1 %v5418_v9  ;;  %v5989_v9 = vld [vmem:[%s5835_s30 + $0x40] sm:$0x3]  ;;  %v427_v20 = vrot.slane %v5986_v8, 1  ;;  %v6009_v28 = vpack.c.bf16 %v5986_v8, %v5983_v7 }
  0x26   : > { %v429_v21 = vrot.slane %v5989_v9, 1 }
  0x28   : > { %5557 = vmatpush.bf16.msra.mxu2 %v5409_v10  ;;  %1166 = vmatpush.bf16.msra.mxu0 %v5409_v10  ;;  %v466_v10 = vrot.slane %v5974_v4, 1  ;;  %v430_v25 = vsel %vm415_vm0, %v427_v20, %v429_v21  ;;  %v6095_v21 = vld [vmem:[%s5835_s30 + $0x70] sm:$0x3] }
  0x29   : > { %5565 = vmatpush.bf16.msra.mxu3 %v5417_v11  ;;  %1255 = vmatpush.bf16.msra.mxu1 %v5417_v11  ;;  %v467_v11 = vrot.slane %v5977_v5, 1 }
  0x2b   : > { %v468_v22 = vsel %vm415_vm0, %v466_v10, %v467_v11  ;;  %v6080_v10 = vld [vmem:[%s5835_s30 + $0x120] sm:$0xff] }
  0x2c   : > { %5558 = vmatpush.bf16.msra.mxu2 %v5408_v18  ;;  %1167 = vmatpush.bf16.msra.mxu0 %v5408_v18  ;;  %v469_v18 = vrot.slane %v5980_v6, 1  ;;  %9118 = vst [vmem:[#allocation15_spill] sm:$0xff] %v6080_v10 }
  0x2d   : > { %5566 = vmatpush.bf16.msra.mxu3 %v5416_v19  ;;  %1256 = vmatpush.bf16.msra.mxu1 %v5416_v19  ;;  %v426_v19 = vrot.slane %v5983_v7, 1 }
  0x2e   : > { %v470_v23 = vsel %vm415_vm0, %v467_v11, %v469_v18  ;;  %v6083_v11 = vld [vmem:[%s5835_s30 + $0x128] sm:$0xff]  ;;  %v6086_v18 = vld [vmem:[%s5835_s30 + $0x130] sm:$0x3] }
  0x2f   : > { %v428_v24 = vsel %vm415_vm0, %v426_v19, %v427_v20  ;;  %9119 = vst [vmem:[#allocation16_spill] sm:$0xff] %v6083_v11  ;;  %v6089_v19 = vld [vmem:[%s5835_s30 + $0x60] sm:$0xff]  ;;  %v6092_v20 = vld [vmem:[%s5835_s30 + $0x68] sm:$0xff] }
  0x30   : > { %5559 = vmatpush.bf16.msra.mxu2 %v5407_v26  ;;  %1168 = vmatpush.bf16.msra.mxu0 %v5407_v26  ;;  %v6003_v26 = vpack.c.bf16 %v5977_v5, %v5974_v4  ;;  %v6011_v29 = vpack.c.bf16 %v430_v25, %v428_v24  ;;  %9120 = vst [vmem:[#allocation17_spill] sm:$0xff] %v6086_v18  ;;  %v479_v24 = vrot.slane %v6086_v18, 1  ;;  %v436_v25 = vrot.slane %v6089_v19, 1 }
  0x31   : > { %5567 = vmatpush.bf16.msra.mxu3 %v5415_v27  ;;  %1257 = vmatpush.bf16.msra.mxu1 %v5415_v27  ;;  %v6005_v27 = vpack.c.bf16 %v470_v23, %v468_v22  ;;  %v476_v22 = vrot.slane %v6080_v10, 1  ;;  %v477_v23 = vrot.slane %v6083_v11, 1 }
  0x32   : > { %9111 = vst [vmem:[#allocation8_spill] sm:$0xff] %v6003_v26 }
  0x33   : > { %1209 = vmatmul.bf16.vlgmr.msra.gmra.mxu2 %v5891_v34  ;;  %1169 = vmatmul.bf16.vlgmr.msra.gmra.mxu0 %v675_v36  ;;  %9112 = vst [vmem:[#allocation9_spill] sm:$0xff] %v6005_v27  ;;  %v6030_v36 = vld [vmem:[%s5835_s30 + $0x110] sm:$0xff] }
  0x34   : > { %1339 = vmatpush.bf16.msrb.mxu2 %v5430_v32  ;;  %1298 = vmatmul.bf16.vlgmr.msra.gmra.mxu3 %v5893_v35  ;;  %v5442_v32 = vld [vmem:[%s9018_s1 + $0x118] sm:$0xff]  ;;  %9114 = vst [vmem:[#allocation11_spill] sm:$0xff] %v6030_v36 }
  0x35   : > { %1428 = vmatpush.bf16.msrb.mxu3 %v5438_v33  ;;  %1258 = vmatmul.bf16.vlgmr.msra.gmra.mxu1 %v676_v37  ;;  %v6027_v33 = vld [vmem:[%s5835_s30 + $0x108] sm:$0xff]  ;;  %v6033_v37 = vld [vmem:[%s5835_s30 + $0x118] sm:$0x3] }
  0x36   : > { %1517 = vmatpush.bf16.msrb.mxu0 %v5446_v38  ;;  %9113 = vst [vmem:[#allocation10_spill] sm:$0xff] %v6027_v33  ;;  %v6036_v38 = vld [vmem:[%s5835_s30 + $0x48] sm:$0xff]  ;;  %v6056_v57 = vpack.c.bf16 %v6030_v36, %v6027_v33 }
  0x37   : > { %9115 = vst [vmem:[#allocation12_spill] sm:$0xff] %v6033_v37  ;;  %v431_v50 = vrot.slane %v6036_v38, 1 }
  0x38   : > { %1340 = vmatpush.bf16.msrb.mxu2 %v5429_v39  ;;  %v6039_v39 = vld [vmem:[%s5835_s30 + $0x50] sm:$0xff]  ;;  %9116 = vst [vmem:[#allocation13_spill] sm:$0xff] %v6056_v57 }
  0x39   : > { %1429 = vmatpush.bf16.msrb.mxu3 %v5437_v40  ;;  %v6042_v40 = vld [vmem:[%s5835_s30 + $0x58] sm:$0x3]  ;;  %v432_v51 = vrot.slane %v6039_v39, 1  ;;  %v6062_v59 = vpack.c.bf16 %v6039_v39, %v6036_v38 }
  0x3a   : > { %1518 = vmatpush.bf16.msrb.mxu0 %v5445_v46  ;;  %v471_v46 = vrot.slane %v6027_v33, 1  ;;  %v434_v52 = vrot.slane %v6042_v40, 1 }
  0x3b   : > { %v433_v55 = vsel %vm415_vm0, %v431_v50, %v432_v51  ;;  %v6109_v50 = vpack.c.bf16 %v6083_v11, %v6080_v10  ;;  %v5451_v10 = vld [vmem:[%s9018_s1 + $0x160] sm:$0xff] }
  0x3c   : > { %1341 = vmatpush.bf16.msrb.mxu2 %v5428_v48  ;;  %v472_v48 = vrot.slane %v6030_v36, 1 }
  0x3d   : > { %1430 = vmatpush.bf16.msrb.mxu3 %v5436_v49  ;;  %v474_v49 = vrot.slane %v6033_v37, 1  ;;  %9121 = vst [vmem:[#allocation18_spill] sm:$0xff] %v6109_v50 }
  0x3e   : > { %1519 = vmatpush.bf16.msrb.mxu0 %v5444_v56  ;;  %v473_v53 = vsel %vm415_vm0, %v471_v46, %v472_v48  ;;  %v435_v56 = vsel %vm415_vm0, %v432_v51, %v434_v52  ;;  %v480_v46 = vsel %vm415_vm0, %v477_v23, %v479_v24  ;;  %v6115_v52 = vpack.c.bf16 %v6092_v20, %v6089_v19  ;;  %v6148_v24 = vld [vmem:[%s5835_s30 + $0x80] sm:$0xff] }
  0x3f   : > { %v475_v54 = vsel %vm415_vm0, %v472_v48, %v474_v49  ;;  %v6064_v60 = vpack.c.bf16 %v435_v56, %v433_v55  ;;  %v5432_v55 = vld [vmem:[%s9018_s1 + $0xc8] sm:$0xff] }
  0x40   : > { %1342 = vmatpush.bf16.msrb.mxu2 %v5427_v1  ;;  %v6058_v58 = vpack.c.bf16 %v475_v54, %v473_v53  ;;  %v5425_v1 = vld [vmem:[%s9018_s1 + $0x90] sm:$0xff]  ;;  %v5424_v54 = vld [vmem:[%s9018_s1 + $0x88] sm:$0xff] }
  0x41   : > { %1431 = vmatpush.bf16.msrb.mxu3 %v5435_v2  ;;  %v5433_v2 = vld [vmem:[%s9018_s1 + $0xd0] sm:$0xff]  ;;  %v5440_v56 = vld [vmem:[%s9018_s1 + $0x108] sm:$0xff] }
  0x42   : > { %1520 = vmatpush.bf16.msrb.mxu0 %v5443_v3  ;;  %9117 = vst [vmem:[#allocation14_spill] sm:$0xff] %v6058_v58  ;;  %v5441_v3 = vld [vmem:[%s9018_s1 + $0x110] sm:$0xff] }
  0x43   : > { %1214 = vmatmul.bf16.gmra.mxu2 %v5950_v61  ;;  %1174 = vmatmul.bf16.gmra.mxu0 %v5956_v63 }
  0x44   : > { %1303 = vmatmul.bf16.gmra.mxu3 %v5952_v62  ;;  %1343 = vmatpush.bf16.msrb.mxu2 %v5426_v30  ;;  %v437_v30 = vrot.slane %v6092_v20, 1 }
  0x45   : > { %1263 = vmatmul.bf16.gmra.mxu1 %v5958_v0  ;;  %1432 = vmatpush.bf16.msrb.mxu3 %v5434_v31  ;;  %v439_v31 = vrot.slane %v6095_v21, 1 }
  0x46   : > { %1521 = vmatpush.bf16.msrb.mxu0 %v5442_v32  ;;  %v478_v32 = vsel %vm415_vm0, %v476_v22, %v477_v23  ;;  %v438_v48 = vsel %vm415_vm0, %v436_v25, %v437_v30  ;;  %v6142_v22 = vld [vmem:[%s5835_s30 + $0x148] sm:$0x3]  ;;  %v6145_v23 = vld [vmem:[%s5835_s30 + $0x78] sm:$0xff] }
  0x47   : > { %v440_v49 = vsel %vm415_vm0, %v437_v30, %v439_v31  ;;  %v6111_v51 = vpack.c.bf16 %v480_v46, %v478_v32  ;;  %9126 = vst [vmem:[#allocation23_spill] sm:$0xff] %v6142_v22  ;;  %v6151_v25 = vld [vmem:[%s5835_s30 + $0x88] sm:$0x3]  ;;  %v484_v32 = vrot.slane %v6142_v22, 1  ;;  %v441_v46 = vrot.slane %v6145_v23, 1 }
  0x48   : > { %1344 = vmatpush.bf16.msrb.mxu2 %v5425_v1  ;;  %v6117_v53 = vpack.c.bf16 %v440_v49, %v438_v48  ;;  %v5454_v1 = vld [vmem:[%s9018_s1 + $0x178] sm:$0xff]  ;;  %v442_v48 = vrot.slane %v6148_v24, 1  ;;  %v444_v49 = vrot.slane %v6151_v25, 1 }
  0x49   : > { %1433 = vmatpush.bf16.msrb.mxu3 %v5433_v2  ;;  %9122 = vst [vmem:[#allocation19_spill] sm:$0xff] %v6111_v51  ;;  %v6136_v2 = vld [vmem:[%s5835_s30 + $0x138] sm:$0xff]  ;;  %1606 = vmatpush.bf16.msrb.mxu1 %v5454_v1 }
  0x4a   : > { %1522 = vmatpush.bf16.msrb.mxu0 %v5441_v3  ;;  %9123 = vst [vmem:[#allocation20_spill] sm:$0xff] %v6117_v53  ;;  %v6139_v3 = vld [vmem:[%s5835_s30 + $0x140] sm:$0xff]  ;;  %v481_v30 = vrot.slane %v6136_v2, 1  ;;  %v445_v1 = vsel %vm415_vm0, %v442_v48, %v444_v49 }
  0x4b   : > { %9124 = vst [vmem:[#allocation21_spill] sm:$0xff] %v6136_v2  ;;  %v482_v31 = vrot.slane %v6139_v3, 1  ;;  %v6165_v22 = vpack.c.bf16 %v6139_v3, %v6136_v2  ;;  %v6195_v49 = vld [vmem:[%s5835_s30 + $0x160] sm:$0x3] }
  0x4c   : > { %9125 = vst [vmem:[#allocation22_spill] sm:$0xff] %v6139_v3  ;;  %1345 = vmatpush.bf16.msrb.mxu2 %v5424_v54 }
  0x4d   : > { %1434 = vmatpush.bf16.msrb.mxu3 %v5432_v55  ;;  %v483_v54 = vsel %vm415_vm0, %v481_v30, %v482_v31  ;;  %v485_v55 = vsel %vm415_vm0, %v482_v31, %v484_v32  ;;  %9127 = vst [vmem:[#allocation24_spill] sm:$0xff] %v6165_v22  ;;  %v5453_v30 = vld [vmem:[%s9018_s1 + $0x170] sm:$0xff]  ;;  %v5423_v31 = vld [vmem:[%s9018_s1 + $0x80] sm:$0xff] }
  0x4e   : > { %1523 = vmatpush.bf16.msrb.mxu0 %v5440_v56  ;;  %v443_v56 = vsel %vm415_vm0, %v441_v46, %v442_v48  ;;  %v6186_v32 = vld [vmem:[%s5835_s30 + $0x150] sm:$0xff]  ;;  %v6189_v46 = vld [vmem:[%s5835_s30 + $0x158] sm:$0xff]  ;;  %v5431_v48 = vld [vmem:[%s9018_s1 + $0xc0] sm:$0xff]  ;;  %9131 = vst [vmem:[#allocation28_spill] sm:$0xff] %v6195_v49  ;;  %1607 = vmatpush.bf16.msrb.mxu1 %v5453_v30 }
  0x4f   : > { %v6173_v18 = vpack.c.bf16 %v445_v1, %v443_v56  ;;  %9129 = vst [vmem:[#allocation26_spill] sm:$0xff] %v6186_v32  ;;  %v6204_v56 = vld [vmem:[%s5835_s30 + $0x90] sm:$0xff]  ;;  %v6207_v1 = vld [vmem:[%s5835_s30 + $0x98] sm:$0xff]  ;;  %v487_v30 = vrot.slane %v6189_v46, 1 }
  0x50   : > { %9130 = vst [vmem:[#allocation27_spill] sm:$0xff] %v6189_v46  ;;  %1346 = vmatpush.bf16.msrb.mxu2 %v5423_v31  ;;  %v489_v31 = vrot.slane %v6195_v49, 1  ;;  %v446_v3 = vrot.slane %v6204_v56, 1  ;;  %v447_v2 = vrot.slane %v6207_v1, 1 }
  0x51   : > { %1435 = vmatpush.bf16.msrb.mxu3 %v5431_v48  ;;  %v529_v48 = vrot.slane %v5853_v15, 2  ;;  %v6233_v15 = vpack.c.bf16 %v6189_v46, %v6186_v32 }
  0x52   : > { %v490_v49 = vsel %vm415_vm0, %v487_v30, %v489_v31  ;;  %v448_v37 = vsel %vm415_vm0, %v446_v3, %v447_v2  ;;  %v6271_v31 = vld [vmem:[%s5835_s30 + $0xb0] sm:$0xff] }
  0x53   : > { %1219 = vmatmul.bf16.gmra.mxu2 %v6003_v26  ;;  %1179 = vmatmul.bf16.gmra.mxu0 %v6009_v28  ;;  %9132 = vst [vmem:[#allocation29_spill] sm:$0xff] %v6233_v15 }
  0x54   : > { %1308 = vmatmul.bf16.gmra.mxu3 %v6005_v27 }
  0x55   : > { %1268 = vmatmul.bf16.gmra.mxu1 %v6011_v29 }
  0x63   : > { %1224 = vmatmul.bf16.gmra.mxu2 %v6056_v57  ;;  %1184 = vmatmul.bf16.gmra.mxu0 %v6062_v59 }
  0x64   : > { %1313 = vmatmul.bf16.gmra.mxu3 %v6058_v58  ;;  %v532_v58 = vrot.slane %v5859_v17, 2  ;;  %v6239_v17 = vpack.c.bf16 %v6207_v1, %v6204_v56 }
  0x65   : > { %1273 = vmatmul.bf16.gmra.mxu1 %v6064_v60 }
  0x73   : > { %1229 = vmatmul.bf16.gmra.mxu2 %v6109_v50  ;;  %1189 = vmatmul.bf16.gmra.mxu0 %v6115_v52  ;;  %v6171_v50 = vpack.c.bf16 %v6148_v24, %v6145_v23 }
  0x74   : > { %1318 = vmatmul.bf16.gmra.mxu3 %v6111_v51  ;;  %v6167_v51 = vpack.c.bf16 %v485_v55, %v483_v54  ;;  %v5452_v54 = vld [vmem:[%s9018_s1 + $0x168] sm:$0xff]  ;;  %v5439_v55 = vld [vmem:[%s9018_s1 + $0x100] sm:$0xff] }
  0x75   : > { %1278 = vmatmul.bf16.gmra.mxu1 %v6117_v53  ;;  %1524 = vmatpush.bf16.msrb.mxu0 %v5439_v55  ;;  %v530_v55 = vrot.slane %v5856_v16, 2 }
  0x76   : > { %9128 = vst [vmem:[#allocation25_spill] sm:$0xff] %v6167_v51  ;;  %1608 = vmatpush.bf16.msrb.mxu1 %v5452_v54  ;;  %v5450_v54 = vld [vmem:[%s9018_s1 + $0x158] sm:$0xff] }
  0x7a   : > { %1609 = vmatpush.bf16.msrb.mxu1 %v5451_v10 }
  0x7e   : > { %1610 = vmatpush.bf16.msrb.mxu1 %v5450_v54 }
  0x83   : > { %1234 = vmatmul.bf16.gmra.mxu2 %v6165_v22  ;;  %1194 = vmatmul.bf16.gmra.mxu0 %v6171_v50  ;;  %v486_v22 = vrot.slane %v6186_v32, 1 }
  0x84   : > { %1323 = vmatmul.bf16.gmra.mxu3 %v6167_v51  ;;  %v6210_v51 = vld [vmem:[%s5835_s30 + $0xa0] sm:$0x3] }
  0x85   : > { %1283 = vmatmul.bf16.gmra.mxu1 %v6173_v18  ;;  %v449_v11 = vrot.slane %v6210_v51, 1  ;;  %v488_v57 = vsel %vm415_vm0, %v486_v22, %v487_v30  ;;  %v6262_v22 = vld [vmem:[%s5835_s30 + $0x170] sm:$0xff]  ;;  %v6268_v30 = vld [vmem:[%s5835_s30 + $0xa8] sm:$0xff] }
  0x86   : > { %v6235_v16 = vpack.c.bf16 %v490_v49, %v488_v57  ;;  %v5449_v57 = vld [vmem:[%s9018_s1 + $0x150] sm:$0xff]  ;;  %v6265_v49 = vld [vmem:[%s5835_s30 + $0x178] sm:$0x3]  ;;  %v6303_v26 = vpack.c.bf16 %v6271_v31, %v6268_v30 }
  0x87   : > { %v450_v36 = vsel %vm415_vm0, %v447_v2, %v449_v11  ;;  %v531_v11 = vsel %vm528_vm1, %v529_v48, %v530_v55  ;;  %v533_v2 = vsel %vm528_vm1, %v530_v55, %v532_v58  ;;  %v5470_v58 = vld [vmem:[%s9018_s1 + $0x1f8] sm:$0xff]  ;;  %9135 = vst [vmem:[#allocation32_spill] sm:$0xff] %v6265_v49  ;;  %1611 = vmatpush.bf16.msrb.mxu1 %v5449_v57  ;;  %v5448_v55 = vld [vmem:[%s9018_s1 + $0x148] sm:$0xff] }
  0x88   : > { %9133 = vst [vmem:[#allocation30_spill] sm:$0xff] %v6235_v16  ;;  %v6241_v10 = vpack.c.bf16 %v450_v36, %v448_v37  ;;  %v677_v3 = vpack.c.bf16 %v533_v2, %v531_v11  ;;  %v5462_v36 = vld [vmem:[%s9018_s1 + $0x1b8] sm:$0xff]  ;;  %v6256_v37 = vld [vmem:[%s5835_s30 + $0x168] sm:$0xff]  ;;  %1784 = vmatpush.bf16.msra.mxu3 %v5470_v58  ;;  %v492_v11 = vrot.slane %v6262_v22, 1  ;;  %v494_v2 = vrot.slane %v6265_v49, 1  ;;  %v5447_v58 = vld [vmem:[%s9018_s1 + $0x140] sm:$0xff] }
  0x89   : > { %1695 = vmatpush.bf16.msra.mxu2 %v5462_v36  ;;  %v6274_v48 = vld [vmem:[%s5835_s30 + $0xb8] sm:$0x3]  ;;  %v491_v54 = vrot.slane %v6256_v37, 1  ;;  %v452_v36 = vrot.slane %v6271_v31, 1 }
  0x8a   : > { %9134 = vst [vmem:[#allocation31_spill] sm:$0xff] %v6241_v10  ;;  %v454_v57 = vrot.slane %v6274_v48, 1  ;;  %v495_v32 = vsel %vm415_vm0, %v492_v11, %v494_v2 }
  0x8b   : > { %1612 = vmatpush.bf16.msrb.mxu1 %v5448_v55  ;;  %v493_v46 = vsel %vm415_vm0, %v491_v54, %v492_v11  ;;  %v6297_v55 = vpack.c.bf16 %v6262_v22, %v6256_v37 }
  0x8c   : > { %v455_v33 = vsel %vm415_vm0, %v452_v36, %v454_v57  ;;  %v6299_v27 = vpack.c.bf16 %v495_v32, %v493_v46  ;;  %v537_v32 = vrot.slane %v5927_v47, 2 }
  0x8d   : > { %9136 = vst [vmem:[#allocation33_spill] sm:$0xff] %v6297_v55 }
  0x8e   : > { %9137 = vst [vmem:[#allocation34_spill] sm:$0xff] %v6299_v27 }
  0x8f   : > { %1613 = vmatpush.bf16.msrb.mxu1 %v5447_v58 }
  0x93   : > { %1239 = vmatmul.bf16.gmra.mxu2 %v6233_v15  ;;  %1199 = vmatmul.bf16.gmra.mxu0 %v6239_v17  ;;  %v5478_v15 = vld [vmem:[%s9018_s1 + $0x238] sm:$0xff] }
  0x94   : > { %1328 = vmatmul.bf16.gmra.mxu3 %v6235_v16  ;;  %v451_v16 = vrot.slane %v6268_v30, 1  ;;  %1873 = vmatpush.bf16.msra.mxu0 %v5478_v15  ;;  %v534_v15 = vrot.slane %v5918_v44, 2  ;;  %v5461_v44 = vld [vmem:[%s9018_s1 + $0x1b0] sm:$0xff] }
  0x95   : > { %1288 = vmatmul.bf16.gmra.mxu1 %v6241_v10  ;;  %1696 = vmatpush.bf16.msra.mxu2 %v5461_v44 }
  0x96   : > { %v453_v49 = vsel %vm415_vm0, %v451_v16, %v452_v36  ;;  %v535_v16 = vrot.slane %v5921_v45, 2  ;;  %v5469_v45 = vld [vmem:[%s9018_s1 + $0x1f0] sm:$0xff] }
  0x97   : > { %v6305_v6 = vpack.c.bf16 %v455_v33, %v453_v49  ;;  %1785 = vmatpush.bf16.msra.mxu3 %v5469_v45 }
  0x98   : > { %v536_v46 = vsel %vm528_vm1, %v534_v15, %v535_v16  ;;  %v538_v54 = vsel %vm528_vm1, %v535_v16, %v537_v32  ;;  %v540_v15 = vrot.slane %v5986_v8, 2  ;;  %v542_v16 = vrot.slane %v5989_v9, 2  ;;  %v5477_v32 = vld [vmem:[%s9018_s1 + $0x230] sm:$0xff] }
  0x99   : > { %v680_v33 = vpack.c.bf16 %v538_v54, %v536_v46  ;;  %1874 = vmatpush.bf16.msra.mxu0 %v5477_v32  ;;  %v547_v32 = vrot.slane %v6042_v40, 2 }
  0x9a   : > { %v543_v54 = vsel %vm528_vm1, %v540_v15, %v542_v16  ;;  %v545_v16 = vrot.slane %v6039_v39, 2  ;;  %v5468_v39 = vld [vmem:[%s9018_s1 + $0x1e8] sm:$0xff] }
  0x9b   : > { %1786 = vmatpush.bf16.msra.mxu3 %v5468_v39 }
  0xa3   : > { %1244 = vmatmul.bf16.gmra.mxu2 %v6297_v55  ;;  %1204 = vmatmul.bf16.gmra.mxu0 %v6303_v26 }
  0xa4   : > { %1333 = vmatmul.bf16.gmra.mxu3 %v6299_v27 }
  0xa5   : > { %1293 = vmatmul.bf16.gmra.mxu1 %v6305_v6 }
  0xb0   : > { %v1170_v49 = vpop.f32.mrf.mxu0 }
  0xb2   : > { %v1259_v11 = vpop.f32.mrf.mxu1 }
  0xb3   : > { %v6316_v2 = vadd.f32 %v1259_v11, %v1170_v49  ;;  %1347 = vmatmul.bf16.vlgmr.msrb.gmra.mxu2 %v677_v3  ;;  %1525 = vmatmul.bf16.vlgmr.msrb.gmra.mxu0 %v5958_v0 }
  0xb4   : > { %1436 = vmatmul.bf16.vlgmr.msrb.gmra.mxu3 %v5956_v63  ;;  %v539_v63 = vrot.slane %v5983_v7, 2 }
  0xb5   : > { %1614 = vmatmul.bf16.vlgmr.msrb.gmra.mxu1 %v680_v33 }
  0xb6   : > { %v1210_v47 = vpop.f32.mrf.mxu2  ;;  %v541_v46 = vsel %vm528_vm1, %v539_v63, %v540_v15  ;;  %v544_v15 = vrot.slane %v6036_v38, 2  ;;  %v5460_v38 = vld [vmem:[%s9018_s1 + $0x1a8] sm:$0xff] }
  0xb7   : > { %v1299_v36 = vpop.f32.mrf.mxu3  ;;  %v6340_v7 = vpack.c.bf16 %v543_v54, %v541_v46  ;;  %v548_v54 = vsel %vm528_vm1, %v545_v16, %v547_v32  ;;  %1697 = vmatpush.bf16.msra.mxu2 %v5460_v38  ;;  %v549_v32 = vrot.slane %v6089_v19, 2 }
  0xb8   : > { %v6326_v57 = vadd.f32 %v1299_v36, %v1210_v47  ;;  %v1172_v3 = vpop.f32.mrf.mxu0 }
  0xba   : > { %v1261_v58 = vpop.f32.mrf.mxu1 }
  0xbb   : > { %v6331_v0 = vadd.f32 %v1261_v58, %v1172_v3 }
  0xbe   : > { %v1212_v49 = vpop.f32.mrf.mxu2 }
  0xbf   : > { %v1301_v11 = vpop.f32.mrf.mxu3 }
  0xc0   : > { %v6338_v44 = vadd.f32 %v1301_v11, %v1212_v49  ;;  %v1175_v8 = vpop.f32.mrf.mxu0 }
  0xc2   : > { %v1264_v45 = vpop.f32.mrf.mxu1 }
  0xc3   : > { %v6342_v9 = vadd.f32 %v1264_v45, %v1175_v8  ;;  %1352 = vmatmul.bf16.gmra.mxu2 %v680_v33  ;;  %1530 = vmatmul.bf16.gmra.mxu0 %v6011_v29  ;;  %v546_v33 = vsel %vm528_vm1, %v544_v15, %v545_v16 }
  0xc4   : > { %1441 = vmatmul.bf16.gmra.mxu3 %v6009_v28  ;;  %v6358_v45 = vpack.c.bf16 %v548_v54, %v546_v33  ;;  %v550_v33 = vrot.slane %v6092_v20, 2  ;;  %v552_v54 = vrot.slane %v6095_v21, 2 }
  0xc5   : > { %1619 = vmatmul.bf16.gmra.mxu1 %v6340_v7 }
  0xc6   : > { %v1215_v47 = vpop.f32.mrf.mxu2 }
  0xc7   : > { %v1304_v36 = vpop.f32.mrf.mxu3 }
  0xc8   : > { %v6347_v3 = vadd.f32 %v1304_v36, %v1215_v47  ;;  %v1177_v58 = vpop.f32.mrf.mxu0 }
  0xca   : > { %9138 = vst [vmem:[#allocation35_spill] sm:$0xff] %v6347_v3  ;;  %v1266_v63 = vpop.f32.mrf.mxu1 }
  0xcb   : > { %v6352_v46 = vadd.f32 %v1266_v63, %v1177_v58 }
  0xce   : > { %v1217_v49 = vpop.f32.mrf.mxu2 }
  0xcf   : > { %v1306_v11 = vpop.f32.mrf.mxu3 }
  0xd0   : > { %v6356_v8 = vadd.f32 %v1306_v11, %v1217_v49  ;;  %v1180_v47 = vpop.f32.mrf.mxu0  ;;  %v5476_v11 = vld [vmem:[%s9018_s1 + $0x228] sm:$0xff] }
  0xd1   : > { %1875 = vmatpush.bf16.msra.mxu0 %v5476_v11  ;;  %v554_v11 = vrot.slane %v6145_v23, 2  ;;  %v5459_v23 = vld [vmem:[%s9018_s1 + $0x1a0] sm:$0xff] }
  0xd2   : > { %v1269_v36 = vpop.f32.mrf.mxu1  ;;  %1698 = vmatpush.bf16.msra.mxu2 %v5459_v23 }
  0xd3   : > { %v6360_v3 = vadd.f32 %v1269_v36, %v1180_v47  ;;  %1357 = vmatmul.bf16.gmra.mxu2 %v6340_v7  ;;  %1535 = vmatmul.bf16.gmra.mxu0 %v6064_v60  ;;  %v551_v47 = vsel %vm528_vm1, %v549_v32, %v550_v33  ;;  %v553_v36 = vsel %vm528_vm1, %v550_v33, %v552_v54 }
  0xd4   : > { %1446 = vmatmul.bf16.gmra.mxu3 %v6062_v59  ;;  %v6386_v19 = vpack.c.bf16 %v553_v36, %v551_v47  ;;  %v555_v47 = vrot.slane %v6148_v24, 2  ;;  %v557_v36 = vrot.slane %v6151_v25, 2  ;;  %v5467_v24 = vld [vmem:[%s9018_s1 + $0x1e0] sm:$0xff] }
  0xd5   : > { %1624 = vmatmul.bf16.gmra.mxu1 %v6358_v45  ;;  %1787 = vmatpush.bf16.msra.mxu3 %v5467_v24 }
  0xd6   : > { %v1220_v40 = vpop.f32.mrf.mxu2 }
  0xd7   : > { %v1309_v58 = vpop.f32.mrf.mxu3 }
  0xd8   : > { %v6372_v63 = vadd.f32 %v1309_v58, %v1220_v40  ;;  %v1182_v15 = vpop.f32.mrf.mxu0 }
  0xda   : > { %9139 = vst [vmem:[#allocation36_spill] sm:$0xff] %v6372_v63  ;;  %v1271_v16 = vpop.f32.mrf.mxu1 }
  0xdb   : > { %v6377_v49 = vadd.f32 %v1271_v16, %v1182_v15 }
  0xde   : > { %v1222_v38 = vpop.f32.mrf.mxu2 }
  0xdf   : > { %v1311_v39 = vpop.f32.mrf.mxu3 }
  0xe0   : > { %v6384_v40 = vadd.f32 %v1311_v39, %v1222_v38  ;;  %v1185_v20 = vpop.f32.mrf.mxu0  ;;  %v556_v39 = vsel %vm528_vm1, %v554_v11, %v555_v47  ;;  %v559_v11 = vrot.slane %v6204_v56, 2 }
  0xe2   : > { %9140 = vst [vmem:[#allocation37_spill] sm:$0xff] %v6384_v40  ;;  %v1274_v58 = vpop.f32.mrf.mxu1 }
  0xe3   : > { %v6388_v21 = vadd.f32 %v1274_v58, %v1185_v20  ;;  %1362 = vmatmul.bf16.gmra.mxu2 %v6358_v45  ;;  %1540 = vmatmul.bf16.gmra.mxu0 %v6117_v53  ;;  %v558_v20 = vsel %vm528_vm1, %v555_v47, %v557_v36  ;;  %v560_v47 = vrot.slane %v6207_v1, 2  ;;  %v562_v36 = vrot.slane %v6210_v51, 2 }
  0xe4   : > { %1451 = vmatmul.bf16.gmra.mxu3 %v6115_v52 }
  0xe5   : > { %1629 = vmatmul.bf16.gmra.mxu1 %v6386_v19 }
  0xe6   : > { %v1225_v15 = vpop.f32.mrf.mxu2 }
  0xe7   : > { %v1314_v16 = vpop.f32.mrf.mxu3 }
  0xe8   : > { %v6394_v32 = vadd.f32 %v1314_v16, %v1225_v15  ;;  %v1187_v33 = vpop.f32.mrf.mxu0  ;;  %v6405_v15 = vpack.c.bf16 %v558_v20, %v556_v39  ;;  %v5475_v20 = vld [vmem:[%s9018_s1 + $0x220] sm:$0xff] }
  0xe9   : > { %1876 = vmatpush.bf16.msra.mxu0 %v5475_v20  ;;  %v564_v20 = vrot.slane %v6268_v30, 2  ;;  %v5458_v30 = vld [vmem:[%s9018_s1 + $0x198] sm:$0xff] }
  0xea   : > { %9141 = vst [vmem:[#allocation38_spill] sm:$0xff] %v6394_v32  ;;  %v1276_v54 = vpop.f32.mrf.mxu1  ;;  %1699 = vmatpush.bf16.msra.mxu2 %v5458_v30 }
  0xeb   : > { %v6399_v38 = vadd.f32 %v1276_v54, %v1187_v33 }
  0xee   : > { %v1227_v58 = vpop.f32.mrf.mxu2 }
  0xef   : > { %v1316_v40 = vpop.f32.mrf.mxu3 }
  0xf0   : > { %v6403_v63 = vadd.f32 %v1316_v40, %v1227_v58  ;;  %v1190_v16 = vpop.f32.mrf.mxu0  ;;  %v561_v58 = vsel %vm528_vm1, %v559_v11, %v560_v47 }
  0xf2   : > { %v1279_v32 = vpop.f32.mrf.mxu1 }
  0xf3   : > { %v6407_v53 = vadd.f32 %v1279_v32, %v1190_v16  ;;  %1367 = vmatmul.bf16.gmra.mxu2 %v6386_v19  ;;  %1545 = vmatmul.bf16.gmra.mxu0 %v6173_v18  ;;  %v563_v16 = vsel %vm528_vm1, %v560_v47, %v562_v36 }
  0xf4   : > { %1456 = vmatmul.bf16.gmra.mxu3 %v6171_v50  ;;  %v6433_v56 = vpack.c.bf16 %v563_v16, %v561_v58  ;;  %v565_v58 = vrot.slane %v6271_v31, 2  ;;  %v567_v16 = vrot.slane %v6274_v48, 2  ;;  %v5466_v31 = vld [vmem:[%s9018_s1 + $0x1d8] sm:$0xff] }
  0xf5   : > { %1634 = vmatmul.bf16.gmra.mxu1 %v6405_v15  ;;  %1788 = vmatpush.bf16.msra.mxu3 %v5466_v31 }
  0xf6   : > { %v1230_v25 = vpop.f32.mrf.mxu2 }
  0xf7   : > { %v1319_v40 = vpop.f32.mrf.mxu3 }
  0xf8   : > { %v6419_v32 = vadd.f32 %v1319_v40, %v1230_v25  ;;  %v1192_v33 = vpop.f32.mrf.mxu0 }
  0xfa   : > { %9142 = vst [vmem:[#allocation39_spill] sm:$0xff] %v6419_v32  ;;  %v1281_v54 = vpop.f32.mrf.mxu1 }
  0xfb   : > { %v6424_v39 = vadd.f32 %v1281_v54, %v1192_v33 }
  0xfe   : > { %v1232_v23 = vpop.f32.mrf.mxu2 }
  0xff   : > { %v1321_v24 = vpop.f32.mrf.mxu3 }
 0x100   : > { %v6431_v25 = vadd.f32 %v1321_v24, %v1232_v23  ;;  %v1195_v1 = vpop.f32.mrf.mxu0  ;;  %v566_v24 = vsel %vm528_vm1, %v564_v20, %v565_v58  ;;  %v569_v20 = vrot.slane %v5844_v12, 2 }
 0x102   : > { %9143 = vst [vmem:[#allocation40_spill] sm:$0xff] %v6431_v25  ;;  %v1284_v40 = vpop.f32.mrf.mxu1 }
 0x103   : > { %v6435_v51 = vadd.f32 %v1284_v40, %v1195_v1  ;;  %1372 = vmatmul.bf16.gmra.mxu2 %v6405_v15  ;;  %1550 = vmatmul.bf16.gmra.mxu0 %v6241_v10  ;;  %v568_v1 = vsel %vm528_vm1, %v565_v58, %v567_v16  ;;  %v570_v58 = vrot.slane %v5847_v13, 2  ;;  %v572_v16 = vrot.slane %v5850_v14, 2 }
 0x104   : > { %1461 = vmatmul.bf16.gmra.mxu3 %v6239_v17 }
 0x105   : > { %1639 = vmatmul.bf16.gmra.mxu1 %v6433_v56 }
 0x106   : > { %v1235_v33 = vpop.f32.mrf.mxu2 }
 0x107   : > { %v1324_v54 = vpop.f32.mrf.mxu3 }
 0x108   : > { %v6441_v11 = vadd.f32 %v1324_v54, %v1235_v33  ;;  %v1197_v47 = vpop.f32.mrf.mxu0  ;;  %v6452_v33 = vpack.c.bf16 %v568_v1, %v566_v24  ;;  %v571_v1 = vsel %vm528_vm1, %v569_v20, %v570_v58 }
 0x10a   : > { %9144 = vst [vmem:[#allocation41_spill] sm:$0xff] %v6441_v11  ;;  %v1286_v36 = vpop.f32.mrf.mxu1 }
 0x10b   : > { %v6446_v23 = vadd.f32 %v1286_v36, %v1197_v47 }
 0x10e   : > { %v1237_v40 = vpop.f32.mrf.mxu2 }
 0x10f   : > { %v1326_v25 = vpop.f32.mrf.mxu3 }
 0x110   : > { %v6450_v32 = vadd.f32 %v1326_v25, %v1237_v40  ;;  %v1200_v54 = vpop.f32.mrf.mxu0  ;;  %v573_v40 = vsel %vm528_vm1, %v570_v58, %v572_v16 }
 0x111   : > { %v6480_v12 = vpack.c.bf16 %v573_v40, %v571_v1  ;;  %v574_v1 = vrot.slane %v5909_v41, 2  ;;  %v575_v40 = vrot.slane %v5912_v42, 2  ;;  %v5457_v41 = vld [vmem:[%s9018_s1 + $0x190] sm:$0xff] }
 0x112   : > { %v1289_v11 = vpop.f32.mrf.mxu1  ;;  %1700 = vmatpush.bf16.msra.mxu2 %v5457_v41  ;;  %v5465_v42 = vld [vmem:[%s9018_s1 + $0x1d0] sm:$0xff] }
 0x113   : > { %v6454_v10 = vadd.f32 %v1289_v11, %v1200_v54  ;;  %1377 = vmatmul.bf16.gmra.mxu2 %v6433_v56  ;;  %1555 = vmatmul.bf16.gmra.mxu0 %v6305_v6  ;;  %v5474_v54 = vld [vmem:[%s9018_s1 + $0x218] sm:$0xff] }
 0x114   : > { %1466 = vmatmul.bf16.gmra.mxu3 %v6303_v26  ;;  %1877 = vmatpush.bf16.msra.mxu0 %v5474_v54  ;;  %v577_v54 = vrot.slane %v5915_v43, 2 }
 0x115   : > { %1644 = vmatmul.bf16.gmra.mxu1 %v6452_v33  ;;  %1789 = vmatpush.bf16.msra.mxu3 %v5465_v42 }
 0x116   : > { %v1240_v48 = vpop.f32.mrf.mxu2 }
 0x117   : > { %v1329_v25 = vpop.f32.mrf.mxu3 }
 0x118   : > { %v6466_v11 = vadd.f32 %v1329_v25, %v1240_v48  ;;  %v1202_v47 = vpop.f32.mrf.mxu0 }
 0x11a   : > { %9145 = vst [vmem:[#allocation42_spill] sm:$0xff] %v6466_v11  ;;  %v1291_v36 = vpop.f32.mrf.mxu1 }
 0x11b   : > { %v6471_v24 = vadd.f32 %v1291_v36, %v1202_v47 }
 0x11e   : > { %v1242_v30 = vpop.f32.mrf.mxu2 }
 0x11f   : > { %v1331_v31 = vpop.f32.mrf.mxu3 }
 0x120   : > { %v6478_v48 = vadd.f32 %v1331_v31, %v1242_v30  ;;  %v1205_v13 = vpop.f32.mrf.mxu0  ;;  %v576_v31 = vsel %vm528_vm1, %v574_v1, %v575_v40 }
 0x122   : > { %9146 = vst [vmem:[#allocation43_spill] sm:$0xff] %v6478_v48  ;;  %v1294_v25 = vpop.f32.mrf.mxu1 }
 0x123   : > { %v6482_v14 = vadd.f32 %v1294_v25, %v1205_v13  ;;  %1382 = vmatmul.bf16.gmra.mxu2 %v6452_v33  ;;  %1560 = vmatmul.bf16.gmra.mxu0 %v5893_v35  ;;  %v578_v13 = vsel %vm528_vm1, %v575_v40, %v577_v54  ;;  %v579_v54 = vrot.slane %v5974_v4, 2 }
 0x124   : > { %1471 = vmatmul.bf16.gmra.mxu3 %v5891_v34 }
 0x125   : > { %1649 = vmatmul.bf16.gmra.mxu1 %v6480_v12 }
 0x126   : > { %v1245_v47 = vpop.f32.mrf.mxu2 }
 0x127   : > { %v1334_v36 = vpop.f32.mrf.mxu3 }
 0x128   : > { %v6488_v20 = vadd.f32 %v1334_v36, %v1245_v47  ;;  %v1207_v58 = vpop.f32.mrf.mxu0  ;;  %v6499_v47 = vpack.c.bf16 %v578_v13, %v576_v31  ;;  %v580_v31 = vrot.slane %v5977_v5, 2  ;;  %v9149_v13 = vld [vmem:[#allocation7_spill] sm:$0xff] }
 0x12a   : > { %9147 = vst [vmem:[#allocation44_spill] sm:$0xff] %v6488_v20  ;;  %v1296_v16 = vpop.f32.mrf.mxu1 }
 0x12b   : > { %v6493_v30 = vadd.f32 %v1296_v16, %v1207_v58 }
 0x12e   : > { %v1247_v25 = vpop.f32.mrf.mxu2 }
 0x12f   : > { %v1336_v48 = vpop.f32.mrf.mxu3 }
 0x130   : > { %v6497_v11 = vadd.f32 %v1336_v48, %v1247_v25  ;;  %v1526_v36 = vpop.f32.mrf.mxu0  ;;  %v582_v25 = vrot.slane %v9149_v13, 2 }
 0x132   : > { %9148 = vst [vmem:[#allocation45_spill] sm:$0xff] %v6497_v11  ;;  %v1615_v20 = vpop.f32.mrf.mxu1 }
 0x133   : > { %1387 = vmatmul.bf16.gmra.mxu2 %v6480_v12  ;;  %1565 = vmatmul.bf16.gmra.mxu0 %v5952_v62  ;;  %v581_v62 = vsel %vm528_vm1, %v579_v54, %v580_v31 }
 0x134   : > { %1476 = vmatmul.bf16.gmra.mxu3 %v5950_v61  ;;  %v583_v61 = vsel %vm528_vm1, %v580_v31, %v582_v25 }
 0x135   : > { %1654 = vmatmul.bf16.gmra.mxu1 %v6499_v47  ;;  %v6523_v4 = vpack.c.bf16 %v583_v61, %v581_v62 }
 0x136   : > { %v1348_v43 = vpop.f32.mrf.mxu2 }
 0x137   : > { %v1437_v48 = vpop.f32.mrf.mxu3  ;;  %v1349_v58 = vadd.f32 %v1348_v43, %v6316_v2  ;;  %v5473_v2 = vld [vmem:[%s9018_s1 + $0x210] sm:$0xff] }
 0x138   : > { %v1528_v1 = vpop.f32.mrf.mxu0  ;;  %1878 = vmatpush.bf16.msra.mxu0 %v5473_v2  ;;  %v9154_v2 = vld [vmem:[#allocation10_spill] sm:$0xff] }
 0x139   : > { %v1438_v16 = vadd.f32 %v1437_v48, %v1349_v58 }
 0x13a   : > { %v1617_v40 = vpop.f32.mrf.mxu1 }
 0x13b   : > { %v1527_v11 = vadd.f32 %v1526_v36, %v1438_v16  ;;  %v9152_v16 = vld [vmem:[#allocation9_spill] sm:$0xff] }
 0x13d   : > { %v6515_v41 = vadd.f32 %v1615_v20, %v1527_v11  ;;  %v9151_v11 = vld [vmem:[#allocation8_spill] sm:$0xff] }
 0x13e   : > { %v1350_v42 = vpop.f32.mrf.mxu2 }
 0x13f   : > { %9150 = vst [vmem:[#allocation7_spill] sm:$0xff] %v6515_v41  ;;  %v1439_v43 = vpop.f32.mrf.mxu3  ;;  %v1351_v48 = vadd.f32 %v1350_v42, %v6331_v0  ;;  %v584_v42 = vrot.slane %v9154_v2, 2  ;;  %v9156_v41 = vld [vmem:[#allocation12_spill] sm:$0xff] }
 0x140   : > { %v1531_v58 = vpop.f32.mrf.mxu0 }
 0x141   : > { %v1440_v5 = vadd.f32 %v1439_v43, %v1351_v48  ;;  %v9155_v43 = vld [vmem:[#allocation11_spill] sm:$0xff] }
 0x142   : > { %v1620_v36 = vpop.f32.mrf.mxu1  ;;  %v585_v48 = vrot.slane %v9155_v43, 2  ;;  %v9158_v43 = vld [vmem:[#allocation13_spill] sm:$0xff] }
 0x143   : > { %1392 = vmatmul.bf16.gmra.mxu2 %v6499_v47  ;;  %v1529_v20 = vadd.f32 %v1528_v1, %v1440_v5  ;;  %1570 = vmatmul.bf16.gmra.mxu0 %v9152_v16 }
 0x144   : > { %1481 = vmatmul.bf16.gmra.mxu3 %v9151_v11  ;;  %v587_v11 = vrot.slane %v9156_v41, 2  ;;  %v586_v16 = vsel %vm528_vm1, %v584_v42, %v585_v48 }
 0x145   : > { %1659 = vmatmul.bf16.gmra.mxu1 %v6523_v4  ;;  %v6529_v54 = vadd.f32 %v1617_v40, %v1529_v20 }
 0x146   : > { %v1353_v31 = vpop.f32.mrf.mxu2  ;;  %v588_v40 = vsel %vm528_vm1, %v585_v48, %v587_v11 }
 0x147   : > { %9153 = vst [vmem:[#allocation46_spill] sm:$0xff] %v6529_v54  ;;  %v1442_v13 = vpop.f32.mrf.mxu3  ;;  %v1354_v0 = vadd.f32 %v1353_v31, %v6342_v9  ;;  %v6540_v31 = vpack.c.bf16 %v588_v40, %v586_v16 }
 0x148   : > { %v1533_v62 = vpop.f32.mrf.mxu0 }
 0x149   : > { %v1443_v61 = vadd.f32 %v1442_v13, %v1354_v0 }
 0x14a   : > { %v1622_v25 = vpop.f32.mrf.mxu1 }
 0x14b   : > { %v1532_v1 = vadd.f32 %v1531_v58, %v1443_v61  ;;  %v5456_v58 = vld [vmem:[%s9018_s1 + $0x188] sm:$0xff] }
 0x14c   : > { %1701 = vmatpush.bf16.msra.mxu2 %v5456_v58 }
 0x14d   : > { %v6535_v5 = vadd.f32 %v1620_v36, %v1532_v1  ;;  %v9159_v36 = vld [vmem:[#allocation14_spill] sm:$0xff]  ;;  %v9161_v1 = vld [vmem:[#allocation15_spill] sm:$0xff] }
 0x14e   : > { %v1355_v20 = vpop.f32.mrf.mxu2  ;;  %v589_v40 = vrot.slane %v9161_v1, 2 }
 0x14f   : > { %9157 = vst [vmem:[#allocation10_spill] sm:$0xff] %v6535_v5  ;;  %v1444_v54 = vpop.f32.mrf.mxu3  ;;  %v1356_v9 = vadd.f32 %v1355_v20, %v6352_v46  ;;  %v5464_v46 = vld [vmem:[%s9018_s1 + $0x1c8] sm:$0xff]  ;;  %v9162_v20 = vld [vmem:[#allocation16_spill] sm:$0xff] }
 0x150   : > { %v1536_v0 = vpop.f32.mrf.mxu0  ;;  %1790 = vmatpush.bf16.msra.mxu3 %v5464_v46 }
 0x151   : > { %v1445_v13 = vadd.f32 %v1444_v54, %v1356_v9  ;;  %v590_v9 = vrot.slane %v9162_v20, 2 }
 0x152   : > { %v1625_v2 = vpop.f32.mrf.mxu1 }
 0x153   : > { %1397 = vmatmul.bf16.gmra.mxu2 %v6523_v4  ;;  %v1534_v41 = vadd.f32 %v1533_v62, %v1445_v13  ;;  %1575 = vmatmul.bf16.gmra.mxu0 %v9159_v36  ;;  %v9163_v13 = vld [vmem:[#allocation17_spill] sm:$0xff] }
 0x154   : > { %1486 = vmatmul.bf16.gmra.mxu3 %v9158_v43 }
 0x155   : > { %1664 = vmatmul.bf16.gmra.mxu1 %v6540_v31  ;;  %v6549_v11 = vadd.f32 %v1622_v25, %v1534_v41  ;;  %v592_v25 = vrot.slane %v9163_v13, 2 }
 0x156   : > { %v1358_v16 = vpop.f32.mrf.mxu2 }
 0x157   : > { %9160 = vst [vmem:[#allocation11_spill] sm:$0xff] %v6549_v11  ;;  %v1447_v54 = vpop.f32.mrf.mxu3  ;;  %v1359_v61 = vadd.f32 %v1358_v16, %v6360_v3  ;;  %v591_v11 = vsel %vm528_vm1, %v589_v40, %v590_v9  ;;  %v593_v5 = vsel %vm528_vm1, %v590_v9, %v592_v25  ;;  %v5472_v3 = vld [vmem:[%s9018_s1 + $0x208] sm:$0xff]  ;;  %v9166_v40 = vld [vmem:[#allocation19_spill] sm:$0xff] }
 0x158   : > { %v1538_v42 = vpop.f32.mrf.mxu0  ;;  %1879 = vmatpush.bf16.msra.mxu0 %v5472_v3  ;;  %v9168_v3 = vld [vmem:[#allocation21_spill] sm:$0xff] }
 0x159   : > { %v1448_v62 = vadd.f32 %v1447_v54, %v1359_v61  ;;  %v6566_v61 = vpack.c.bf16 %v593_v5, %v591_v11 }
 0x15a   : > { %v1627_v48 = vpop.f32.mrf.mxu1 }
 0x15b   : > { %v1537_v41 = vadd.f32 %v1536_v0, %v1448_v62 }
 0x15d   : > { %v6558_v58 = vadd.f32 %v1625_v2, %v1537_v41  ;;  %v9165_v2 = vld [vmem:[#allocation18_spill] sm:$0xff] }
 0x15e   : > { %v1360_v46 = vpop.f32.mrf.mxu2 }
 0x15f   : > { %9164 = vst [vmem:[#allocation12_spill] sm:$0xff] %v6558_v58  ;;  %v1449_v16 = vpop.f32.mrf.mxu3  ;;  %v1361_v54 = vadd.f32 %v1360_v46, %v6377_v49  ;;  %v594_v46 = vrot.slane %v9168_v3, 2  ;;  %v9170_v58 = vld [vmem:[#allocation23_spill] sm:$0xff] }
 0x160   : > { %v1541_v20 = vpop.f32.mrf.mxu0 }
 0x161   : > { %v1450_v1 = vadd.f32 %v1449_v16, %v1361_v54  ;;  %v9169_v16 = vld [vmem:[#allocation22_spill] sm:$0xff] }
 0x162   : > { %v1630_v0 = vpop.f32.mrf.mxu1  ;;  %v595_v54 = vrot.slane %v9169_v16, 2  ;;  %v9172_v16 = vld [vmem:[#allocation24_spill] sm:$0xff] }
 0x163   : > { %1402 = vmatmul.bf16.gmra.mxu2 %v6540_v31  ;;  %v1539_v62 = vadd.f32 %v1538_v42, %v1450_v1  ;;  %1580 = vmatmul.bf16.gmra.mxu0 %v9166_v40 }
 0x164   : > { %1491 = vmatmul.bf16.gmra.mxu3 %v9165_v2  ;;  %v597_v2 = vrot.slane %v9170_v58, 2  ;;  %v596_v40 = vsel %vm528_vm1, %v594_v46, %v595_v54 }
 0x165   : > { %1669 = vmatmul.bf16.gmra.mxu1 %v6566_v61  ;;  %v6572_v9 = vadd.f32 %v1627_v48, %v1539_v62 }
 0x166   : > { %v1363_v13 = vpop.f32.mrf.mxu2  ;;  %v598_v48 = vsel %vm528_vm1, %v595_v54, %v597_v2 }
 0x167   : > { %9167 = vst [vmem:[#allocation13_spill] sm:$0xff] %v6572_v9  ;;  %v1452_v25 = vpop.f32.mrf.mxu3  ;;  %v1364_v49 = vadd.f32 %v1363_v13, %v6388_v21  ;;  %v6583_v13 = vpack.c.bf16 %v598_v48, %v596_v40 }
 0x168   : > { %v1543_v11 = vpop.f32.mrf.mxu0 }
 0x169   : > { %v1453_v5 = vadd.f32 %v1452_v25, %v1364_v49 }
 0x16a   : > { %v1632_v41 = vpop.f32.mrf.mxu1 }
 0x16b   : > { %v1542_v42 = vadd.f32 %v1541_v20, %v1453_v5  ;;  %v5455_v20 = vld [vmem:[%s9018_s1 + $0x180] sm:$0xff] }
 0x16c   : > { %1702 = vmatpush.bf16.msra.mxu2 %v5455_v20 }
 0x16d   : > { %v6578_v1 = vadd.f32 %v1630_v0, %v1542_v42  ;;  %v9173_v0 = vld [vmem:[#allocation25_spill] sm:$0xff]  ;;  %v9176_v42 = vld [vmem:[#allocation26_spill] sm:$0xff] }
 0x16e   : > { %v1365_v62 = vpop.f32.mrf.mxu2  ;;  %v599_v48 = vrot.slane %v9176_v42, 2 }
 0x16f   : > { %9171 = vst [vmem:[#allocation14_spill] sm:$0xff] %v6578_v1  ;;  %v1454_v9 = vpop.f32.mrf.mxu3  ;;  %v1366_v21 = vadd.f32 %v1365_v62, %v6399_v38  ;;  %v5463_v38 = vld [vmem:[%s9018_s1 + $0x1c0] sm:$0xff]  ;;  %v9177_v62 = vld [vmem:[#allocation27_spill] sm:$0xff] }
 0x170   : > { %v1546_v49 = vpop.f32.mrf.mxu0  ;;  %1791 = vmatpush.bf16.msra.mxu3 %v5463_v38 }
 0x171   : > { %v1455_v25 = vadd.f32 %v1454_v9, %v1366_v21  ;;  %v600_v21 = vrot.slane %v9177_v62, 2 }
 0x172   : > { %v1635_v3 = vpop.f32.mrf.mxu1 }
 0x173   : > { %1407 = vmatmul.bf16.gmra.mxu2 %v6566_v61  ;;  %v1544_v58 = vadd.f32 %v1543_v11, %v1455_v25  ;;  %1585 = vmatmul.bf16.gmra.mxu0 %v9173_v0 }
 0x174   : > { %1496 = vmatmul.bf16.gmra.mxu3 %v9172_v16 }
 0x175   : > { %1674 = vmatmul.bf16.gmra.mxu1 %v6583_v13  ;;  %v6592_v2 = vadd.f32 %v1632_v41, %v1544_v58  ;;  %v9178_v41 = vld [vmem:[#allocation28_spill] sm:$0xff] }
 0x176   : > { %v1368_v40 = vpop.f32.mrf.mxu2  ;;  %v602_v25 = vrot.slane %v9178_v41, 2 }
 0x177   : > { %9174 = vst [vmem:[#allocation15_spill] sm:$0xff] %v6592_v2  ;;  %v1457_v9 = vpop.f32.mrf.mxu3  ;;  %v1369_v5 = vadd.f32 %v1368_v40, %v6407_v53  ;;  %v601_v2 = vsel %vm528_vm1, %v599_v48, %v600_v21  ;;  %v5471_v53 = vld [vmem:[%s9018_s1 + $0x200] sm:$0xff]  ;;  %v9182_v48 = vld [vmem:[#allocation30_spill] sm:$0xff] }
 0x178   : > { %v1548_v46 = vpop.f32.mrf.mxu0  ;;  %v603_v1 = vsel %vm528_vm1, %v600_v21, %v602_v25  ;;  %1880 = vmatpush.bf16.msra.mxu0 %v5471_v53  ;;  %v605_v53 = vrot.slane %v6262_v22, 2 }
 0x179   : > { %v1458_v11 = vadd.f32 %v1457_v9, %v1369_v5  ;;  %v6611_v5 = vpack.c.bf16 %v603_v1, %v601_v2 }
 0x17a   : > { %v6598_v54 = vpop.f32.mrf.mxu1 }
 0x17b   : > { %9175 = vst [vmem:[#allocation16_spill] sm:$0xff] %v6598_v54  ;;  %v1547_v58 = vadd.f32 %v1546_v49, %v1458_v11 }
 0x17d   : > { %v6603_v20 = vadd.f32 %v1635_v3, %v1547_v58  ;;  %v9180_v3 = vld [vmem:[#allocation29_spill] sm:$0xff]  ;;  %v604_v58 = vrot.slane %v6256_v37, 2 }
 0x17e   : > { %v1370_v38 = vpop.f32.mrf.mxu2 }
 0x17f   : > { %9179 = vst [vmem:[#allocation17_spill] sm:$0xff] %v6603_v20  ;;  %v1459_v40 = vpop.f32.mrf.mxu3  ;;  %v1371_v9 = vadd.f32 %v1370_v38, %v6424_v39  ;;  %v9184_v38 = vld [vmem:[#allocation32_spill] sm:$0xff] }
 0x180   : > { %v1551_v62 = vpop.f32.mrf.mxu0 }
 0x181   : > { %v1460_v42 = vadd.f32 %v1459_v40, %v1371_v9  ;;  %v607_v40 = vrot.slane %v9184_v38, 2 }
 0x182   : > { %v1640_v49 = vpop.f32.mrf.mxu1 }
 0x183   : > { %1412 = vmatmul.bf16.gmra.mxu2 %v6583_v13  ;;  %v6615_v11 = vadd.f32 %v1548_v46, %v1460_v42  ;;  %1590 = vmatmul.bf16.gmra.mxu0 %v9182_v48  ;;  %v606_v42 = vsel %vm528_vm1, %v604_v58, %v605_v53  ;;  %v219_v58 = vld [vmem:[%s5835_s30 + $0x190] sm:$0x3] }
 0x184   : > { %1501 = vmatmul.bf16.gmra.mxu3 %v9180_v3 }
 0x185   : > { %9181 = vst [vmem:[#allocation21_spill] sm:$0xff] %v6615_v11  ;;  %1679 = vmatmul.bf16.gmra.mxu1 %v6611_v5 }
 0x186   : > { %v1373_v21 = vpop.f32.mrf.mxu2 }
 0x187   : > { %v1462_v41 = vpop.f32.mrf.mxu3  ;;  %v1374_v39 = vadd.f32 %v1373_v21, %v6435_v51  ;;  %v608_v51 = vsel %vm528_vm1, %v605_v53, %v607_v40 }
 0x188   : > { %v1553_v1 = vpop.f32.mrf.mxu0 }
 0x189   : > { %v1463_v25 = vadd.f32 %v1462_v41, %v1374_v39 }
 0x18a   : > { %v6620_v2 = vpop.f32.mrf.mxu1 }
 0x18b   : > { %9183 = vst [vmem:[#allocation22_spill] sm:$0xff] %v6620_v2  ;;  %v1552_v46 = vadd.f32 %v1551_v62, %v1463_v25  ;;  %v6630_v2 = vpack.c.bf16 %v608_v51, %v606_v42  ;;  %v218_v25 = vld [vmem:[%s5835_s30 + $0x188] sm:$0xff]  ;;  %v647_v42 = vrot.slane %v219_v58, 1 }
 0x18d   : > { %v6625_v9 = vadd.f32 %v1640_v49, %v1552_v46  ;;  %v217_v49 = vld [vmem:[%s5835_s30 + $0x180] sm:$0xff]  ;;  %v645_v46 = vrot.slane %v218_v25, 1 }
 0x18e   : > { %v1375_v21 = vpop.f32.mrf.mxu2  ;;  %v644_v40 = vrot.slane %v217_v49, 1 }
 0x18f   : > { %9185 = vst [vmem:[#allocation23_spill] sm:$0xff] %v6625_v9  ;;  %v1464_v41 = vpop.f32.mrf.mxu3  ;;  %v1376_v39 = vadd.f32 %v1375_v21, %v6446_v23 }
 0x190   : > { %v1556_v22 = vpop.f32.mrf.mxu0  ;;  %v646_v11 = vsel %vm415_vm0, %v644_v40, %v645_v46 }
 0x191   : > { %v1465_v37 = vadd.f32 %v1464_v41, %v1376_v39  ;;  %v652_v39 = vrot.slane %v218_v25, 2 }
 0x192   : > { %v1645_v54 = vpop.f32.mrf.mxu1 }
 0x193   : > { %1417 = vmatmul.bf16.gmra.mxu2 %v6611_v5  ;;  %v6634_v62 = vadd.f32 %v1553_v1, %v1465_v37  ;;  %1595 = vmatmul.bf16.gmra.mxu0 %v6299_v27  ;;  %v651_v1 = vrot.slane %v217_v49, 2  ;;  %v654_v37 = vrot.slane %v219_v58, 2  ;;  %v648_v27 = vsel %vm415_vm0, %v645_v46, %v647_v42 }
 0x194   : > { %1506 = vmatmul.bf16.gmra.mxu3 %v6297_v55 }
 0x195   : > { %9186 = vst [vmem:[#allocation24_spill] sm:$0xff] %v6634_v62  ;;  %1684 = vmatmul.bf16.gmra.mxu1 %v6630_v2  ;;  %v653_v55 = vsel %vm528_vm1, %v651_v1, %v652_v39 }
 0x196   : > { %v1378_v53 = vpop.f32.mrf.mxu2 }
 0x197   : > { %v1467_v23 = vpop.f32.mrf.mxu3  ;;  %v1379_v38 = vadd.f32 %v1378_v53, %v6454_v10  ;;  %v655_v10 = vsel %vm528_vm1, %v652_v39, %v654_v37 }
 0x198   : > { %v1558_v21 = vpop.f32.mrf.mxu0  ;;  %v6655_v58 = vpack.c.bf16 %v655_v10, %v653_v55 }
 0x199   : > { %v1468_v51 = vadd.f32 %v1467_v23, %v1379_v38  ;;  %v6651_v38 = vpack.c.bf16 %v218_v25, %v217_v49 }
 0x19a   : > { %v6642_v41 = vpop.f32.mrf.mxu1 }
 0x19b   : > { %9187 = vst [vmem:[#allocation25_spill] sm:$0xff] %v6642_v41  ;;  %v1557_v62 = vadd.f32 %v1556_v22, %v1468_v51  ;;  %v6653_v41 = vpack.c.bf16 %v648_v27, %v646_v11 }
 0x19d   : > { %v6645_v9 = vadd.f32 %v1645_v54, %v1557_v62 }
 0x19e   : > { %v1380_v53 = vpop.f32.mrf.mxu2 }
 0x19f   : > { %v1469_v20 = vpop.f32.mrf.mxu3  ;;  %v1381_v23 = vadd.f32 %v1380_v53, %v6471_v24 }
 0x1a0   : > { %v1561_v40 = vpop.f32.mrf.mxu0 }
 0x1a1   : > { %v1470_v22 = vadd.f32 %v1469_v20, %v1381_v23 }
 0x1a2   : > { %v1650_v54 = vpop.f32.mrf.mxu1 }
 0x1a3   : > { %1422 = vmatmul.bf16.gmra.mxu2 %v6630_v2  ;;  %v6659_v62 = vadd.f32 %v1558_v21, %v1470_v22  ;;  %1600 = vmatmul.bf16.gmra.mxu0 %v6653_v41 }
 0x1a4   : > { %1511 = vmatmul.bf16.gmra.mxu3 %v6651_v38 }
 0x1a5   : > { %1689 = vmatmul.bf16.gmra.mxu1 %v6655_v58 }
 0x1a6   : > { %v1383_v24 = vpop.f32.mrf.mxu2 }
 0x1a7   : > { %v1472_v49 = vpop.f32.mrf.mxu3  ;;  %v1384_v27 = vadd.f32 %v1383_v24, %v6482_v14 }
 0x1a8   : > { %v1563_v55 = vpop.f32.mrf.mxu0 }
 0x1a9   : > { %v1473_v11 = vadd.f32 %v1472_v49, %v1384_v27 }
 0x1aa   : > { %v6664_v25 = vpop.f32.mrf.mxu1 }
 0x1ab   : > { %v1562_v20 = vadd.f32 %v1561_v40, %v1473_v11 }
 0x1ad   : > { %v6666_v46 = vadd.f32 %v1650_v54, %v1562_v20 }
 0x1ae   : > { %v1385_v42 = vpop.f32.mrf.mxu2 }
 0x1af   : > { %v1474_v51 = vpop.f32.mrf.mxu3  ;;  %v1386_v21 = vadd.f32 %v1385_v42, %v6493_v30  ;;  %v9188_v42 = vld [vmem:[#allocation35_spill] sm:$0xff] }
 0x1b0   : > { %v1566_v39 = vpop.f32.mrf.mxu0 }
 0x1b1   : > { %v1475_v1 = vadd.f32 %v1474_v51, %v1386_v21 }
 0x1b2   : > { %v1655_v37 = vpop.f32.mrf.mxu1 }
 0x1b3   : > { %1703 = vmatmul.bf16.vlgmr.msra.gmra.mxu2 %v6009_v28  ;;  %v6671_v10 = vadd.f32 %v1563_v55, %v1475_v1  ;;  %1881 = vmatmul.bf16.vlgmr.msra.gmra.mxu0 %v6340_v7 }
 0x1b4   : > { %1792 = vmatmul.bf16.vlgmr.msra.gmra.mxu3 %v6011_v29 }
 0x1b6   : > { %v1388_v14 = vpop.f32.mrf.mxu2 }
 0x1b7   : > { %v1477_v53 = vpop.f32.mrf.mxu3  ;;  %v1389_v23 = vadd.f32 %v1388_v14, %v6326_v57 }
 0x1b8   : > { %v1568_v40 = vpop.f32.mrf.mxu0 }
 0x1b9   : > { %v1478_v22 = vadd.f32 %v1477_v53, %v1389_v23 }
 0x1ba   : > { %v6675_v24 = vpop.f32.mrf.mxu1 }
 0x1bb   : > { %v1567_v54 = vadd.f32 %v1566_v39, %v1478_v22 }
 0x1bd   : > { %v6677_v30 = vadd.f32 %v1655_v37, %v1567_v54 }
 0x1be   : > { %v1390_v49 = vpop.f32.mrf.mxu2 }
 0x1bf   : > { %v1479_v27 = vpop.f32.mrf.mxu3  ;;  %v1391_v28 = vadd.f32 %v1390_v49, %v6338_v44  ;;  %v9190_v49 = vld [vmem:[#allocation36_spill] sm:$0xff] }
 0x1c0   : > { %v1571_v11 = vpop.f32.mrf.mxu0 }
 0x1c1   : > { %v1480_v29 = vadd.f32 %v1479_v27, %v1391_v28 }
 0x1c2   : > { %v1660_v57 = vpop.f32.mrf.mxu1 }
 0x1c3   : > { %1708 = vmatmul.bf16.gmra.mxu2 %v6062_v59  ;;  %v6682_v7 = vadd.f32 %v1568_v40, %v1480_v29  ;;  %1886 = vmatmul.bf16.gmra.mxu0 %v6358_v45  ;;  %v9189_v45 = vld [vmem:[#allocation20_spill] sm:$0xff] }
 0x1c4   : > { %1797 = vmatmul.bf16.gmra.mxu3 %v6064_v60 }
 0x1c6   : > { %v1393_v55 = vpop.f32.mrf.mxu2 }
 0x1c7   : > { %v1482_v20 = vpop.f32.mrf.mxu3  ;;  %v1394_v51 = vadd.f32 %v1393_v55, %v9188_v42  ;;  %v9191_v42 = vld [vmem:[#allocation37_spill] sm:$0xff] }
 0x1c8   : > { %v1573_v1 = vpop.f32.mrf.mxu0 }
 0x1c9   : > { %v1483_v21 = vadd.f32 %v1482_v20, %v1394_v51 }
 0x1ca   : > { %v6689_v53 = vpop.f32.mrf.mxu1 }
 0x1cb   : > { %v1572_v39 = vadd.f32 %v1571_v11, %v1483_v21 }
 0x1cd   : > { %v6686_v37 = vadd.f32 %v1660_v57, %v1572_v39 }
 0x1ce   : > { %v1395_v44 = vpop.f32.mrf.mxu2 }
 0x1cf   : > { %v1484_v14 = vpop.f32.mrf.mxu3  ;;  %v1396_v59 = vadd.f32 %v1395_v44, %v6356_v8  ;;  %v9192_v44 = vld [vmem:[#allocation38_spill] sm:$0xff] }
 0x1d0   : > { %v1576_v23 = vpop.f32.mrf.mxu0 }
 0x1d1   : > { %v1485_v60 = vadd.f32 %v1484_v14, %v1396_v59 }
 0x1d2   : > { %v1665_v11 = vpop.f32.mrf.mxu1 }
 0x1d3   : > { %1713 = vmatmul.bf16.gmra.mxu2 %v6115_v52  ;;  %v6693_v22 = vadd.f32 %v1573_v1, %v1485_v60  ;;  %1891 = vmatmul.bf16.gmra.mxu0 %v6386_v19 }
 0x1d4   : > { %1802 = vmatmul.bf16.gmra.mxu3 %v9189_v45 }
 0x1d6   : > { %v1398_v40 = vpop.f32.mrf.mxu2 }
 0x1d7   : > { %v1487_v54 = vpop.f32.mrf.mxu3  ;;  %v1399_v27 = vadd.f32 %v1398_v40, %v9190_v49 }
 0x1d8   : > { %v1578_v29 = vpop.f32.mrf.mxu0 }
 0x1d9   : > { %v1488_v28 = vadd.f32 %v1487_v54, %v1399_v27 }
 0x1db   : > { %v1577_v8 = vadd.f32 %v1576_v23, %v1488_v28 }
 0x1dd   : > { %v6697_v57 = vadd.f32 %v1665_v11, %v1577_v8 }
 0x1de   : > { %v1400_v55 = vpop.f32.mrf.mxu2 }
 0x1df   : > { %v1489_v20 = vpop.f32.mrf.mxu3  ;;  %v1401_v52 = vadd.f32 %v1400_v55, %v9191_v42 }
 0x1e0   : > { %v1581_v21 = vpop.f32.mrf.mxu0 }
 0x1e1   : > { %v1490_v51 = vadd.f32 %v1489_v20, %v1401_v52  ;;  %v9195_v52 = vld [vmem:[#allocation40_spill] sm:$0xff] }
 0x1e3   : > { %1718 = vmatmul.bf16.gmra.mxu2 %v6171_v50  ;;  %v6702_v19 = vadd.f32 %v1578_v29, %v1490_v51  ;;  %1896 = vmatmul.bf16.gmra.mxu0 %v6405_v15  ;;  %v9194_v29 = vld [vmem:[#allocation39_spill] sm:$0xff] }
 0x1e4   : > { %1807 = vmatmul.bf16.gmra.mxu3 %v6173_v18  ;;  %v9193_v18 = vld [vmem:[#allocation31_spill] sm:$0xff] }
 0x1e6   : > { %v1403_v1 = vpop.f32.mrf.mxu2 }
 0x1e7   : > { %v1492_v39 = vpop.f32.mrf.mxu3  ;;  %v1404_v14 = vadd.f32 %v1403_v1, %v9192_v44  ;;  %v9196_v44 = vld [vmem:[#allocation41_spill] sm:$0xff] }
 0x1e8   : > { %v1583_v60 = vpop.f32.mrf.mxu0 }
 0x1e9   : > { %v1493_v59 = vadd.f32 %v1492_v39, %v1404_v14 }
 0x1eb   : > { %v6706_v23 = vadd.f32 %v1581_v21, %v1493_v59 }
 0x1ee   : > { %v1405_v45 = vpop.f32.mrf.mxu2 }
 0x1ef   : > { %v1494_v40 = vpop.f32.mrf.mxu3  ;;  %v1406_v54 = vadd.f32 %v1405_v45, %v6403_v63 }
 0x1f0   : > { %v1586_v50 = vpop.f32.mrf.mxu0 }
 0x1f1   : > { %v1495_v49 = vadd.f32 %v1494_v40, %v1406_v54 }
 0x1f3   : > { %1723 = vmatmul.bf16.gmra.mxu2 %v6239_v17  ;;  %v6711_v27 = vadd.f32 %v1583_v60, %v1495_v49  ;;  %1901 = vmatmul.bf16.gmra.mxu0 %v6433_v56 }
 0x1f4   : > { %1812 = vmatmul.bf16.gmra.mxu3 %v9193_v18 }
 0x1f6   : > { %v1408_v15 = vpop.f32.mrf.mxu2 }
 0x1f7   : > { %v1497_v28 = vpop.f32.mrf.mxu3  ;;  %v1409_v11 = vadd.f32 %v1408_v15, %v9194_v29  ;;  %v9199_v15 = vld [vmem:[#allocation42_spill] sm:$0xff] }
 0x1f8   : > { %v1588_v55 = vpop.f32.mrf.mxu0 }
 0x1f9   : > { %v1498_v8 = vadd.f32 %v1497_v28, %v1409_v11 }
 0x1fb   : > { %v6715_v20 = vadd.f32 %v1586_v50, %v1498_v8 }
 0x1fe   : > { %v1410_v42 = vpop.f32.mrf.mxu2 }
 0x1ff   : > { %v1499_v63 = vpop.f32.mrf.mxu3  ;;  %v1411_v51 = vadd.f32 %v1410_v42, %v9195_v52  ;;  %v9201_v42 = vld [vmem:[#allocation43_spill] sm:$0xff] }
 0x200   : > { %v1591_v17 = vpop.f32.mrf.mxu0 }
 0x201   : > { %v1500_v21 = vadd.f32 %v1499_v63, %v1411_v51  ;;  %v9202_v51 = vld [vmem:[#allocation5_spill] sm:$0xff] }
 0x203   : > { %1728 = vmatmul.bf16.gmra.mxu2 %v6303_v26  ;;  %v6720_v1 = vadd.f32 %v1588_v55, %v1500_v21  ;;  %1906 = vmatmul.bf16.gmra.mxu0 %v6452_v33 }
 0x204   : > { %1817 = vmatmul.bf16.gmra.mxu3 %v6305_v6 }
 0x206   : > { %v1413_v56 = vpop.f32.mrf.mxu2 }
 0x207   : > { %v1502_v39 = vpop.f32.mrf.mxu3  ;;  %v1414_v14 = vadd.f32 %v1413_v56, %v9196_v44  ;;  %v9205_v56 = vld [vmem:[#allocation44_spill] sm:$0xff] }
 0x208   : > { %v1593_v60 = vpop.f32.mrf.mxu0 }
 0x209   : > { %v1503_v59 = vadd.f32 %v1502_v39, %v1414_v14 }
 0x20b   : > { %v6724_v45 = vadd.f32 %v1591_v17, %v1503_v59 }
 0x20d   : > { %9197 = vst [vmem:[#allocation26_spill] sm:$0xff] %v6724_v45 }
 0x20e   : > { %v1415_v40 = vpop.f32.mrf.mxu2 }
 0x20f   : > { %v1504_v54 = vpop.f32.mrf.mxu3  ;;  %v1416_v49 = vadd.f32 %v1415_v40, %v6450_v32 }
 0x210   : > { %v1596_v26 = vpop.f32.mrf.mxu0 }
 0x211   : > { %v1505_v50 = vadd.f32 %v1504_v54, %v1416_v49  ;;  %v9207_v54 = vld [vmem:[#allocation45_spill] sm:$0xff] }
 0x213   : > { %1733 = vmatmul.bf16.gmra.mxu2 %v5891_v34  ;;  %v6729_v6 = vadd.f32 %v1593_v60, %v1505_v50  ;;  %1911 = vmatmul.bf16.gmra.mxu0 %v6480_v12 }
 0x214   : > { %1822 = vmatmul.bf16.gmra.mxu3 %v5893_v35  ;;  %v9203_v35 = vld [vmem:[#allocation6_spill] sm:$0xff] }
 0x215   : > { %9198 = vst [vmem:[#allocation27_spill] sm:$0xff] %v6729_v6 }
 0x216   : > { %v1418_v33 = vpop.f32.mrf.mxu2 }
 0x217   : > { %v1507_v18 = vpop.f32.mrf.mxu3  ;;  %v1419_v28 = vadd.f32 %v1418_v33, %v9199_v15  ;;  %v9208_v33 = vld [vmem:[#allocation8_spill] sm:$0xff] }
 0x218   : > { %v1598_v11 = vpop.f32.mrf.mxu0 }
 0x219   : > { %v1508_v29 = vadd.f32 %v1507_v18, %v1419_v28  ;;  %v9209_v18 = vld [vmem:[#allocation9_spill] sm:$0xff] }
 0x21b   : > { %v6733_v8 = vadd.f32 %v1596_v26, %v1508_v29  ;;  %v9211_v29 = vld [vmem:[#allocation7_spill] sm:$0xff] }
 0x21d   : > { %9200 = vst [vmem:[#allocation28_spill] sm:$0xff] %v6733_v8 }
 0x21e   : > { %v1420_v55 = vpop.f32.mrf.mxu2 }
 0x21f   : > { %v1509_v32 = vpop.f32.mrf.mxu3  ;;  %v1421_v63 = vadd.f32 %v1420_v55, %v9201_v42 }
 0x220   : > { %v1601_v34 = vpop.f32.mrf.mxu0 }
 0x221   : > { %v1510_v52 = vadd.f32 %v1509_v32, %v1421_v63 }
 0x223   : > { %1738 = vmatmul.bf16.gmra.mxu2 %v9202_v51  ;;  %v6738_v21 = vadd.f32 %v1598_v11, %v1510_v52  ;;  %1916 = vmatmul.bf16.gmra.mxu0 %v6499_v47 }
 0x224   : > { %1827 = vmatmul.bf16.gmra.mxu3 %v9203_v35 }
 0x225   : > { %9204 = vst [vmem:[#allocation29_spill] sm:$0xff] %v6738_v21 }
 0x226   : > { %v1423_v12 = vpop.f32.mrf.mxu2 }
 0x227   : > { %v1512_v17 = vpop.f32.mrf.mxu3  ;;  %v1424_v39 = vadd.f32 %v1423_v12, %v9205_v56 }
 0x228   : > { %v1603_v14 = vpop.f32.mrf.mxu0 }
 0x229   : > { %v1513_v44 = vadd.f32 %v1512_v17, %v1424_v39  ;;  %v9215_v39 = vld [vmem:[#allocation10_spill] sm:$0xff] }
 0x22b   : > { %v6742_v59 = vadd.f32 %v1601_v34, %v1513_v44  ;;  %v9213_v34 = vld [vmem:[#allocation46_spill] sm:$0xff] }
 0x22d   : > { %9206 = vst [vmem:[#allocation30_spill] sm:$0xff] %v6742_v59 }
 0x22e   : > { %v1425_v60 = vpop.f32.mrf.mxu2 }
 0x22f   : > { %v1514_v40 = vpop.f32.mrf.mxu3  ;;  %v1426_v49 = vadd.f32 %v1425_v60, %v9207_v54 }
 0x230   : > { %v1882_v26 = vpop.f32.mrf.mxu0 }
 0x231   : > { %v1515_v50 = vadd.f32 %v1514_v40, %v1426_v49 }
 0x233   : > { %1743 = vmatmul.bf16.gmra.mxu2 %v9208_v33  ;;  %v6747_v15 = vadd.f32 %v1603_v14, %v1515_v50  ;;  %1921 = vmatmul.bf16.gmra.mxu0 %v6523_v4  ;;  %v9216_v50 = vld [vmem:[#allocation11_spill] sm:$0xff] }
 0x234   : > { %1832 = vmatmul.bf16.gmra.mxu3 %v9209_v18 }
 0x235   : > { %9210 = vst [vmem:[#allocation32_spill] sm:$0xff] %v6747_v15 }
 0x236   : > { %v1704_v47 = vpop.f32.mrf.mxu2 }
 0x237   : > { %v1793_v28 = vpop.f32.mrf.mxu3  ;;  %v1705_v11 = vadd.f32 %v1704_v47, %v9211_v29  ;;  %v9220_v29 = vld [vmem:[#allocation12_spill] sm:$0xff] }
 0x238   : > { %v1884_v32 = vpop.f32.mrf.mxu0 }
 0x239   : > { %v1794_v55 = vadd.f32 %v1793_v28, %v1705_v11 }
 0x23b   : > { %v6751_v42 = vadd.f32 %v1882_v26, %v1794_v55 }
 0x23d   : > { %9212 = vst [vmem:[#allocation35_spill] sm:$0xff] %v6751_v42 }
 0x23e   : > { %v1706_v63 = vpop.f32.mrf.mxu2 }
 0x23f   : > { %v1795_v52 = vpop.f32.mrf.mxu3  ;;  %v1707_v51 = vadd.f32 %v1706_v63, %v9213_v34 }
 0x240   : > { %v1887_v12 = vpop.f32.mrf.mxu0 }
 0x241   : > { %v1796_v35 = vadd.f32 %v1795_v52, %v1707_v51  ;;  %v9221_v51 = vld [vmem:[#allocation13_spill] sm:$0xff] }
 0x243   : > { %v6754_v17 = vadd.f32 %v1884_v32, %v1796_v35  ;;  %1748 = vmatmul.bf16.gmra.mxu2 %v9158_v43  ;;  %1926 = vmatmul.bf16.gmra.mxu0 %v6540_v31  ;;  %v9218_v43 = vld [vmem:[#allocation18_spill] sm:$0xff] }
 0x244   : > { %1837 = vmatmul.bf16.gmra.mxu3 %v9159_v36  ;;  %v9219_v36 = vld [vmem:[#allocation19_spill] sm:$0xff] }
 0x245   : > { %9214 = vst [vmem:[#allocation20_spill] sm:$0xff] %v6754_v17 }
 0x246   : > { %v1709_v4 = vpop.f32.mrf.mxu2 }
 0x247   : > { %v1798_v56 = vpop.f32.mrf.mxu3  ;;  %v1710_v44 = vadd.f32 %v1709_v4, %v9215_v39 }
 0x248   : > { %v1889_v60 = vpop.f32.mrf.mxu0 }
 0x249   : > { %v1799_v14 = vadd.f32 %v1798_v56, %v1710_v44  ;;  %v9222_v44 = vld [vmem:[#allocation14_spill] sm:$0xff] }
 0x24b   : > { %v6760_v40 = vadd.f32 %v1887_v12, %v1799_v14 }
 0x24e   : > { %v1711_v54 = vpop.f32.mrf.mxu2 }
 0x24f   : > { %v1800_v49 = vpop.f32.mrf.mxu3  ;;  %v1712_v26 = vadd.f32 %v1711_v54, %v9216_v50 }
 0x250   : > { %v1892_v18 = vpop.f32.mrf.mxu0 }
 0x251   : > { %v1801_v33 = vadd.f32 %v1800_v49, %v1712_v26 }
 0x253   : > { %v6763_v47 = vadd.f32 %v1889_v60, %v1801_v33  ;;  %1753 = vmatmul.bf16.gmra.mxu2 %v9218_v43  ;;  %1931 = vmatmul.bf16.gmra.mxu0 %v6566_v61  ;;  %v9223_v33 = vld [vmem:[#allocation15_spill] sm:$0xff] }
 0x254   : > { %1842 = vmatmul.bf16.gmra.mxu3 %v9219_v36 }
 0x255   : > { %9217 = vst [vmem:[#allocation36_spill] sm:$0xff] %v6763_v47 }
 0x256   : > { %v1714_v31 = vpop.f32.mrf.mxu2 }
 0x257   : > { %v1803_v28 = vpop.f32.mrf.mxu3  ;;  %v1715_v11 = vadd.f32 %v1714_v31, %v9220_v29 }
 0x258   : > { %v1894_v32 = vpop.f32.mrf.mxu0 }
 0x259   : > { %v1804_v55 = vadd.f32 %v1803_v28, %v1715_v11 }
 0x25b   : > { %v6769_v63 = vadd.f32 %v1892_v18, %v1804_v55 }
 0x25e   : > { %v1716_v52 = vpop.f32.mrf.mxu2 }
 0x25f   : > { %v1805_v34 = vpop.f32.mrf.mxu3  ;;  %v1717_v35 = vadd.f32 %v1716_v52, %v9221_v51  ;;  %v9225_v51 = vld [vmem:[#allocation33_spill] sm:$0xff] }
 0x260   : > { %v1897_v4 = vpop.f32.mrf.mxu0 }
 0x261   : > { %v1806_v12 = vadd.f32 %v1805_v34, %v1717_v35  ;;  %v9227_v35 = vld [vmem:[#allocation23_spill] sm:$0xff] }
 0x263   : > { %v6772_v56 = vadd.f32 %v1894_v32, %v1806_v12  ;;  %1758 = vmatmul.bf16.gmra.mxu2 %v9172_v16  ;;  %1936 = vmatmul.bf16.gmra.mxu0 %v6583_v13 }
 0x264   : > { %1847 = vmatmul.bf16.gmra.mxu3 %v9173_v0  ;;  %v9224_v0 = vld [vmem:[#allocation17_spill] sm:$0xff] }
 0x266   : > { %v1719_v61 = vpop.f32.mrf.mxu2 }
 0x267   : > { %v1808_v39 = vpop.f32.mrf.mxu3  ;;  %v1720_v14 = vadd.f32 %v1719_v61, %v9222_v44 }
 0x268   : > { %v1899_v54 = vpop.f32.mrf.mxu0 }
 0x269   : > { %v1809_v60 = vadd.f32 %v1808_v39, %v1720_v14 }
 0x26b   : > { %v6778_v49 = vadd.f32 %v1897_v4, %v1809_v60 }
 0x26e   : > { %v1721_v50 = vpop.f32.mrf.mxu2 }
 0x26f   : > { %v1810_v26 = vpop.f32.mrf.mxu3  ;;  %v1722_v18 = vadd.f32 %v1721_v50, %v9223_v33  ;;  %v222_v50 = vld [vmem:[%s5835_s30 + $0x1a8] sm:$0x3] }
 0x270   : > { %v1902_v36 = vpop.f32.mrf.mxu0 }
 0x271   : > { %v1811_v43 = vadd.f32 %v1810_v26, %v1722_v18 }
 0x273   : > { %v6781_v31 = vadd.f32 %v1899_v54, %v1811_v43  ;;  %1763 = vmatmul.bf16.gmra.mxu2 %v9180_v3  ;;  %1941 = vmatmul.bf16.gmra.mxu0 %v6611_v5  ;;  %v9226_v3 = vld [vmem:[#allocation34_spill] sm:$0xff]  ;;  %v221_v54 = vld [vmem:[%s5835_s30 + $0x1a0] sm:$0xff] }
 0x274   : > { %1852 = vmatmul.bf16.gmra.mxu3 %v9182_v48 }
 0x276   : > { %v1724_v13 = vpop.f32.mrf.mxu2 }
 0x277   : > { %v1813_v16 = vpop.f32.mrf.mxu3  ;;  %v1725_v28 = vadd.f32 %v1724_v13, %v9224_v0  ;;  %v664_v13 = vrot.slane %v222_v50, 1 }
 0x278   : > { %v6787_v11 = vpop.f32.mrf.mxu0 }
 0x279   : > { %v1814_v29 = vadd.f32 %v1813_v16, %v1725_v28 }
 0x27b   : > { %v6789_v55 = vadd.f32 %v1902_v36, %v1814_v29  ;;  %v662_v36 = vrot.slane %v221_v54, 1  ;;  %v669_v29 = vrot.slane %v221_v54, 2 }
 0x27e   : > { %v6791_v32 = vpop.f32.mrf.mxu2 }
 0x27f   : > { %v6793_v52 = vpop.f32.mrf.mxu3 }
 0x280   : > { %v1907_v34 = vpop.f32.mrf.mxu0 }
 0x283   : > { %1768 = vmatmul.bf16.gmra.mxu2 %v9225_v51  ;;  %1946 = vmatmul.bf16.gmra.mxu0 %v6630_v2  ;;  %v220_v2 = vld [vmem:[%s5835_s30 + $0x198] sm:$0xff] }
 0x284   : > { %1857 = vmatmul.bf16.gmra.mxu3 %v9226_v3  ;;  %v661_v43 = vrot.slane %v220_v2, 1  ;;  %v668_v28 = vrot.slane %v220_v2, 2 }
 0x286   : > { %v1729_v5 = vpop.f32.mrf.mxu2  ;;  %v670_v51 = vsel %vm528_vm1, %v668_v28, %v669_v29 }
 0x287   : > { %v1818_v48 = vpop.f32.mrf.mxu3  ;;  %v1730_v12 = vadd.f32 %v1729_v5, %v9227_v35  ;;  %v726_v35 = vpack.c.bf16 %v221_v54, %v220_v2 }
 0x288   : > { %v6799_v61 = vpop.f32.mrf.mxu0 }
 0x289   : > { %v1819_v4 = vadd.f32 %v1818_v48, %v1730_v12 }
 0x28b   : > { %v6801_v39 = vadd.f32 %v1907_v34, %v1819_v4 }
 0x28e   : > { %v6803_v44 = vpop.f32.mrf.mxu2 }
 0x28f   : > { %v6805_v14 = vpop.f32.mrf.mxu3 }
 0x290   : > { %v1912_v60 = vpop.f32.mrf.mxu0 }
 0x293   : > { %1773 = vmatmul.bf16.gmra.mxu2 %v6651_v38  ;;  %1951 = vmatmul.bf16.gmra.mxu0 %v6655_v58  ;;  %v671_v38 = vrot.slane %v222_v50, 2  ;;  %v665_v58 = vsel %vm415_vm0, %v662_v36, %v664_v13 }
 0x294   : > { %1862 = vmatmul.bf16.gmra.mxu3 %v6653_v41  ;;  %v663_v41 = vsel %vm415_vm0, %v661_v43, %v662_v36 }
 0x295   : > { %v672_v3 = vsel %vm528_vm1, %v669_v29, %v671_v38  ;;  %v727_v12 = vpack.c.bf16 %v665_v58, %v663_v41 }
 0x296   : > { %v1734_v26 = vpop.f32.mrf.mxu2  ;;  %v728_v4 = vpack.c.bf16 %v672_v3, %v670_v51 }
 0x297   : > { %v1823_v33 = vpop.f32.mrf.mxu3  ;;  %v1735_v18 = vadd.f32 %v1734_v26, %v6645_v9  ;;  %v5486_v9 = vld [vmem:[%s9019_s2 + $0x38] sm:$0xff] }
 0x298   : > { %v6814_v0 = vpop.f32.mrf.mxu0  ;;  %3533 = vmatpush.bf16.msra.mxu1 %v5486_v9 }
 0x299   : > { %v1824_v16 = vadd.f32 %v1823_v33, %v1735_v18 }
 0x29b   : > { %v6816_v34 = vadd.f32 %v1912_v60, %v1824_v16 }
 0x29e   : > { %v6825_v5 = vpop.f32.mrf.mxu2 }
 0x29f   : > { %v6827_v48 = vpop.f32.mrf.mxu3 }
 0x2a0   : > { %v1917_v60 = vpop.f32.mrf.mxu0 }
 0x2a3   : > { %1778 = vmatmul.bf16.gmra.mxu2 %v726_v35  ;;  %1956 = vmatmul.bf16.gmra.mxu0 %v728_v4  ;;  %v6848_v35 = vpop.f32.mrf.mxu1 }
 0x2a4   : > { %1867 = vmatmul.bf16.gmra.mxu3 %v727_v12 }
 0x2a6   : > { %v1739_v50 = vpop.f32.mrf.mxu2 }
 0x2a7   : > { %v1828_v26 = vpop.f32.mrf.mxu3  ;;  %v1740_v33 = vadd.f32 %v1739_v50, %v6666_v46  ;;  %v5485_v46 = vld [vmem:[%s9019_s2 + $0x30] sm:$0xff] }
 0x2a8   : > { %v6830_v43 = vpop.f32.mrf.mxu0  ;;  %3534 = vmatpush.bf16.msra.mxu1 %v5485_v46 }
 0x2a9   : > { %v1829_v18 = vadd.f32 %v1828_v26, %v1740_v33 }
 0x2ab   : > { %v6832_v36 = vadd.f32 %v1917_v60, %v1829_v18 }
 0x2ae   : > { %v6834_v13 = vpop.f32.mrf.mxu2 }
 0x2af   : > { %v6836_v16 = vpop.f32.mrf.mxu3 }
 0x2b0   : > { %v1922_v2 = vpop.f32.mrf.mxu0 }
 0x2b6   : > { %v1744_v54 = vpop.f32.mrf.mxu2 }
 0x2b7   : > { %v1833_v28 = vpop.f32.mrf.mxu3  ;;  %v1745_v29 = vadd.f32 %v1744_v54, %v6677_v30 }
 0x2b8   : > { %v6839_v41 = vpop.f32.mrf.mxu0 }
 0x2b9   : > { %v1834_v38 = vadd.f32 %v1833_v28, %v1745_v29 }
 0x2bb   : > { %v6841_v58 = vadd.f32 %v1922_v2, %v1834_v38  ;;  %v1670_v2 = vpop.f32.mrf.mxu1 }
 0x2be   : > { %v1746_v51 = vpop.f32.mrf.mxu2 }
 0x2bf   : > { %v6846_v3 = vpop.f32.mrf.mxu3 }
 0x2c0   : > { %v1927_v9 = vpop.f32.mrf.mxu0 }
 0x2c3   : > { %v6858_v46 = vpop.f32.mrf.mxu1 }
 0x2c6   : > { %v1749_v12 = vpop.f32.mrf.mxu2 }
 0x2c7   : > { %v1838_v4 = vpop.f32.mrf.mxu3  ;;  %v1750_v30 = vadd.f32 %v1749_v12, %v6686_v37 }
 0x2c8   : > { %v6851_v50 = vpop.f32.mrf.mxu0 }
 0x2c9   : > { %v1839_v60 = vadd.f32 %v1838_v4, %v1750_v30  ;;  %v1962_v30 = vadd.f32 %v6754_v17, %v6751_v42 }
 0x2cb   : > { %v6853_v26 = vadd.f32 %v1927_v9, %v1839_v60  ;;  %v5484_v9 = vld [vmem:[%s9019_s2 + $0x28] sm:$0xff] }
 0x2cc   : > { %3535 = vmatpush.bf16.msra.mxu1 %v5484_v9 }
 0x2ce   : > { %v1751_v33 = vpop.f32.mrf.mxu2 }
 0x2cf   : > { %v6855_v18 = vpop.f32.mrf.mxu3 }
 0x2d0   : > { %v1932_v54 = vpop.f32.mrf.mxu0 }
 0x2d6   : > { %v1754_v28 = vpop.f32.mrf.mxu2 }
 0x2d7   : > { %v1843_v29 = vpop.f32.mrf.mxu3  ;;  %v1755_v38 = vadd.f32 %v1754_v28, %v6697_v57  ;;  %v9230_v57 = vld [vmem:[#allocation21_spill] sm:$0xff]  ;;  %v9231_v28 = vld [vmem:[#allocation16_spill] sm:$0xff] }
 0x2d8   : > { %v6860_v59 = vpop.f32.mrf.mxu0 }
 0x2d9   : > { %v1844_v15 = vadd.f32 %v1843_v29, %v1755_v38  ;;  %9228 = vst [vmem:[#allocation37_spill] sm:$0xff] %v6860_v59  ;;  %v1638_v29 = vadd.f32 %v9231_v28, %v9230_v57  ;;  %v1675_v38 = vpop.f32.mrf.mxu1  ;;  %v9233_v59 = vld [vmem:[#allocation22_spill] sm:$0xff] }
 0x2db   : > { %v6862_v37 = vadd.f32 %v1932_v54, %v1844_v15  ;;  %v1963_v15 = vadd.f32 %v1962_v30, %v6760_v40  ;;  %v1727_v21 = vadd.f32 %v6791_v32, %v1638_v29  ;;  %v9234_v30 = vld [vmem:[#allocation25_spill] sm:$0xff] }
 0x2dd   : > { %9229 = vst [vmem:[#allocation38_spill] sm:$0xff] %v6862_v37  ;;  %v1964_v54 = vadd.f32 %v1963_v15, %v6763_v47  ;;  %v9232_v37 = vld [vmem:[#allocation24_spill] sm:$0xff]  ;;  %v1816_v42 = vadd.f32 %v6793_v52, %v1727_v21  ;;  %v1648_v15 = vadd.f32 %v9234_v30, %v6659_v62 }
 0x2de   : > { %v1756_v12 = vpop.f32.mrf.mxu2  ;;  %v1643_v9 = vadd.f32 %v9233_v59, %v9232_v37 }
 0x2df   : > { %v6867_v4 = vpop.f32.mrf.mxu3  ;;  %v1965_v45 = vadd.f32 %v1964_v54, %v6769_v63  ;;  %v6891_v59 = vadd.f32 %v6787_v11, %v1816_v42 }
 0x2e0   : > { %v6871_v60 = vpop.f32.mrf.mxu0  ;;  %v1732_v57 = vadd.f32 %v6803_v44, %v1643_v9  ;;  %v1653_v44 = vadd.f32 %v6664_v25, %v6671_v10 }
 0x2e1   : > { %v1966_v17 = vadd.f32 %v1965_v45, %v6772_v56  ;;  %v1677_v29 = vpop.f32.mrf.mxu1  ;;  %v1737_v45 = vadd.f32 %v6825_v5, %v1648_v15 }
 0x2e2   : > { %v1821_v37 = vadd.f32 %v6805_v14, %v1732_v57  ;;  %v1742_v42 = vadd.f32 %v6834_v13, %v1653_v44  ;;  %v1658_v14 = vadd.f32 %v6675_v24, %v6682_v7 }
 0x2e3   : > { %v1967_v32 = vadd.f32 %v1966_v17, %v6778_v49  ;;  %v1826_v9 = vadd.f32 %v6827_v48, %v1737_v45  ;;  %v1663_v48 = vadd.f32 %v6689_v53, %v6693_v22  ;;  %v1671_v45 = vadd.f32 %v1670_v2, %v6706_v23 }
 0x2e4   : > { %v6900_v17 = vadd.f32 %v6799_v61, %v1821_v37  ;;  %v1831_v10 = vadd.f32 %v6836_v16, %v1742_v42  ;;  %v1668_v16 = vadd.f32 %v6848_v35, %v6702_v19  ;;  %v1673_v19 = vadd.f32 %v6858_v46, %v6711_v27 }
 0x2e5   : > { %v1968_v47 = vadd.f32 %v1967_v32, %v6781_v31  ;;  %v6909_v25 = vadd.f32 %v6814_v0, %v1826_v9  ;;  %v1752_v0 = vadd.f32 %v1751_v33, %v1663_v48  ;;  %v1676_v2 = vadd.f32 %v1675_v38, %v6715_v20  ;;  %v9236_v38 = vld [vmem:[#allocation37_spill] sm:$0xff] }
 0x2e6   : > { %v1759_v8 = vpop.f32.mrf.mxu2  ;;  %v6917_v7 = vadd.f32 %v6830_v43, %v1831_v10  ;;  %v1757_v43 = vadd.f32 %v1756_v12, %v1668_v16 }
 0x2e7   : > { %v1848_v6 = vpop.f32.mrf.mxu3  ;;  %v1969_v54 = vadd.f32 %v1968_v47, %v6789_v55  ;;  %v1747_v47 = vadd.f32 %v1746_v51, %v1658_v14  ;;  %v1841_v44 = vadd.f32 %v6855_v18, %v1752_v0  ;;  %v1760_v23 = vadd.f32 %v1759_v8, %v1671_v45  ;;  %v9235_v8 = vld [vmem:[#allocation26_spill] sm:$0xff]  ;;  %v9238_v45 = vld [vmem:[#allocation27_spill] sm:$0xff] }
 0x2e8   : > { %v6884_v28 = vpop.f32.mrf.mxu0  ;;  %v1846_v12 = vadd.f32 %v6867_v4, %v1757_v43  ;;  %v1678_v14 = vadd.f32 %v1677_v29, %v6720_v1  ;;  %v9237_v4 = vld [vmem:[#allocation38_spill] sm:$0xff] }
 0x2e9   : > { %v1970_v62 = vadd.f32 %v1969_v54, %v6891_v59  ;;  %v1680_v13 = vpop.f32.mrf.mxu1  ;;  %v1836_v32 = vadd.f32 %v6846_v3, %v1747_v47  ;;  %v5483_v3 = vld [vmem:[%s9019_s2 + $0x20] sm:$0xff]  ;;  %v6938_v18 = vadd.f32 %v6851_v50, %v1841_v44  ;;  %v1849_v46 = vadd.f32 %v1848_v6, %v1760_v23 }
 0x2ea   : > { %3536 = vmatpush.bf16.msra.mxu1 %v5483_v3  ;;  %v6946_v10 = vadd.f32 %v9236_v38, %v1846_v12 }
 0x2eb   : > { %v1971_v5 = vadd.f32 %v1970_v62, %v6801_v39  ;;  %v6926_v22 = vadd.f32 %v6839_v41, %v1836_v32 }
 0x2ed   : > { %v1972_v57 = vadd.f32 %v1971_v5, %v6900_v17 }
 0x2ee   : > { %v1761_v21 = vpop.f32.mrf.mxu2 }
 0x2ef   : > { %v1850_v52 = vpop.f32.mrf.mxu3  ;;  %v1973_v15 = vadd.f32 %v1972_v57, %v6816_v34  ;;  %v1762_v9 = vadd.f32 %v1761_v21, %v1673_v19  ;;  %v1681_v57 = vadd.f32 %v1680_v13, %v9235_v8 }
 0x2f0   : > { %v1942_v11 = vpop.f32.mrf.mxu0 }
 0x2f1   : > { %v1974_v24 = vadd.f32 %v1973_v15, %v6909_v25  ;;  %v1682_v41 = vpop.f32.mrf.mxu1  ;;  %v1851_v47 = vadd.f32 %v1850_v52, %v1762_v9 }
 0x2f3   : > { %v1975_v51 = vadd.f32 %v1974_v24, %v6832_v36  ;;  %v6950_v24 = vadd.f32 %v6871_v60, %v1849_v46 }
 0x2f5   : > { %v1976_v53 = vadd.f32 %v1975_v51, %v6917_v7 }
 0x2f6   : > { %v1764_v61 = vpop.f32.mrf.mxu2 }
 0x2f7   : > { %v1853_v30 = vpop.f32.mrf.mxu3  ;;  %v1977_v35 = vadd.f32 %v1976_v53, %v6841_v58  ;;  %v1765_v5 = vadd.f32 %v1764_v61, %v1676_v2  ;;  %v6954_v61 = vadd.f32 %v6884_v28, %v1851_v47  ;;  %v1683_v53 = vadd.f32 %v1682_v41, %v9238_v45  ;;  %v9239_v2 = vld [vmem:[#allocation28_spill] sm:$0xff] }
 0x2f8   : > { %v1944_v37 = vpop.f32.mrf.mxu0 }
 0x2f9   : > { %v1978_v62 = vadd.f32 %v1977_v35, %v6926_v22  ;;  %v1854_v1 = vadd.f32 %v1853_v30, %v1765_v5  ;;  %v1685_v0 = vpop.f32.mrf.mxu1  ;;  %v9240_v5 = vld [vmem:[#allocation29_spill] sm:$0xff] }
 0x2fb   : > { %v1979_v27 = vadd.f32 %v1978_v62, %v6853_v26  ;;  %v6957_v16 = vadd.f32 %v1942_v11, %v1854_v1  ;;  %v1686_v62 = vadd.f32 %v1685_v0, %v9239_v2 }
 0x2fd   : > { %v1980_v20 = vadd.f32 %v1979_v27, %v6938_v18 }
 0x2fe   : > { %v1766_v33 = vpop.f32.mrf.mxu2 }
 0x2ff   : > { %v1855_v54 = vpop.f32.mrf.mxu3  ;;  %v1767_v50 = vadd.f32 %v1766_v33, %v1678_v14  ;;  %v1981_v21 = vadd.f32 %v1980_v20, %v9237_v4 }
 0x300   : > { %v1947_v42 = vpop.f32.mrf.mxu0 }
 0x301   : > { %v1982_v6 = vadd.f32 %v1981_v21, %v6946_v10  ;;  %v1856_v13 = vadd.f32 %v1855_v54, %v1767_v50  ;;  %v1687_v12 = vpop.f32.mrf.mxu1  ;;  %v9241_v21 = vld [vmem:[#allocation30_spill] sm:$0xff] }
 0x302   : > { %v1688_v8 = vadd.f32 %v1687_v12, %v9240_v5 }
 0x303   : > { %v1983_v52 = vadd.f32 %v1982_v6, %v6950_v24  ;;  %v6961_v44 = vadd.f32 %v1944_v37, %v1856_v13 }
 0x305   : > { %v1984_v60 = vadd.f32 %v1983_v52, %v6954_v61 }
 0x306   : > { %v1769_v48 = vpop.f32.mrf.mxu2 }
 0x307   : > { %v1858_v15 = vpop.f32.mrf.mxu3  ;;  %v1770_v29 = vadd.f32 %v1769_v48, %v1681_v57  ;;  %v1985_v3 = vadd.f32 %v1984_v60, %v6957_v16  ;;  %v9242_v60 = vld [vmem:[#allocation32_spill] sm:$0xff] }
 0x308   : > { %v1949_v32 = vpop.f32.mrf.mxu0 }
 0x309   : > { %v1859_v51 = vadd.f32 %v1858_v15, %v1770_v29  ;;  %v1986_v54 = vadd.f32 %v1985_v3, %v6961_v44  ;;  %v1690_v50 = vpop.f32.mrf.mxu1 }
 0x30a   : > { %v1691_v1 = vadd.f32 %v1690_v50, %v9241_v21 }
 0x30b   : > { %v1948_v28 = vadd.f32 %v1947_v42, %v1859_v51 }
 0x30d   : > { %v1987_v35 = vadd.f32 %v1986_v54, %v1948_v28 }
 0x30e   : > { %v1771_v30 = vpop.f32.mrf.mxu2 }
 0x30f   : > { %v1860_v43 = vpop.f32.mrf.mxu3  ;;  %v1772_v33 = vadd.f32 %v1771_v30, %v1683_v53  ;;  %v5729_v53 = vmov 256.0  }
 0x310   : > { %v1952_v11 = vpop.f32.mrf.mxu0  ;;  %5611 = vrcp.f32 %v5729_v53 }
 0x311   : > { %v1861_v19 = vadd.f32 %v1860_v43, %v1772_v33  ;;  %v1692_v51 = vpop.f32.mrf.mxu1 }
 0x312   : > { %v1693_v30 = vadd.f32 %v1692_v51, %v9242_v60 }
 0x313   : > { %v1950_v23 = vadd.f32 %v1949_v32, %v1861_v19 }
 0x315   : > { %v1988_v41 = vadd.f32 %v1987_v35, %v1950_v23 }
 0x316   : > { %v1774_v9 = vpop.f32.mrf.mxu2  ;;  %v5612_v19 = vpop.eup %5611 }
 0x317   : > { %v1863_v14 = vpop.f32.mrf.mxu3  ;;  %v1775_v37 = vadd.f32 %v1774_v9, %v1686_v62  ;;  %v2000_v62 = vmul.f32 256.0, %v5612_v19  ;;  %vm2004_vm2 = vweird.f32 %v5612_v19 }
 0x318   : > { %v1954_v42 = vpop.f32.mrf.mxu0 }
 0x319   : > { %v1864_v27 = vadd.f32 %v1863_v14, %v1775_v37  ;;  %v2001_v9 = vsub.f32 1.0, %v2000_v62 }
 0x31b   : > { %v1953_v46 = vadd.f32 %v1952_v11, %v1864_v27  ;;  %v2002_v27 = vmul.f32 %v5612_v19, %v2001_v9 }
 0x31d   : > { %v1989_v57 = vadd.f32 %v1988_v41, %v1953_v46 }
 0x31e   : > { %v1776_v20 = vpop.f32.mrf.mxu2 }
 0x31f   : > { %v1865_v38 = vpop.f32.mrf.mxu3  ;;  %v1777_v47 = vadd.f32 %v1776_v20, %v1688_v8 }
 0x320   : > { %v1957_v0 = vpop.f32.mrf.mxu0 }
 0x321   : > { %v1866_v48 = vadd.f32 %v1865_v38, %v1777_v47 }
 0x323   : > { %v1955_v15 = vadd.f32 %v1954_v42, %v1866_v48 }
 0x325   : > { %v1990_v29 = vadd.f32 %v1989_v57, %v1955_v15  ;;  %v2003_v57 = vadd.f32 %v5612_v19, %v2002_v27 }
 0x326   : > { %v1779_v6 = vpop.f32.mrf.mxu2 }
 0x327   : > { %v1868_v13 = vpop.f32.mrf.mxu3  ;;  %v1780_v32 = vadd.f32 %v1779_v6, %v1691_v1  ;;  %v6969_v20 = vsel %vm2004_vm2, %v5612_v19, %v2003_v57  ;;  %v9244_v6 = vld [vmem:[#allocation35_spill] sm:$0xff] }
 0x328   : > { %v1959_v11 = vpop.f32.mrf.mxu0  ;;  %9243 = vst [vmem:[#allocation31_spill] sm:$0xff] %v6969_v20 }
 0x329   : > { %v1869_v52 = vadd.f32 %v1868_v13, %v1780_v32 }
 0x32b   : > { %v1958_v45 = vadd.f32 %v1957_v0, %v1869_v52  ;;  %v9246_v0 = vld [vmem:[#allocation36_spill] sm:$0xff] }
 0x32d   : > { %v1991_v43 = vadd.f32 %v1990_v29, %v1958_v45 }
 0x32e   : > { %v1781_v3 = vpop.f32.mrf.mxu2 }
 0x32f   : > { %v1782_v33 = vadd.f32 %v1781_v3, %v1693_v30  ;;  %v1870_v54 = vpop.f32.mrf.mxu3 }
 0x331   : > { %v1871_v35 = vadd.f32 %v1870_v54, %v1782_v33 }
 0x333   : > { %v1960_v2 = vadd.f32 %v1959_v11, %v1871_v35 }
 0x335   : > { %v1992_v12 = vadd.f32 %v1991_v43, %v1960_v2 }
 0x337   : > { %v1993_v41 = vrot.slane %v1992_v12, 4 }
 0x339   : > { %v1994_v14 = vadd.f32 %v1993_v41, %v1992_v12 }
 0x33b   : > { %v1995_v37 = vrot.slane %v1994_v14, 2 }
 0x33d   : > { %v1996_v5 = vadd.f32 %v1995_v37, %v1994_v14 }
 0x33f   : > { %v1997_v8 = vrot.slane %v1996_v5, 1 }
 0x341   : > { %v1998_v42 = vadd.f32 %v1997_v8, %v1996_v5 }
 0x343   : > { %v6972_v38 = vmul.f32 %v6969_v20, %v1998_v42 }
 0x345   : > { %v6975_v47 = vsub.f32 %v1948_v28, %v6972_v38  ;;  %v6978_v50 = vsub.f32 %v1950_v23, %v6972_v38  ;;  %v6981_v48 = vsub.f32 %v1953_v46, %v6972_v38  ;;  %v6984_v21 = vsub.f32 %v1955_v15, %v6972_v38  ;;  %v9245_v28 = vld [vmem:[#allocation20_spill] sm:$0xff] }
 0x346   : > { %v6987_v1 = vsub.f32 %v1958_v45, %v6972_v38  ;;  %v6990_v29 = vsub.f32 %v1960_v2, %v6972_v38  ;;  %v6994_v13 = vsub.f32 %v9244_v6, %v6972_v38  ;;  %v6998_v23 = vsub.f32 %v9245_v28, %v6972_v38 }
 0x347   : > { %v7002_v46 = vsub.f32 %v6760_v40, %v6972_v38  ;;  %v7010_v52 = vsub.f32 %v9246_v0, %v6972_v38  ;;  %v7014_v51 = vsub.f32 %v6769_v63, %v6972_v38  ;;  %v7020_v40 = vsub.f32 %v6772_v56, %v6972_v38 }
 0x348   : > { %v2039_v15 = vmul.f32 %v6994_v13, %v6994_v13  ;;  %v2040_v32 = vmul.f32 %v6998_v23, %v6998_v23  ;;  %v7026_v43 = vsub.f32 %v6778_v49, %v6972_v38  ;;  %v7032_v33 = vsub.f32 %v6781_v31, %v6972_v38 }
 0x349   : > { %v2041_v45 = vmul.f32 %v7002_v46, %v7002_v46  ;;  %v2042_v60 = vmul.f32 %v7010_v52, %v7010_v52  ;;  %v2043_v63 = vmul.f32 %v7014_v51, %v7014_v51  ;;  %v2044_v56 = vmul.f32 %v7020_v40, %v7020_v40 }
 0x34a   : > { %v2071_v53 = vadd.f32 %v2040_v32, %v2039_v15  ;;  %v7038_v19 = vsub.f32 %v6789_v55, %v6972_v38  ;;  %v2045_v49 = vmul.f32 %v7026_v43, %v7026_v43  ;;  %v7044_v11 = vsub.f32 %v6891_v59, %v6972_v38 }
 0x34b   : > { %v2046_v31 = vmul.f32 %v7032_v33, %v7032_v33  ;;  %v7050_v62 = vsub.f32 %v6801_v39, %v6972_v38  ;;  %v7056_v41 = vsub.f32 %v6900_v17, %v6972_v38  ;;  %v7062_v14 = vsub.f32 %v6816_v34, %v6972_v38 }
 0x34c   : > { %v2072_v30 = vadd.f32 %v2071_v53, %v2041_v45  ;;  %v2047_v55 = vmul.f32 %v7038_v19, %v7038_v19  ;;  %v2048_v59 = vmul.f32 %v7044_v11, %v7044_v11  ;;  %v7068_v27 = vsub.f32 %v6909_v25, %v6972_v38 }
 0x34d   : > { %v2049_v39 = vmul.f32 %v7050_v62, %v7050_v62  ;;  %v2050_v17 = vmul.f32 %v7056_v41, %v7056_v41  ;;  %v7074_v8 = vsub.f32 %v6832_v36, %v6972_v38  ;;  %v2051_v34 = vmul.f32 %v7062_v14, %v7062_v14 }
 0x34e   : > { %v2073_v3 = vadd.f32 %v2072_v30, %v2042_v60  ;;  %v7080_v42 = vsub.f32 %v6917_v7, %v6972_v38  ;;  %v2052_v25 = vmul.f32 %v7068_v27, %v7068_v27  ;;  %v7086_v28 = vsub.f32 %v6841_v58, %v6972_v38 }
 0x34f   : > { %v2053_v36 = vmul.f32 %v7074_v8, %v7074_v8  ;;  %v7092_v32 = vsub.f32 %v6926_v22, %v6972_v38  ;;  %v7098_v45 = vsub.f32 %v6853_v26, %v6972_v38  ;;  %v7104_v60 = vsub.f32 %v6938_v18, %v6972_v38 }
 0x350   : > { %v2074_v54 = vadd.f32 %v2073_v3, %v2043_v63  ;;  %v2054_v7 = vmul.f32 %v7080_v42, %v7080_v42  ;;  %v2055_v58 = vmul.f32 %v7086_v28, %v7086_v28  ;;  %v7110_v63 = vsub.f32 %v9237_v4, %v6972_v38 }
 0x351   : > { %v2056_v22 = vmul.f32 %v7092_v32, %v7092_v32  ;;  %v2057_v26 = vmul.f32 %v7098_v45, %v7098_v45  ;;  %v2058_v18 = vmul.f32 %v7104_v60, %v7104_v60 }
 0x352   : > { %v2075_v35 = vadd.f32 %v2074_v54, %v2044_v56  ;;  %v7116_v56 = vsub.f32 %v6946_v10, %v6972_v38  ;;  %v2059_v4 = vmul.f32 %v7110_v63, %v7110_v63 }
 0x354   : > { %v2076_v2 = vadd.f32 %v2075_v35, %v2045_v49  ;;  %v7122_v49 = vsub.f32 %v6950_v24, %v6972_v38  ;;  %v2060_v10 = vmul.f32 %v7116_v56, %v7116_v56 }
 0x356   : > { %v2077_v12 = vadd.f32 %v2076_v2, %v2046_v31  ;;  %v7128_v31 = vsub.f32 %v6954_v61, %v6972_v38  ;;  %v2061_v24 = vmul.f32 %v7122_v49, %v7122_v49 }
 0x358   : > { %v2078_v9 = vadd.f32 %v2077_v12, %v2047_v55  ;;  %v7134_v55 = vsub.f32 %v6957_v16, %v6972_v38  ;;  %v2062_v61 = vmul.f32 %v7128_v31, %v7128_v31 }
 0x35a   : > { %v2079_v37 = vadd.f32 %v2078_v9, %v2048_v59  ;;  %v7140_v59 = vsub.f32 %v6961_v44, %v6972_v38  ;;  %v2066_v44 = vmul.f32 %v6978_v50, %v6978_v50 }
 0x35c   : > { %v2080_v5 = vadd.f32 %v2079_v37, %v2049_v39  ;;  %v2063_v39 = vmul.f32 %v7134_v55, %v7134_v55  ;;  %v2064_v16 = vmul.f32 %v7140_v59, %v7140_v59 }
 0x35e   : > { %v2081_v57 = vadd.f32 %v2080_v5, %v2050_v17  ;;  %v2065_v5 = vmul.f32 %v6975_v47, %v6975_v47 }
 0x360   : > { %v2082_v6 = vadd.f32 %v2081_v57, %v2051_v34  ;;  %v2067_v57 = vmul.f32 %v6981_v48, %v6981_v48 }
 0x362   : > { %v2083_v15 = vadd.f32 %v2082_v6, %v2052_v25  ;;  %v2068_v6 = vmul.f32 %v6984_v21, %v6984_v21 }
 0x364   : > { %v2084_v0 = vadd.f32 %v2083_v15, %v2053_v36  ;;  %v2069_v15 = vmul.f32 %v6987_v1, %v6987_v1 }
 0x366   : > { %v2085_v53 = vadd.f32 %v2084_v0, %v2054_v7  ;;  %v2070_v0 = vmul.f32 %v6990_v29, %v6990_v29 }
 0x368   : > { %v2086_v30 = vadd.f32 %v2085_v53, %v2055_v58 }
 0x36a   : > { %v2087_v3 = vadd.f32 %v2086_v30, %v2056_v22 }
 0x36c   : > { %v2088_v54 = vadd.f32 %v2087_v3, %v2057_v26 }
 0x36e   : > { %v2089_v35 = vadd.f32 %v2088_v54, %v2058_v18 }
 0x370   : > { %v2090_v2 = vadd.f32 %v2089_v35, %v2059_v4 }
 0x372   : > { %v2091_v12 = vadd.f32 %v2090_v2, %v2060_v10 }
 0x374   : > { %v2092_v9 = vadd.f32 %v2091_v12, %v2061_v24 }
 0x376   : > { %v2093_v37 = vadd.f32 %v2092_v9, %v2062_v61 }
 0x378   : > { %v2094_v17 = vadd.f32 %v2093_v37, %v2063_v39 }
 0x37a   : > { %v2095_v34 = vadd.f32 %v2094_v17, %v2064_v16 }
 0x37c   : > { %v2096_v38 = vadd.f32 %v2095_v34, %v2065_v5  ;;  %v5510_v5 = vld [vmem:[%s9019_s2 + $0xf8] sm:$0xff] }
 0x37d   : > { %3800 = vmatpush.bf16.msrb.mxu0 %v5510_v5 }
 0x37e   : > { %v2097_v25 = vadd.f32 %v2096_v38, %v2066_v44  ;;  %v5502_v44 = vld [vmem:[%s9019_s2 + $0xb8] sm:$0xff] }
 0x37f   : > { %3711 = vmatpush.bf16.msrb.mxu3 %v5502_v44 }
 0x380   : > { %v2098_v36 = vadd.f32 %v2097_v25, %v2067_v57  ;;  %v5509_v57 = vld [vmem:[%s9019_s2 + $0xf0] sm:$0xff] }
 0x381   : > { %3801 = vmatpush.bf16.msrb.mxu0 %v5509_v57  ;;  %v5498_v57 = vld [vmem:[%s9019_s2 + $0x98] sm:$0xff] }
 0x382   : > { %v2099_v7 = vadd.f32 %v2098_v36, %v2068_v6 }
 0x384   : > { %v2100_v58 = vadd.f32 %v2099_v7, %v2069_v15  ;;  %v5494_v15 = vld [vmem:[%s9019_s2 + $0x78] sm:$0xff]  ;;  %v5501_v7 = vld [vmem:[%s9019_s2 + $0xb0] sm:$0xff] }
 0x385   : > { %3622 = vmatpush.bf16.msrb.mxu2 %v5494_v15  ;;  %3712 = vmatpush.bf16.msrb.mxu3 %v5501_v7  ;;  %v5505_v15 = vld [vmem:[%s9019_s2 + $0xd0] sm:$0xff] }
 0x386   : > { %v2101_v53 = vadd.f32 %v2100_v58, %v2070_v0 }
 0x388   : > { %v2102_v22 = vrot.slane %v2101_v53, 4 }
 0x38a   : > { %v2103_v30 = vadd.f32 %v2102_v22, %v2101_v53 }
 0x38c   : > { %v2104_v26 = vrot.slane %v2103_v30, 2 }
 0x38e   : > { %v2105_v3 = vadd.f32 %v2104_v26, %v2103_v30 }
 0x390   : > { %v2106_v18 = vrot.slane %v2105_v3, 1 }
 0x392   : > { %v2107_v54 = vadd.f32 %v2106_v18, %v2105_v3 }
 0x394   : > { %v2108_v4 = vmul.f32 %v2107_v54, %v6969_v20 }
 0x396   : > { %v2109_v35 = vadd.f32 1e-05, %v2108_v4 }
 0x398   : > { %5613 = vrsqrt.f32 %v2109_v35  ;;  %vm2116_vm4 = vweird.f32 %v2109_v35 }
 0x39e   : > { %v5614_v10 = vpop.eup %5613 }
 0x39f   : > { %v2111_v2 = vmul.f32 %v5614_v10, %v2109_v35  ;;  %vm2117_vm3 = vweird.f32 %v5614_v10 }
 0x3a0   : > { %vm2118_vm5 = vmor %vm2116_vm4, %vm2117_vm3 }
 0x3a1   : > { %v2112_v24 = vmul.f32 %v5614_v10, %v2111_v2 }
 0x3a3   : > { %v2113_v12 = vmul.f32 0.5, %v2112_v24 }
 0x3a5   : > { %v2114_v61 = vsub.f32 1.5, %v2113_v12 }
 0x3a7   : > { %v2115_v9 = vmul.f32 %v5614_v10, %v2114_v61 }
 0x3a9   : > { %v2119_v39 = vsel %vm2118_vm5, %v5614_v10, %v2115_v9  ;;  %v5506_v10 = vld [vmem:[%s9019_s2 + $0xd8] sm:$0xff] }
 0x3aa   : > { %v2151_v37 = vmul.f32 %v2119_v39, %v6990_v29  ;;  %v2150_v16 = vmul.f32 %v2119_v39, %v6987_v1  ;;  %v7173_v1 = vmul.f32 %v2119_v39, %v6994_v13  ;;  %v7176_v25 = vmul.f32 %v2119_v39, %v6998_v23 }
 0x3ab   : > { %v7179_v6 = vmul.f32 %v2119_v39, %v7002_v46  ;;  %v7182_v36 = vmul.f32 %v2119_v39, %v7010_v52  ;;  %v7191_v13 = vmul.f32 %v2119_v39, %v7014_v51  ;;  %v7194_v23 = vmul.f32 %v2119_v39, %v7020_v40  ;;  %v5508_v52 = vld [vmem:[%s9019_s2 + $0xe8] sm:$0xff] }
 0x3ac   : > { %v2183_v17 = vmax.f32 %v2151_v37, 0.0  ;;  %v2182_v34 = vmax.f32 %v2150_v16, 0.0  ;;  %v7197_v46 = vmul.f32 %v2119_v39, %v7026_v43  ;;  %v7203_v58 = vmul.f32 %v2119_v39, %v7032_v33  ;;  %3802 = vmatpush.bf16.msrb.mxu0 %v5508_v52 }
 0x3ad   : > { %v7206_v53 = vmul.f32 %v2119_v39, %v7038_v19  ;;  %v7209_v22 = vmul.f32 %v2119_v39, %v7044_v11  ;;  %v7214_v40 = vmul.f32 %v2119_v39, %v7050_v62  ;;  %v7217_v43 = vmul.f32 %v2119_v39, %v7056_v41  ;;  %v5493_v62 = vld [vmem:[%s9019_s2 + $0x70] sm:$0xff]  ;;  %v5500_v41 = vld [vmem:[%s9019_s2 + $0xa8] sm:$0xff] }
 0x3ae   : > { %v2215_v38 = vpack.c.bf16 %v2183_v17, %v2183_v17  ;;  %v2214_v29 = vpack.c.bf16 %v2182_v34, %v2182_v34  ;;  %v7220_v30 = vmul.f32 %v2119_v39, %v7062_v14  ;;  %v7223_v33 = vmul.f32 %v2119_v39, %v7068_v27  ;;  %3623 = vmatpush.bf16.msrb.mxu2 %v5493_v62 }
 0x3af   : > { %v7226_v19 = vmul.f32 %v2119_v39, %v7074_v8  ;;  %v7229_v11 = vmul.f32 %v2119_v39, %v7080_v42  ;;  %v7232_v26 = vmul.f32 %v2119_v39, %v7086_v28  ;;  %v7241_v27 = vmul.f32 %v2119_v39, %v7092_v32  ;;  %v5507_v28 = vld [vmem:[%s9019_s2 + $0xe0] sm:$0xff]  ;;  %3713 = vmatpush.bf16.msrb.mxu3 %v5500_v41 }
 0x3b0   : > { %v2359_v0 = vunpack.c.l.b16 %v2215_v38  ;;  %v7211_v51 = vunpack.c.l.b16 %v2214_v29  ;;  %v7244_v8 = vmul.f32 %v2119_v39, %v7098_v45  ;;  %v7247_v42 = vmul.f32 %v2119_v39, %v7104_v60  ;;  %3803 = vmatpush.bf16.msrb.mxu0 %v5507_v28  ;;  %v5491_v38 = vld [vmem:[%s9019_s2 + $0x60] sm:$0xff] }
 0x3b1   : > { %v7253_v3 = vmul.f32 %v2119_v39, %v7110_v63  ;;  %v7256_v18 = vmul.f32 %v2119_v39, %v7116_v56  ;;  %v7259_v54 = vmul.f32 %v2119_v39, %v7122_v49  ;;  %v7265_v45 = vmul.f32 %v2119_v39, %v7128_v31  ;;  %v5492_v31 = vld [vmem:[%s9019_s2 + $0x68] sm:$0xff] }
 0x3b2   : > { %9247 = vst [vmem:[#allocation39_spill] sm:$0xff] %v7211_v51  ;;  %v2535_v14 = vpack.c.b16 %v2359_v0, %v2359_v0  ;;  %v7262_v32 = vpack.c.b16 %v2359_v0, %v7211_v51  ;;  %v7268_v60 = vmul.f32 %v2119_v39, %v7134_v55  ;;  %v7271_v63 = vmul.f32 %v2119_v39, %v7140_v59  ;;  %v5499_v55 = vld [vmem:[%s9019_s2 + $0xa0] sm:$0xff] }
 0x3b3   : > { %v7274_v56 = vmul.f32 %v2119_v39, %v6975_v47  ;;  %v7277_v49 = vmul.f32 %v2119_v39, %v6978_v50  ;;  %v7280_v4 = vmul.f32 %v2119_v39, %v6981_v48  ;;  %v7283_v35 = vmul.f32 %v2119_v39, %v6984_v21  ;;  %v5482_v21 = vld [vmem:[%s9019_s2 + $0x18] sm:$0xff]  ;;  %3624 = vmatpush.bf16.msrb.mxu2 %v5492_v31  ;;  %v5489_v31 = vld [vmem:[%s9019_s2 + $0x50] sm:$0xff] }
 0x3b4   : > { %9248 = vst [vmem:[#allocation40_spill] sm:$0xff] %v7262_v32  ;;  %v7291_v59 = vshll.u32 %v2535_v14, 16  ;;  %v2152_v50 = vmax.f32 %v7173_v1, 0.0  ;;  %v2153_v48 = vmax.f32 %v7176_v25, 0.0  ;;  %v2154_v2 = vmax.f32 %v7179_v6, 0.0  ;;  %3537 = vmatpush.bf16.msra.mxu1 %v5482_v21  ;;  %3714 = vmatpush.bf16.msrb.mxu3 %v5499_v55  ;;  %v5480_v14 = vld [vmem:[%s9019_s2 + $0x8] sm:$0xff] }
 0x3b5   : > { %v2155_v24 = vmax.f32 %v7182_v36, 0.0  ;;  %v2156_v12 = vmax.f32 %v7191_v13, 0.0  ;;  %v2157_v61 = vmax.f32 %v7194_v23, 0.0  ;;  %v2158_v9 = vmax.f32 %v7197_v46, 0.0  ;;  %v5481_v36 = vld [vmem:[%s9019_s2 + $0x10] sm:$0xff]  ;;  %3804 = vmatpush.bf16.msrb.mxu0 %v5506_v10  ;;  %v5496_v55 = vld [vmem:[%s9019_s2 + $0x88] sm:$0xff] }
 0x3b6   : > { %9249 = vst [vmem:[#allocation41_spill] sm:$0xff] %v7291_v59  ;;  %v2159_v39 = vmax.f32 %v7203_v58, 0.0  ;;  %v2160_v37 = vmax.f32 %v7206_v53, 0.0  ;;  %v2161_v16 = vmax.f32 %v7209_v22, 0.0  ;;  %v2162_v17 = vmax.f32 %v7214_v40, 0.0 }
 0x3b7   : > { %v2163_v5 = vmax.f32 %v7217_v43, 0.0  ;;  %v2164_v34 = vmax.f32 %v7220_v30, 0.0  ;;  %v2165_v44 = vmax.f32 %v7223_v33, 0.0  ;;  %v2166_v29 = vmax.f32 %v7226_v19, 0.0  ;;  %3625 = vmatpush.bf16.msrb.mxu2 %v5491_v38  ;;  %v5490_v33 = vld [vmem:[%s9019_s2 + $0x58] sm:$0xff]  ;;  %v5497_v19 = vld [vmem:[%s9019_s2 + $0x90] sm:$0xff] }
 0x3b8   : > { %v2167_v1 = vmax.f32 %v7229_v11, 0.0  ;;  %v2168_v25 = vmax.f32 %v7232_v26, 0.0  ;;  %v2169_v6 = vmax.f32 %v7241_v27, 0.0  ;;  %v2170_v7 = vmax.f32 %v7244_v8, 0.0  ;;  %3538 = vmatpush.bf16.msra.mxu1 %v5481_v36  ;;  %3715 = vmatpush.bf16.msrb.mxu3 %v5498_v57  ;;  %v5504_v27 = vld [vmem:[%s9019_s2 + $0xc8] sm:$0xff] }
 0x3b9   : > { %v2171_v0 = vmax.f32 %v7247_v42, 0.0  ;;  %v2172_v13 = vmax.f32 %v7253_v3, 0.0  ;;  %v2173_v23 = vmax.f32 %v7256_v18, 0.0  ;;  %v2174_v46 = vmax.f32 %v7259_v54, 0.0  ;;  %3805 = vmatpush.bf16.msrb.mxu0 %v5505_v15 }
 0x3ba   : > { %v2175_v52 = vmax.f32 %v7265_v45, 0.0  ;;  %v2176_v58 = vmax.f32 %v7268_v60, 0.0  ;;  %v2177_v53 = vmax.f32 %v7271_v63, 0.0  ;;  %v2178_v22 = vmax.f32 %v7274_v56, 0.0 }
 0x3bb   : > { %v2179_v40 = vmax.f32 %v7277_v49, 0.0  ;;  %v2180_v43 = vmax.f32 %v7280_v4, 0.0  ;;  %v2181_v30 = vmax.f32 %v7283_v35, 0.0  ;;  %v2184_v11 = vpack.c.bf16 %v2152_v50, %v2152_v50  ;;  %3626 = vmatpush.bf16.msrb.mxu2 %v5490_v33 }
 0x3bc   : > { %v7349_v26 = vpack.c.bf16 %v2153_v48, %v2153_v48  ;;  %v2186_v62 = vpack.c.bf16 %v2154_v2, %v2154_v2  ;;  %v7351_v41 = vpack.c.bf16 %v2155_v24, %v2155_v24  ;;  %v2188_v8 = vpack.c.bf16 %v2156_v12, %v2156_v12  ;;  %3539 = vmatpush.bf16.msra.mxu1 %v5480_v14  ;;  %v5479_v2 = vld [vmem:[%s9019_s2] sm:$0xff] }
 0x3bd   : > { %v7359_v42 = vpack.c.bf16 %v2157_v61, %v2157_v61  ;;  %v2190_v28 = vpack.c.bf16 %v2158_v9, %v2158_v9  ;;  %v7361_v3 = vpack.c.bf16 %v2159_v39, %v2159_v39  ;;  %v2192_v18 = vpack.c.bf16 %v2160_v37, %v2160_v37  ;;  %3716 = vmatpush.bf16.msrb.mxu3 %v5497_v19  ;;  %v5503_v24 = vld [vmem:[%s9019_s2 + $0xc0] sm:$0xff] }
 0x3be   : > { %v7363_v54 = vpack.c.bf16 %v2161_v16, %v2161_v16  ;;  %v2194_v45 = vpack.c.bf16 %v2162_v17, %v2162_v17  ;;  %v7365_v60 = vpack.c.bf16 %v2163_v5, %v2163_v5  ;;  %v2196_v63 = vpack.c.bf16 %v2164_v34, %v2164_v34  ;;  %3806 = vmatpush.bf16.msrb.mxu0 %v5504_v27  ;;  %v5488_v34 = vld [vmem:[%s9019_s2 + $0x48] sm:$0xff] }
 0x3bf   : > { %v7367_v56 = vpack.c.bf16 %v2165_v44, %v2165_v44  ;;  %v2198_v49 = vpack.c.bf16 %v2166_v29, %v2166_v29  ;;  %v7369_v4 = vpack.c.bf16 %v2167_v1, %v2167_v1  ;;  %v2200_v50 = vpack.c.bf16 %v2168_v25, %v2168_v25  ;;  %3627 = vmatpush.bf16.msrb.mxu2 %v5489_v31  ;;  %v5495_v1 = vld [vmem:[%s9019_s2 + $0x80] sm:$0xff] }
 0x3c0   : > { %v7377_v48 = vpack.c.bf16 %v2169_v6, %v2169_v6  ;;  %v2202_v21 = vpack.c.bf16 %v2170_v7, %v2170_v7  ;;  %v7379_v10 = vpack.c.bf16 %v2171_v0, %v2171_v0  ;;  %v2204_v12 = vpack.c.bf16 %v2172_v13, %v2172_v13  ;;  %3540 = vmatpush.bf16.msra.mxu1 %v5479_v2 }
 0x3c1   : > { %v7387_v61 = vpack.c.bf16 %v2173_v23, %v2173_v23  ;;  %v2206_v9 = vpack.c.bf16 %v2174_v46, %v2174_v46  ;;  %v7389_v39 = vpack.c.bf16 %v2175_v52, %v2175_v52  ;;  %v2208_v37 = vpack.c.bf16 %v2176_v58, %v2176_v58  ;;  %3717 = vmatpush.bf16.msrb.mxu3 %v5496_v55 }
 0x3c2   : > { %v7391_v16 = vpack.c.bf16 %v2177_v53, %v2177_v53  ;;  %v2210_v17 = vpack.c.bf16 %v2178_v22, %v2178_v22  ;;  %v2212_v5 = vpack.c.bf16 %v2180_v43, %v2180_v43  ;;  %v7396_v44 = vpack.c.bf16 %v2179_v40, %v2179_v40  ;;  %3807 = vmatpush.bf16.msrb.mxu0 %v5503_v24  ;;  %v5518_v22 = vld [vmem:[%s9019_s2 + $0x138] sm:$0xff]  ;;  %v5487_v40 = vld [vmem:[%s9019_s2 + $0x40] sm:$0xff] }
 0x3c3   : > { %v2233_v38 = vunpack.c.l.b16 %v2186_v62  ;;  %v7398_v57 = vunpack.c.l.b16 %v2188_v8  ;;  %v7400_v29 = vunpack.c.l.b16 %v2190_v28  ;;  %v7405_v25 = vunpack.c.l.b16 %v2192_v18  ;;  %3628 = vmatpush.bf16.msrb.mxu2 %v5488_v34 }
 0x3c4   : > { %v7407_v6 = vunpack.c.l.b16 %v2194_v45  ;;  %v7409_v36 = vunpack.c.l.b16 %v2196_v63  ;;  %v7411_v15 = vunpack.c.l.b16 %v2198_v49  ;;  %v7413_v7 = vunpack.c.l.b16 %v2184_v11  ;;  %3889 = vmatpush.bf16.msrb.mxu1 %v5518_v22 }
 0x3c5   : > { %v7415_v0 = vunpack.c.l.b16 %v2200_v50  ;;  %v7417_v13 = vunpack.c.l.b16 %v2202_v21  ;;  %v7419_v23 = vunpack.c.l.b16 %v2204_v12  ;;  %v7421_v46 = vunpack.c.l.b16 %v2206_v9  ;;  %3718 = vmatpush.bf16.msrb.mxu3 %v5495_v1 }
 0x3c6   : > { %v7423_v52 = vunpack.c.l.b16 %v2208_v37  ;;  %v7425_v58 = vunpack.c.l.b16 %v2210_v17  ;;  %v7427_v53 = vunpack.c.l.b16 %v2212_v5  ;;  %v2213_v43 = vpack.c.bf16 %v2181_v30, %v2181_v30 }
 0x3c7   : > { %v2249_v33 = vpack.c.b16 %v2233_v38, %v2233_v38  ;;  %v2250_v19 = vpack.c.b16 %v7398_v57, %v7398_v57  ;;  %v2251_v11 = vpack.c.b16 %v7400_v29, %v7400_v29  ;;  %v2252_v62 = vpack.c.b16 %v7405_v25, %v7405_v25  ;;  %3629 = vmatpush.bf16.msrb.mxu2 %v5487_v40 }
 0x3c8   : > { %v2253_v14 = vpack.c.b16 %v7407_v6, %v7407_v6  ;;  %v2254_v27 = vpack.c.b16 %v7409_v36, %v7409_v36  ;;  %v2255_v35 = vpack.c.b16 %v7411_v15, %v7411_v15  ;;  %v2256_v8 = vpack.c.b16 %v7415_v0, %v7415_v0 }
 0x3c9   : > { %v2257_v28 = vpack.c.b16 %v7417_v13, %v7417_v13  ;;  %v2258_v18 = vpack.c.b16 %v7419_v23, %v7419_v23  ;;  %v2259_v45 = vpack.c.b16 %v7421_v46, %v7421_v46  ;;  %v2260_v63 = vpack.c.b16 %v7423_v52, %v7423_v52 }
 0x3ca   : > { %v2261_v49 = vpack.c.b16 %v7425_v58, %v7425_v58  ;;  %v2262_v31 = vpack.c.b16 %v7427_v53, %v7427_v53  ;;  %v7466_v55 = vshrl.u32 %v2249_v33, 16  ;;  %v7468_v50 = vshrl.u32 %v2250_v19, 16 }
 0x3cb   : > { %v7470_v21 = vshrl.u32 %v2251_v11, 16  ;;  %v7473_v2 = vunpack.c.l.b16 %v7351_v41  ;;  %v7475_v24 = vshrl.u32 %v2252_v62, 16  ;;  %v7477_v12 = vshrl.u32 %v2253_v14, 16 }
 0x3cc   : > { %9250 = vst [vmem:[#allocation42_spill] sm:$0xff] %v7468_v50  ;;  %v7479_v9 = vshrl.u32 %v2254_v27, 16  ;;  %v7481_v37 = vshrl.u32 %v2255_v35, 16  ;;  %v7483_v17 = vshrl.u32 %v2256_v8, 16  ;;  %v7485_v5 = vshrl.u32 %v2257_v28, 16 }
 0x3cd   : > { %v7487_v34 = vshrl.u32 %v2258_v18, 16  ;;  %v7490_v1 = vunpack.c.l.b16 %v7359_v42  ;;  %v7492_v22 = vshrl.u32 %v2259_v45, 16  ;;  %v7494_v41 = vshrl.u32 %v2260_v63, 16 }
 0x3ce   : > { %v7497_v40 = vunpack.c.l.b16 %v7361_v3  ;;  %v7500_v33 = vunpack.c.l.b16 %v7363_v54  ;;  %v7502_v19 = vshrl.u32 %v2261_v49, 16  ;;  %v7505_v11 = vunpack.c.l.b16 %v7349_v26 }
 0x3cf   : > { %9251 = vst [vmem:[#allocation43_spill] sm:$0xff] %v7492_v22  ;;  %v7508_v62 = vunpack.c.l.b16 %v7365_v60  ;;  %v2361_v42 = vpack.c.b16 %v7473_v2, %v2233_v38  ;;  %v7512_v14 = vunpack.c.l.b16 %v7367_v56  ;;  %v7515_v27 = vunpack.c.l.b16 %v7369_v4 }
 0x3d0   : > { %9252 = vst [vmem:[#allocation5_spill] sm:$0xff] %v7494_v41  ;;  %v7518_v3 = vunpack.c.l.b16 %v7377_v48  ;;  %v7521_v54 = vunpack.c.l.b16 %v7379_v10  ;;  %v7524_v26 = vunpack.c.l.b16 %v7387_v61  ;;  %v7527_v60 = vunpack.c.l.b16 %v7389_v39 }
 0x3d1   : > { %9253 = vst [vmem:[#allocation6_spill] sm:$0xff] %v7502_v19  ;;  %v7530_v38 = vunpack.c.l.b16 %v7391_v16  ;;  %v7534_v56 = vpack.c.b16 %v7490_v1, %v7398_v57  ;;  %v7537_v4 = vunpack.c.l.b16 %v7396_v44  ;;  %v7539_v48 = vunpack.c.l.b16 %v2213_v43 }
 0x3d2   : > { %v7543_v10 = vpack.c.b16 %v7497_v40, %v7400_v29  ;;  %v7547_v61 = vpack.c.b16 %v7500_v33, %v7405_v25  ;;  %v7549_v39 = vshrl.u32 %v2262_v31, 16  ;;  %v7553_v16 = vpack.c.b16 %v7505_v11, %v7413_v7 }
 0x3d3   : > { %v7557_v44 = vpack.c.b16 %v7508_v62, %v7407_v6  ;;  %v2384_v57 = vshrl.u32 %v2361_v42, 16  ;;  %v7561_v43 = vpack.c.b16 %v7512_v14, %v7409_v36  ;;  %v7565_v29 = vpack.c.b16 %v7515_v27, %v7411_v15 }
 0x3d4   : > { %9254 = vst [vmem:[#allocation44_spill] sm:$0xff] %v7549_v39  ;;  %v7569_v25 = vpack.c.b16 %v7518_v3, %v7415_v0  ;;  %v7573_v35 = vpack.c.b16 %v7521_v54, %v7417_v13  ;;  %v7577_v6 = vpack.c.b16 %v7524_v26, %v7419_v23  ;;  %v7581_v36 = vpack.c.b16 %v7527_v60, %v7421_v46 }
 0x3d5   : > { %v7585_v15 = vpack.c.b16 %v7530_v38, %v7423_v52  ;;  %v2391_v8 = vshrl.u32 %v7534_v56, 16  ;;  %v7590_v0 = vpack.c.b16 %v7537_v4, %v7425_v58  ;;  %v7594_v13 = vpack.c.b16 %v7539_v48, %v7427_v53 }
 0x3d6   : > { %9255 = vst [vmem:[#allocation45_spill] sm:$0xff] %v7581_v36  ;;  %v2398_v23 = vshrl.u32 %v7543_v10, 16  ;;  %v2405_v28 = vshrl.u32 %v7547_v61, 16  ;;  %v2386_v46 = vrot.slane %v2384_v57, 7  ;;  %v2387_v18 = vshll.u32 %v2361_v42, 16 }
 0x3d7   : > { %9256 = vst [vmem:[#allocation8_spill] sm:$0xff] %v7585_v15  ;;  %v2412_v45 = vshrl.u32 %v7557_v44, 16  ;;  %v2521_v52 = vpack.c.b16 %v7473_v2, %v7473_v2  ;;  %v2401_v58 = vshll.u32 %v7543_v10, 16  ;;  %v2419_v49 = vshrl.u32 %v7561_v43, 16 }
 0x3d8   : > { %v2426_v53 = vshrl.u32 %v7565_v29, 16  ;;  %v7605_v31 = vrot.slane %v2391_v8, 7  ;;  %v2433_v42 = vshrl.u32 %v7569_v25, 16  ;;  %v7610_v30 = vrot.slane %v2398_v23, 7 }
 0x3d9   : > { %v7612_v20 = vrot.slane %v2405_v28, 7  ;;  %v2440_v10 = vshrl.u32 %v7573_v35, 16  ;;  %v2389_v63 = vor.u32 %v2387_v18, %v2386_v46  ;;  %v7616_v59 = vrot.slane %v2412_v45, 7 }
 0x3da   : > { %v2447_v8 = vshrl.u32 %v7577_v6, 16  ;;  %v2541_v51 = vshll.u32 %v2521_v52, 16  ;;  %v7619_v32 = vrot.slane %v2419_v49, 7  ;;  %v7621_v47 = vrot.slane %v2426_v53, 7 }
 0x3db   : > { %v7625_v28 = vrot.slane %v2433_v42, 7  ;;  %v7629_v45 = vrot.slane %v2440_v10, 7  ;;  %v2454_v19 = vshrl.u32 %v7581_v36, 16  ;;  %v2520_v53 = vpack.c.b16 %v7505_v11, %v7505_v11 }
 0x3dc   : > { %v2543_v18 = vrot.slane %v2541_v51, 3  ;;  %v7633_v49 = vrot.slane %v2447_v8, 7  ;;  %v2377_v42 = vshrl.u32 %v7553_v16, 16  ;;  %v2461_v2 = vshrl.u32 %v7585_v15, 16 }
 0x3dd   : > { %v2468_v51 = vshrl.u32 %v7590_v0, 16  ;;  %v2523_v10 = vpack.c.b16 %v7497_v40, %v7497_v40  ;;  %v7651_v11 = vsel %vm7644_vm8, %v7466_v55, %v2389_v63  ;;  %v2380_v23 = vshll.u32 %v7553_v16, 16 }
 0x3de   : > { %v2379_v8 = vrot.slane %v2377_v42, 7  ;;  %v2636_v39 = vsel %vm7644_vm8, %v2386_v46, %v2543_v18  ;;  %v7656_v57 = vrot.slane %v2454_v19, 7  ;;  %3541 = vmatmul.bf16.vlgmr.msra.gmra.mxu1 %v7651_v11  ;;  %v3022_v40 = vrot.slane %v7651_v11, 1 }
 0x3df   : > { %v3023_v41 = vrot.slane %v2636_v39, 1  ;;  %v2799_v15 = vshll.u32 %v7651_v11, 16  ;;  %v2537_v50 = vshll.u32 %v2520_v53, 16  ;;  %v9260_v55 = vpack.c.b16 %v7413_v7, %v7413_v7 }
 0x3e0   : > { %9259 = vst [vmem:[#allocation9_spill] sm:$0xff] %v7656_v57  ;;  %v2382_v42 = vor.u32 %v2380_v23, %v2379_v8  ;;  %v2804_v22 = vshll.u32 %v2636_v39, 16  ;;  %v2524_v16 = vpack.c.b16 %v7500_v33, %v7500_v33  ;;  %v2797_v46 = vshrl.u32 %v7651_v11, 16 }
 0x3e1   : > { %v2265_v63 = vshrl.u32 %v9260_v55, 16  ;;  %v7667_v19 = vsel %vm415_vm0, %v3022_v40, %v3023_v41  ;;  %v2801_v18 = vrot.slane %v2799_v15, 1  ;;  %v2549_v36 = vshll.u32 %v2523_v10, 16  ;;  %v5517_v15 = vld [vmem:[%s9019_s2 + $0x130] sm:$0xff] }
 0x3e2   : > { %3719 = vmatmul.bf16.vlgmr.msrb.gmra.mxu3 %v7667_v19  ;;  %v2403_v7 = vor.u32 %v2401_v58, %v7610_v30  ;;  %v2475_v33 = vshrl.u32 %v7594_v13, 16  ;;  %v2806_v23 = vrot.slane %v2804_v22, 1  ;;  %v7682_v53 = vrot.slane %v2461_v2, 7  ;;  %3890 = vmatpush.bf16.msrb.mxu1 %v5517_v15 }
 0x3e3   : > { %v7672_v57 = vsel %vm7644_vm8, %v2265_v63, %v2382_v42  ;;  %v2802_v41 = vor.u32 %v2801_v18, %v2797_v46  ;;  %v7684_v10 = vrot.slane %v2468_v51, 7  ;;  %v2539_v55 = vrot.slane %v2537_v50, 3 }
 0x3e4   : > { %3808 = vmatmul.bf16.vlgmr.msrb.gmra.mxu0 %v7672_v57  ;;  %v2525_v58 = vpack.c.b16 %v7508_v62, %v7508_v62  ;;  %v2526_v63 = vpack.c.b16 %v7512_v14, %v7512_v14  ;;  %v2527_v22 = vpack.c.b16 %v7515_v27, %v7515_v27  ;;  %v2553_v2 = vshll.u32 %v2524_v16, 16 }
 0x3e5   : > { %v7694_v42 = vsel %vm2795_vm9, %v2802_v41, %v2806_v23  ;;  %v7700_v50 = vsel %vm7644_vm8, %v7470_v21, %v2403_v7  ;;  %v9261_v62 = vshll.u32 %v7547_v61, 16  ;;  %v2551_v14 = vrot.slane %v2549_v36, 3 }
 0x3e6   : > { %3630 = vmatmul.bf16.vlgmr.msrb.gmra.mxu2 %v7694_v42  ;;  %v7705_v46 = vrot.slane %v2475_v33, 7  ;;  %v2528_v16 = vpack.c.b16 %v7518_v3, %v7518_v3  ;;  %v2529_v18 = vpack.c.b16 %v7521_v54, %v7521_v54  ;;  %v2635_v21 = vsel %vm7644_vm8, %v2379_v8, %v2539_v55 }
 0x3e7   : > { %v2410_v51 = vor.u32 %v9261_v62, %v7612_v20  ;;  %v2811_v7 = vshll.u32 %v7672_v57, 16  ;;  %v7724_v36 = vsel %vm7644_vm8, %v7610_v30, %v2551_v14  ;;  %v2557_v33 = vshll.u32 %v2525_v58, 16 }
 0x3e8   : > { %v2835_v41 = vshll.u32 %v7700_v50, 16  ;;  %v2840_v8 = vshll.u32 %v7724_v36, 16  ;;  %v2561_v23 = vshll.u32 %v2526_v63, 16  ;;  %v2565_v15 = vshll.u32 %v2527_v22, 16 }
 0x3e9   : > { %v7719_v61 = vsel %vm7644_vm8, %v7475_v24, %v2410_v51  ;;  %v9262_v55 = vshll.u32 %v7557_v44, 16  ;;  %v2555_v62 = vrot.slane %v2553_v2, 3  ;;  %v3025_v51 = vrot.slane %v7672_v57, 1 }
 0x3ea   : > { %v3026_v39 = vrot.slane %v2635_v21, 1  ;;  %v2833_v30 = vshrl.u32 %v7700_v50, 16  ;;  %v2837_v14 = vrot.slane %v2835_v41, 1  ;;  %v2813_v40 = vrot.slane %v2811_v7, 1 }
 0x3eb   : > { %v2417_v24 = vor.u32 %v9262_v55, %v7616_v59  ;;  %v7743_v63 = vsel %vm7644_vm8, %v7612_v20, %v2555_v62  ;;  %v2847_v44 = vshll.u32 %v7719_v61, 16  ;;  %v2842_v2 = vrot.slane %v2840_v8, 1 }
 0x3ec   : > { %v2838_v22 = vor.u32 %v2837_v14, %v2833_v30  ;;  %v2852_v55 = vshll.u32 %v7743_v63, 16  ;;  %v9263_v41 = vshll.u32 %v7561_v43, 16  ;;  %v2816_v27 = vshll.u32 %v2635_v21, 16 }
 0x3ed   : > { %v7738_v58 = vsel %vm7644_vm8, %v7477_v12, %v2417_v24  ;;  %v2845_v3 = vshrl.u32 %v7719_v61, 16  ;;  %v2849_v12 = vrot.slane %v2847_v44, 1  ;;  %v2559_v24 = vrot.slane %v2557_v33, 3 }
 0x3ee   : > { %v2424_v7 = vor.u32 %v9263_v41, %v7619_v32  ;;  %3546 = vmatmul.bf16.gmra.mxu1 %v7672_v57  ;;  %v2809_v20 = vshrl.u32 %v7672_v57, 16  ;;  %v7754_v62 = vsel %vm2795_vm9, %v2838_v22, %v2842_v2  ;;  %v2854_v30 = vrot.slane %v2852_v55, 1 }
 0x3ef   : > { %v2850_v43 = vor.u32 %v2849_v12, %v2845_v3  ;;  %v7764_v21 = vsel %vm7644_vm8, %v7616_v59, %v2559_v24  ;;  %v2859_v33 = vshll.u32 %v7738_v58, 16  ;;  %v9264_v57 = vshll.u32 %v7565_v29, 16 }
 0x3f0   : > { %v7759_v8 = vsel %vm7644_vm8, %v7479_v9, %v2424_v7  ;;  %v7771_v44 = vsel %vm415_vm0, %v3025_v51, %v3026_v39  ;;  %v2814_v22 = vor.u32 %v2813_v40, %v2809_v20  ;;  %v2864_v2 = vshll.u32 %v7764_v21, 16 }
 0x3f1   : > { %v2431_v14 = vor.u32 %v9264_v57, %v7621_v47  ;;  %v2563_v9 = vrot.slane %v2561_v23, 3  ;;  %v7776_v3 = vsel %vm2795_vm9, %v2850_v43, %v2854_v30  ;;  %v2857_v59 = vshrl.u32 %v7738_v58, 16 }
 0x3f2   : > { %3724 = vmatmul.bf16.gmra.mxu3 %v7771_v44  ;;  %v2861_v55 = vrot.slane %v2859_v33, 1  ;;  %v2569_v41 = vshll.u32 %v2528_v16, 16  ;;  %v2818_v39 = vrot.slane %v2816_v27, 1  ;;  %v2871_v23 = vshll.u32 %v7759_v8, 16 }
 0x3f3   : > { %v7782_v29 = vsel %vm7644_vm8, %v7481_v37, %v2431_v14  ;;  %v7788_v40 = vsel %vm7644_vm8, %v7619_v32, %v2563_v9  ;;  %v2866_v7 = vrot.slane %v2864_v2, 1  ;;  %v9265_v24 = vshll.u32 %v7569_v25, 16 }
 0x3f4   : > { %3813 = vmatmul.bf16.gmra.mxu0 %v7651_v11  ;;  %v2862_v51 = vor.u32 %v2861_v55, %v2857_v59  ;;  %v2876_v12 = vshll.u32 %v7788_v40, 16  ;;  %v7796_v16 = vsel %vm2795_vm9, %v2814_v22, %v2818_v39  ;;  %v2869_v27 = vshrl.u32 %v7759_v8, 16 }
 0x3f5   : > { %v2438_v37 = vor.u32 %v9265_v24, %v7625_v28  ;;  %v2873_v20 = vrot.slane %v2871_v23, 1  ;;  %v2567_v30 = vrot.slane %v2565_v15, 3  ;;  %v2531_v32 = vpack.c.b16 %v7527_v60, %v7527_v60 }
 0x3f6   : > { %3635 = vmatmul.bf16.gmra.mxu2 %v7796_v16  ;;  %v7803_v43 = vsel %vm2795_vm9, %v2862_v51, %v2866_v7  ;;  %v2878_v33 = vrot.slane %v2876_v12, 1  ;;  %v2883_v15 = vshll.u32 %v7782_v29, 16  ;;  %v9267_v60 = vshll.u32 %v7573_v35, 16 }
 0x3f7   : > { %v7808_v25 = vsel %vm7644_vm8, %v7483_v17, %v2438_v37  ;;  %v2874_v57 = vor.u32 %v2873_v20, %v2869_v27  ;;  %v7813_v14 = vsel %vm7644_vm8, %v7621_v47, %v2567_v30  ;;  %v2532_v2 = vpack.c.b16 %v7530_v38, %v7530_v38 }
 0x3f8   : > { %9266 = vst [vmem:[#allocation7_spill] sm:$0xff] %v7808_v25  ;;  %v2445_v22 = vor.u32 %v9267_v60, %v7629_v45  ;;  %v2573_v17 = vshll.u32 %v2529_v18, 16  ;;  %v2888_v9 = vshll.u32 %v7813_v14, 16  ;;  %v2571_v59 = vrot.slane %v2569_v41, 3  ;;  %v9273_v60 = vld [vmem:[#allocation9_spill] sm:$0xff] }
 0x3f9   : > { %v7826_v55 = vsel %vm2795_vm9, %v2874_v57, %v2878_v33  ;;  %v2881_v47 = vshrl.u32 %v7782_v29, 16  ;;  %v2885_v39 = vrot.slane %v2883_v15, 1  ;;  %v2533_v38 = vpack.c.b16 %v7537_v4, %v7537_v4 }
 0x3fa   : > { %v7832_v35 = vsel %vm7644_vm8, %v7485_v5, %v2445_v22  ;;  %v9269_v54 = vpack.c.b16 %v7524_v26, %v7524_v26  ;;  %v7842_v41 = vsel %vm7644_vm8, %v7625_v28, %v2571_v59  ;;  %v2895_v23 = vshll.u32 %v7808_v25, 16 }
 0x3fb   : > { %9268 = vst [vmem:[#allocation46_spill] sm:$0xff] %v7832_v35  ;;  %v2886_v51 = vor.u32 %v2885_v39, %v2881_v47  ;;  %v2890_v7 = vrot.slane %v2888_v9, 1  ;;  %v2900_v12 = vshll.u32 %v7842_v41, 16  ;;  %v9270_v5 = vshll.u32 %v7577_v6, 16 }
 0x3fc   : > { %v2577_v18 = vshll.u32 %v9269_v54, 16  ;;  %v2534_v4 = vpack.c.b16 %v7539_v48, %v7539_v48  ;;  %v2893_v26 = vshrl.u32 %v7808_v25, 16  ;;  %v2897_v37 = vrot.slane %v2895_v23, 1 }
 0x3fd   : > { %v2452_v24 = vor.u32 %v9270_v5, %v7633_v49  ;;  %v2575_v27 = vrot.slane %v2573_v17, 3  ;;  %v9271_v28 = vshll.u32 %v7534_v56, 16  ;;  %v7856_v30 = vsel %vm2795_vm9, %v2886_v51, %v2890_v7  ;;  %v9274_v56 = vld [vmem:[#allocation45_spill] sm:$0xff]  ;;  %v9277_v51 = vld [vmem:[#allocation43_spill] sm:$0xff] }
 0x3fe   : > { %v2902_v33 = vrot.slane %v2900_v12, 1  ;;  %v2898_v57 = vor.u32 %v2897_v37, %v2893_v26  ;;  %v2907_v15 = vshll.u32 %v7832_v35, 16  ;;  %v9275_v22 = vshll.u32 %v9274_v56, 16  ;;  %3551 = vmatmul.bf16.gmra.mxu1 %v7651_v11 }
 0x3ff   : > { %v2396_v20 = vor.u32 %v9271_v28, %v7605_v31  ;;  %v7861_v6 = vsel %vm7644_vm8, %v7487_v34, %v2452_v24  ;;  %v7866_v48 = vsel %vm7644_vm8, %v7629_v45, %v2575_v27  ;;  %v9276_v9 = vpack.c.b16 %v7490_v1, %v7490_v1  ;;  %v9278_v1 = vld [vmem:[#allocation42_spill] sm:$0xff] }
 0x400   : > { %9272 = vst [vmem:[#allocation10_spill] sm:$0xff] %v7861_v6  ;;  %v2459_v17 = vor.u32 %v9275_v22, %v9273_v60  ;;  %v2581_v47 = vshll.u32 %v2531_v32, 16  ;;  %v2912_v34 = vshll.u32 %v7866_v48, 16  ;;  %v2579_v39 = vrot.slane %v2577_v18, 3 }
 0x401   : > { %v2545_v59 = vshll.u32 %v9276_v9, 16  ;;  %v7878_v54 = vsel %vm2795_vm9, %v2898_v57, %v2902_v33  ;;  %v2905_v45 = vshrl.u32 %v7832_v35, 16  ;;  %v2909_v23 = vrot.slane %v2907_v15, 1 }
 0x402   : > { %v7884_v7 = vsel %vm7644_vm8, %v9277_v51, %v2459_v17  ;;  %v2585_v12 = vshll.u32 %v2532_v2, 16  ;;  %v7889_v32 = vsel %vm7644_vm8, %v9278_v1, %v2396_v20  ;;  %v7894_v18 = vsel %vm7644_vm8, %v7633_v49, %v2579_v39  ;;  %3729 = vmatmul.bf16.gmra.mxu3 %v7667_v19  ;;  %v9279_v2 = vld [vmem:[#allocation8_spill] sm:$0xff]  ;;  %v5516_v49 = vld [vmem:[%s9019_s2 + $0x128] sm:$0xff] }
 0x403   : > { %v2919_v5 = vshll.u32 %v7861_v6, 16  ;;  %v2910_v24 = vor.u32 %v2909_v23, %v2905_v45  ;;  %v2914_v26 = vrot.slane %v2912_v34, 1  ;;  %v2924_v37 = vshll.u32 %v7894_v18, 16  ;;  %v9282_v34 = vld [vmem:[#allocation5_spill] sm:$0xff]  ;;  %3891 = vmatpush.bf16.msrb.mxu1 %v5516_v49 }
 0x404   : > { %v9280_v27 = vshll.u32 %v9279_v2, 16  ;;  %v9281_v20 = vshll.u32 %v7594_v13, 16  ;;  %3818 = vmatmul.bf16.gmra.mxu0 %v7889_v32  ;;  %v2917_v57 = vshrl.u32 %v7861_v6, 16  ;;  %v2583_v56 = vrot.slane %v2581_v47, 3  ;;  %v9285_v2 = vld [vmem:[#allocation6_spill] sm:$0xff] }
 0x405   : > { %v2921_v15 = vrot.slane %v2919_v5, 1  ;;  %v2593_v22 = vshll.u32 %v2534_v4, 16  ;;  %v7911_v17 = vsel %vm2795_vm9, %v2910_v24, %v2914_v26  ;;  %v2926_v9 = vrot.slane %v2924_v37, 1 }
 0x406   : > { %v2466_v28 = vor.u32 %v9280_v27, %v7682_v53  ;;  %v2480_v33 = vor.u32 %v9281_v20, %v7705_v46  ;;  %v7921_v45 = vsel %vm7644_vm8, %v9273_v60, %v2583_v56  ;;  %v2931_v23 = vshll.u32 %v7884_v7, 16  ;;  %3640 = vmatmul.bf16.gmra.mxu2 %v7694_v42 }
 0x407   : > { %v2922_v39 = vor.u32 %v2921_v15, %v2917_v57  ;;  %v9284_v4 = vshll.u32 %v7590_v0, 16  ;;  %v2589_v51 = vshll.u32 %v2533_v38, 16  ;;  %v2547_v1 = vrot.slane %v2545_v59, 3  ;;  %v9287_v57 = vld [vmem:[#allocation44_spill] sm:$0xff] }
 0x408   : > { %v7916_v13 = vsel %vm7644_vm8, %v9282_v34, %v2466_v28  ;;  %v2936_v5 = vshll.u32 %v7921_v45, 16  ;;  %v2587_v24 = vrot.slane %v2585_v12, 3  ;;  %v2929_v37 = vshrl.u32 %v7884_v7, 16 }
 0x409   : > { %9283 = vst [vmem:[#allocation11_spill] sm:$0xff] %v7916_v13  ;;  %v2473_v47 = vor.u32 %v9284_v4, %v7684_v10  ;;  %v7930_v26 = vsel %vm2795_vm9, %v2922_v39, %v2926_v9  ;;  %v2933_v60 = vrot.slane %v2931_v23, 1  ;;  %v2595_v0 = vrot.slane %v2593_v22, 3 }
 0x40a   : > { %v2823_v38 = vshll.u32 %v7889_v32, 16  ;;  %v7942_v59 = vsel %vm7644_vm8, %v7682_v53, %v2587_v24  ;;  %v2943_v12 = vshll.u32 %v7916_v13, 16  ;;  %v2938_v20 = vrot.slane %v2936_v5, 1 }
 0x40b   : > { %v7936_v27 = vsel %vm7644_vm8, %v9285_v2, %v2473_v47  ;;  %v2934_v28 = vor.u32 %v2933_v60, %v2929_v37  ;;  %v2948_v49 = vshll.u32 %v7942_v59, 16  ;;  %v7949_v15 = vsel %vm7644_vm8, %v9287_v57, %v2480_v33 }
 0x40c   : > { %9286 = vst [vmem:[#allocation18_spill] sm:$0xff] %v7936_v27  ;;  %v2637_v56 = vsel %vm7644_vm8, %v7605_v31, %v2547_v1  ;;  %v2941_v22 = vshrl.u32 %v7916_v13, 16  ;;  %v2945_v9 = vrot.slane %v2943_v12, 1  ;;  %v2591_v53 = vrot.slane %v2589_v51, 3  ;;  %v9288_v31 = vld [vmem:[#allocation40_spill] sm:$0xff] }
 0x40d   : > { %v3028_v34 = vrot.slane %v7889_v32, 1  ;;  %v2821_v39 = vshrl.u32 %v7889_v32, 16  ;;  %v7958_v23 = vsel %vm2795_vm9, %v2934_v28, %v2938_v20  ;;  %v2955_v4 = vshll.u32 %v7936_v27, 16 }
 0x40e   : > { %v2946_v47 = vor.u32 %v2945_v9, %v2941_v22  ;;  %v2950_v33 = vrot.slane %v2948_v49, 1  ;;  %v7964_v5 = vsel %vm7644_vm8, %v7684_v10, %v2591_v53  ;;  %v2482_v1 = vshrl.u32 %v9288_v31, 16  ;;  %3556 = vmatmul.bf16.gmra.mxu1 %v7889_v32  ;;  %v9290_v22 = vld [vmem:[#allocation39_spill] sm:$0xff] }
 0x40f   : > { %v2825_v24 = vrot.slane %v2823_v38, 1  ;;  %v2953_v51 = vshrl.u32 %v7936_v27, 16  ;;  %v2957_v37 = vrot.slane %v2955_v4, 1  ;;  %v2960_v60 = vshll.u32 %v7964_v5, 16 }
 0x410   : > { %v7970_v2 = vsel %vm2795_vm9, %v2946_v47, %v2950_v33  ;;  %v2484_v12 = vrot.slane %v2482_v1, 7  ;;  %v2485_v28 = vshll.u32 %v9288_v31, 16  ;;  %v7976_v20 = vsel %vm7644_vm8, %v7705_v46, %v2595_v0  ;;  %v9293_v1 = vld [vmem:[#allocation41_spill] sm:$0xff] }
 0x411   : > { %9289 = vst [vmem:[#allocation19_spill] sm:$0xff] %v7970_v2  ;;  %v3029_v10 = vrot.slane %v2637_v56, 1  ;;  %v2828_v38 = vshll.u32 %v2637_v56, 16  ;;  %v2958_v49 = vor.u32 %v2957_v37, %v2953_v51  ;;  %v2962_v57 = vrot.slane %v2960_v60, 1 }
 0x412   : > { %v9291_v9 = vpack.c.b16 %v9290_v22, %v9290_v22  ;;  %v2487_v4 = vor.u32 %v2485_v28, %v2484_v12  ;;  %v2967_v47 = vshll.u32 %v7949_v15, 16  ;;  %v2972_v33 = vshll.u32 %v7976_v20, 16 }
 0x413   : > { %v7985_v31 = vsel %vm415_vm0, %v3028_v34, %v3029_v10  ;;  %v2826_v46 = vor.u32 %v2825_v24, %v2821_v39  ;;  %v7988_v0 = vsel %vm2795_vm9, %v2958_v49, %v2962_v57  ;;  %v2599_v56 = vrot.slane %v9293_v1, 3 }
 0x414   : > { %v2310_v53 = vshrl.u32 %v9291_v9, 16  ;;  %9292 = vst [vmem:[#allocation12_spill] sm:$0xff] %v7988_v0  ;;  %3734 = vmatmul.bf16.gmra.mxu3 %v7985_v31  ;;  %v2965_v37 = vshrl.u32 %v7949_v15, 16  ;;  %v2969_v60 = vrot.slane %v2967_v47, 1  ;;  %3823 = vmatmul.bf16.gmra.mxu0 %v7700_v50  ;;  %v2830_v28 = vrot.slane %v2828_v38, 1 }
 0x415   : > { %v8000_v34 = vsel %vm7644_vm8, %v2484_v12, %v2599_v56  ;;  %v2974_v10 = vrot.slane %v2972_v33, 1  ;;  %v3032_v47 = vrot.slane %v7724_v36, 1  ;;  %v3034_v1 = vrot.slane %v7719_v61, 1 }
 0x416   : > { %v7994_v51 = vsel %vm7644_vm8, %v2310_v53, %v2487_v4  ;;  %9295 = vst [vmem:[#allocation14_spill] sm:$0xff] %v8000_v34  ;;  %v2970_v24 = vor.u32 %v2969_v60, %v2965_v37  ;;  %v3090_v49 = vshll.u32 %v8000_v34, 16  ;;  %v8005_v57 = vsel %vm2795_vm9, %v2826_v46, %v2830_v28  ;;  %v5515_v46 = vld [vmem:[%s9019_s2 + $0x120] sm:$0xff] }
 0x417   : > { %9294 = vst [vmem:[#allocation13_spill] sm:$0xff] %v7994_v51  ;;  %v3085_v39 = vshll.u32 %v7994_v51, 16  ;;  %v3083_v22 = vshrl.u32 %v7994_v51, 16  ;;  %3645 = vmatmul.bf16.gmra.mxu2 %v8005_v57  ;;  %v3031_v4 = vrot.slane %v7700_v50, 1  ;;  %3892 = vmatpush.bf16.msrb.mxu1 %v5515_v46  ;;  %v3035_v36 = vrot.slane %v7743_v63, 1  ;;  %v5514_v63 = vld [vmem:[%s9019_s2 + $0x118] sm:$0xff] }
 0x418   : > { %v8010_v38 = vsel %vm2795_vm9, %v2970_v24, %v2974_v10  ;;  %v3092_v12 = vrot.slane %v3090_v49, 1  ;;  %v3037_v37 = vrot.slane %v7738_v58, 1  ;;  %v3038_v60 = vrot.slane %v7764_v21, 1 }
 0x419   : > { %v3087_v9 = vrot.slane %v3085_v39, 1  ;;  %v8019_v33 = vsel %vm415_vm0, %v3031_v4, %v3032_v47  ;;  %v8031_v56 = vsel %vm415_vm0, %v3034_v1, %v3035_v36  ;;  %v3040_v39 = vrot.slane %v7759_v8, 1 }
 0x41a   : > { %v8040_v28 = vsel %vm415_vm0, %v3037_v37, %v3038_v60  ;;  %v3041_v21 = vrot.slane %v7788_v40, 1  ;;  %v3043_v49 = vrot.slane %v7782_v29, 1  ;;  %v5513_v40 = vld [vmem:[%s9019_s2 + $0x110] sm:$0xff]  ;;  %v3046_v60 = vrot.slane %v7808_v25, 1 }
 0x41b   : > { %v3088_v52 = vor.u32 %v3087_v9, %v3083_v22  ;;  %3893 = vmatpush.bf16.msrb.mxu1 %v5514_v63  ;;  %v3044_v22 = vrot.slane %v7813_v14, 1  ;;  %v3047_v63 = vrot.slane %v7842_v41, 1 }
 0x41c   : > { %v8052_v24 = vsel %vm415_vm0, %v3040_v39, %v3041_v21 }
 0x41d   : > { %v8013_v53 = vsel %vm2795_vm9, %v3088_v52, %v3092_v12  ;;  %9297 = vst [vmem:[#allocation17_spill] sm:$0xff] %v8052_v24  ;;  %v8061_v52 = vsel %vm415_vm0, %v3043_v49, %v3044_v22  ;;  %v8073_v49 = vsel %vm415_vm0, %v3046_v60, %v3047_v63 }
 0x41e   : > { %9296 = vst [vmem:[#allocation15_spill] sm:$0xff] %v8013_v53  ;;  %3561 = vmatmul.bf16.gmra.mxu1 %v7700_v50 }
 0x41f   : > { %9298 = vst [vmem:[#allocation33_spill] sm:$0xff] %v8061_v52  ;;  %3894 = vmatpush.bf16.msrb.mxu1 %v5513_v40 }
 0x420   : > { %9299 = vst [vmem:[#allocation34_spill] sm:$0xff] %v8073_v49 }
 0x424   : > { %3739 = vmatmul.bf16.gmra.mxu3 %v8019_v33  ;;  %3828 = vmatmul.bf16.gmra.mxu0 %v7719_v61 }
 0x427   : > { %3650 = vmatmul.bf16.gmra.mxu2 %v7754_v62 }
 0x42e   : > { %3566 = vmatmul.bf16.gmra.mxu1 %v7719_v61 }
 0x434   : > { %3744 = vmatmul.bf16.gmra.mxu3 %v8031_v56  ;;  %3833 = vmatmul.bf16.gmra.mxu0 %v7738_v58 }
 0x437   : > { %3655 = vmatmul.bf16.gmra.mxu2 %v7776_v3 }
 0x43e   : > { %3571 = vmatmul.bf16.gmra.mxu1 %v7738_v58 }
 0x444   : > { %3749 = vmatmul.bf16.gmra.mxu3 %v8040_v28  ;;  %3838 = vmatmul.bf16.gmra.mxu0 %v7759_v8 }
 0x447   : > { %3660 = vmatmul.bf16.gmra.mxu2 %v7803_v43 }
 0x44e   : > { %3576 = vmatmul.bf16.gmra.mxu1 %v7759_v8 }
 0x454   : > { %3754 = vmatmul.bf16.gmra.mxu3 %v8052_v24  ;;  %3843 = vmatmul.bf16.gmra.mxu0 %v7782_v29 }
 0x457   : > { %3665 = vmatmul.bf16.gmra.mxu2 %v7826_v55 }
 0x45b   : > { %v3542_v10 = vpop.f32.mrf.mxu1 }
 0x45e   : > { %3581 = vmatmul.bf16.gmra.mxu1 %v7782_v29 }
 0x461   : > { %v3809_v9 = vpop.f32.mrf.mxu0 }
 0x463   : > { %v3544_v12 = vpop.f32.mrf.mxu1 }
 0x464   : > { %3759 = vmatmul.bf16.gmra.mxu3 %v8061_v52  ;;  %3848 = vmatmul.bf16.gmra.mxu0 %v7808_v25 }
 0x465   : > { %v3720_v4 = vpop.f32.mrf.mxu3 }
 0x467   : > { %3670 = vmatmul.bf16.gmra.mxu2 %v7856_v30 }
 0x469   : > { %v3811_v47 = vpop.f32.mrf.mxu0  ;;  %v3631_v46 = vpop.f32.mrf.mxu2 }
 0x46a   : > { %v3632_v14 = vadd.f32 %v3631_v46, %v3542_v10 }
 0x46b   : > { %v3547_v36 = vpop.f32.mrf.mxu1 }
 0x46c   : > { %v3721_v1 = vadd.f32 %v3720_v4, %v3632_v14 }
 0x46d   : > { %v3722_v37 = vpop.f32.mrf.mxu3 }
 0x46e   : > { %3586 = vmatmul.bf16.gmra.mxu1 %v7808_v25  ;;  %v3049_v25 = vrot.slane %v7832_v35, 1 }
 0x471   : > { %v3814_v39 = vpop.f32.mrf.mxu0  ;;  %v3633_v21 = vpop.f32.mrf.mxu2 }
 0x472   : > { %v3634_v22 = vadd.f32 %v3633_v21, %v3544_v12  ;;  %v3050_v12 = vrot.slane %v7866_v48, 1 }
 0x473   : > { %v3549_v40 = vpop.f32.mrf.mxu1 }
 0x474   : > { %3764 = vmatmul.bf16.gmra.mxu3 %v8073_v49  ;;  %3853 = vmatmul.bf16.gmra.mxu0 %v7832_v35  ;;  %v3723_v10 = vadd.f32 %v3722_v37, %v3634_v22  ;;  %v8082_v37 = vsel %vm415_vm0, %v3049_v25, %v3050_v12 }
 0x475   : > { %v3725_v4 = vpop.f32.mrf.mxu3  ;;  %9300 = vst [vmem:[#allocation23_spill] sm:$0xff] %v8082_v37 }
 0x477   : > { %3675 = vmatmul.bf16.gmra.mxu2 %v7878_v54 }
 0x479   : > { %v3816_v46 = vpop.f32.mrf.mxu0  ;;  %v3636_v14 = vpop.f32.mrf.mxu2 }
 0x47a   : > { %v3637_v34 = vadd.f32 %v3636_v14, %v3547_v36  ;;  %v8089_v36 = vadd.f32 %v3809_v9, %v3721_v1  ;;  %v3053_v9 = vrot.slane %v7894_v18, 1 }
 0x47b   : > { %v3552_v41 = vpop.f32.mrf.mxu1 }
 0x47c   : > { %v3726_v53 = vadd.f32 %v3725_v4, %v3637_v34  ;;  %v5512_v34 = vld [vmem:[%s9019_s2 + $0x108] sm:$0xff] }
 0x47d   : > { %v3727_v52 = vpop.f32.mrf.mxu3  ;;  %3895 = vmatpush.bf16.msrb.mxu1 %v5512_v34 }
 0x47e   : > { %3591 = vmatmul.bf16.gmra.mxu1 %v7832_v35  ;;  %v3052_v35 = vrot.slane %v7861_v6, 1 }
 0x481   : > { %v3819_v60 = vpop.f32.mrf.mxu0  ;;  %v3638_v63 = vpop.f32.mrf.mxu2 }
 0x482   : > { %v3639_v21 = vadd.f32 %v3638_v63, %v3549_v40  ;;  %v8092_v40 = vadd.f32 %v3811_v47, %v3723_v10  ;;  %v8104_v47 = vadd.f32 %v3814_v39, %v3726_v53  ;;  %v3056_v53 = vrot.slane %v7921_v45, 1 }
 0x483   : > { %v3554_v4 = vpop.f32.mrf.mxu1 }
 0x484   : > { %3769 = vmatmul.bf16.gmra.mxu3 %v8082_v37  ;;  %3858 = vmatmul.bf16.gmra.mxu0 %v7861_v6  ;;  %v3728_v22 = vadd.f32 %v3727_v52, %v3639_v21  ;;  %v8100_v21 = vsel %vm415_vm0, %v3052_v35, %v3053_v9 }
 0x485   : > { %v3730_v14 = vpop.f32.mrf.mxu3  ;;  %9301 = vst [vmem:[#allocation21_spill] sm:$0xff] %v8100_v21 }
 0x487   : > { %3680 = vmatmul.bf16.gmra.mxu2 %v7911_v17 }
 0x489   : > { %v3821_v48 = vpop.f32.mrf.mxu0  ;;  %v3641_v25 = vpop.f32.mrf.mxu2 }
 0x48a   : > { %v3642_v12 = vadd.f32 %v3641_v25, %v3552_v41 }
 0x48b   : > { %v3557_v37 = vpop.f32.mrf.mxu1 }
 0x48c   : > { %v3731_v63 = vadd.f32 %v3730_v14, %v3642_v12 }
 0x48d   : > { %v3732_v49 = vpop.f32.mrf.mxu3 }
 0x48e   : > { %3596 = vmatmul.bf16.gmra.mxu1 %v7861_v6  ;;  %v8109_v6 = vadd.f32 %v3816_v46, %v3728_v22  ;;  %v5511_v46 = vld [vmem:[%s9019_s2 + $0x100] sm:$0xff]  ;;  %v8127_v45 = vadd.f32 %v3819_v60, %v3731_v63  ;;  %v5526_v60 = vld [vmem:[%s9019_s2 + $0x178] sm:$0xff]  ;;  %v5533_v63 = vld [vmem:[%s9019_s2 + $0x1b0] sm:$0xff] }
 0x48f   : > { %3896 = vmatpush.bf16.msrb.mxu1 %v5511_v46  ;;  %3978 = vmatpush.bf16.msra.mxu2 %v5526_v60  ;;  %v3058_v60 = vrot.slane %v7916_v13, 1 }
 0x491   : > { %v8097_v52 = vpop.f32.mrf.mxu0  ;;  %v3643_v1 = vpop.f32.mrf.mxu2 }
 0x492   : > { %v3644_v34 = vadd.f32 %v3643_v1, %v3554_v4  ;;  %v3055_v1 = vrot.slane %v7884_v7, 1 }
 0x493   : > { %v3559_v41 = vpop.f32.mrf.mxu1 }
 0x494   : > { %3774 = vmatmul.bf16.gmra.mxu3 %v8100_v21  ;;  %3863 = vmatmul.bf16.gmra.mxu0 %v7884_v7  ;;  %v3733_v10 = vadd.f32 %v3732_v49, %v3644_v34  ;;  %v8117_v34 = vsel %vm415_vm0, %v3055_v1, %v3056_v53  ;;  %v5541_v1 = vld [vmem:[%s9019_s2 + $0x1f0] sm:$0xff]  ;;  %v5540_v53 = vld [vmem:[%s9019_s2 + $0x1e8] sm:$0xff] }
 0x495   : > { %9302 = vst [vmem:[#allocation16_spill] sm:$0xff] %v8117_v34 }
 0x497   : > { %v3735_v14 = vpop.f32.mrf.mxu3  ;;  %3685 = vmatmul.bf16.gmra.mxu2 %v7930_v26 }
 0x499   : > { %v8107_v25 = vpop.f32.mrf.mxu0 }
 0x49a   : > { %v3646_v18 = vpop.f32.mrf.mxu2 }
 0x49b   : > { %v3647_v12 = vadd.f32 %v3646_v18, %v3557_v37  ;;  %v3562_v9 = vpop.f32.mrf.mxu1  ;;  %v5542_v37 = vld [vmem:[%s9019_s2 + $0x1f8] sm:$0xff] }
 0x49c   : > { %4156 = vmatpush.bf16.msra.mxu0 %v5542_v37 }
 0x49d   : > { %v3736_v35 = vadd.f32 %v3735_v14, %v3647_v12 }
 0x49e   : > { %3601 = vmatmul.bf16.gmra.mxu1 %v7884_v7 }
 0x49f   : > { %v3737_v4 = vpop.f32.mrf.mxu3 }
 0x4a0   : > { %4157 = vmatpush.bf16.msra.mxu0 %v5541_v1 }
 0x4a1   : > { %v8114_v39 = vpop.f32.mrf.mxu0 }
 0x4a2   : > { %v3648_v49 = vpop.f32.mrf.mxu2 }
 0x4a3   : > { %v3649_v21 = vadd.f32 %v3648_v49, %v3559_v41  ;;  %v3564_v14 = vpop.f32.mrf.mxu1  ;;  %v5534_v41 = vld [vmem:[%s9019_s2 + $0x1b8] sm:$0xff]  ;;  %v8147_v49 = vadd.f32 %v3821_v48, %v3733_v10  ;;  %v3059_v48 = vrot.slane %v7942_v59, 1  ;;  %v5524_v59 = vld [vmem:[%s9019_s2 + $0x168] sm:$0xff] }
 0x4a4   : > { %3779 = vmatmul.bf16.gmra.mxu3 %v8117_v34  ;;  %3868 = vmatmul.bf16.gmra.mxu0 %v7916_v13 }
 0x4a5   : > { %v3738_v22 = vadd.f32 %v3737_v4, %v3649_v21  ;;  %4067 = vmatpush.bf16.msra.mxu3 %v5534_v41  ;;  %v5525_v41 = vld [vmem:[%s9019_s2 + $0x170] sm:$0xff]  ;;  %4158 = vmatpush.bf16.msra.mxu0 %v5540_v53  ;;  %v5531_v53 = vld [vmem:[%s9019_s2 + $0x1a0] sm:$0xff] }
 0x4a6   : > { %3979 = vmatpush.bf16.msra.mxu2 %v5525_v41  ;;  %v5538_v41 = vld [vmem:[%s9019_s2 + $0x1d8] sm:$0xff] }
 0x4a7   : > { %v3740_v18 = vpop.f32.mrf.mxu3  ;;  %3690 = vmatmul.bf16.gmra.mxu2 %v7958_v23 }
 0x4a9   : > { %v8133_v12 = vpop.f32.mrf.mxu0  ;;  %4068 = vmatpush.bf16.msra.mxu3 %v5533_v63 }
 0x4aa   : > { %v3651_v21 = vpop.f32.mrf.mxu2  ;;  %3980 = vmatpush.bf16.msra.mxu2 %v5524_v59 }
 0x4ab   : > { %v3652_v4 = vadd.f32 %v3651_v21, %v3562_v9  ;;  %v3567_v37 = vpop.f32.mrf.mxu1  ;;  %v5532_v9 = vld [vmem:[%s9019_s2 + $0x1a8] sm:$0xff]  ;;  %v8166_v21 = vsel %vm415_vm0, %v3058_v60, %v3059_v48 }
 0x4ac   : > { %9303 = vst [vmem:[#allocation24_spill] sm:$0xff] %v8166_v21 }
 0x4ad   : > { %v8149_v46 = vadd.f32 %v3740_v18, %v3652_v4  ;;  %4069 = vmatpush.bf16.msra.mxu3 %v5532_v9  ;;  %v5539_v18 = vld [vmem:[%s9019_s2 + $0x1e0] sm:$0xff]  ;;  %v8180_v9 = vadd.f32 %v8097_v52, %v3736_v35  ;;  %v5537_v52 = vld [vmem:[%s9019_s2 + $0x1d0] sm:$0xff] }
 0x4ae   : > { %3606 = vmatmul.bf16.gmra.mxu1 %v7916_v13  ;;  %4159 = vmatpush.bf16.msra.mxu0 %v5539_v18  ;;  %v5523_v18 = vld [vmem:[%s9019_s2 + $0x160] sm:$0xff]  ;;  %v5521_v13 = vld [vmem:[%s9019_s2 + $0x150] sm:$0xff] }
 0x4af   : > { %v3742_v1 = vpop.f32.mrf.mxu3  ;;  %3981 = vmatpush.bf16.msra.mxu2 %v5523_v18 }
 0x4b1   : > { %v8160_v10 = vpop.f32.mrf.mxu0  ;;  %4070 = vmatpush.bf16.msra.mxu3 %v5531_v53  ;;  %v5536_v53 = vld [vmem:[%s9019_s2 + $0x1c8] sm:$0xff] }
 0x4b2   : > { %v3653_v63 = vpop.f32.mrf.mxu2  ;;  %4160 = vmatpush.bf16.msra.mxu0 %v5538_v41  ;;  %v8204_v41 = vadd.f32 %v8107_v25, %v3738_v22  ;;  %v3062_v25 = vrot.slane %v7964_v5, 1 }
 0x4b3   : > { %v3654_v4 = vadd.f32 %v3653_v63, %v3564_v14  ;;  %v3569_v60 = vpop.f32.mrf.mxu1  ;;  %v5530_v63 = vld [vmem:[%s9019_s2 + $0x198] sm:$0xff] }
 0x4b4   : > { %3784 = vmatmul.bf16.gmra.mxu3 %v8166_v21  ;;  %3873 = vmatmul.bf16.gmra.mxu0 %v7936_v27 }
 0x4b5   : > { %v3743_v14 = vadd.f32 %v3742_v1, %v3654_v4  ;;  %4071 = vmatpush.bf16.msra.mxu3 %v5530_v63  ;;  %v5522_v1 = vld [vmem:[%s9019_s2 + $0x158] sm:$0xff]  ;;  %v5529_v4 = vld [vmem:[%s9019_s2 + $0x190] sm:$0xff] }
 0x4b6   : > { %4161 = vmatpush.bf16.msra.mxu0 %v5537_v52  ;;  %3982 = vmatpush.bf16.msra.mxu2 %v5522_v1  ;;  %v5520_v1 = vld [vmem:[%s9019_s2 + $0x148] sm:$0xff] }
 0x4b7   : > { %v3745_v48 = vpop.f32.mrf.mxu3  ;;  %3695 = vmatmul.bf16.gmra.mxu2 %v7970_v2  ;;  %v3061_v2 = vrot.slane %v7936_v27, 1 }
 0x4b9   : > { %v8189_v21 = vpop.f32.mrf.mxu0  ;;  %4072 = vmatpush.bf16.msra.mxu3 %v5529_v4  ;;  %v5527_v4 = vld [vmem:[%s9019_s2 + $0x180] sm:$0xff] }
 0x4ba   : > { %v3656_v35 = vpop.f32.mrf.mxu2  ;;  %4162 = vmatpush.bf16.msra.mxu0 %v5536_v53  ;;  %3983 = vmatpush.bf16.msra.mxu2 %v5521_v13  ;;  %v8234_v13 = vadd.f32 %v8114_v39, %v8149_v46 }
 0x4bb   : > { %v3657_v59 = vadd.f32 %v3656_v35, %v3567_v37  ;;  %v3572_v18 = vpop.f32.mrf.mxu1  ;;  %v5528_v37 = vld [vmem:[%s9019_s2 + $0x188] sm:$0xff]  ;;  %v8219_v35 = vsel %vm415_vm0, %v3061_v2, %v3062_v25  ;;  %v5550_v2 = vld [vmem:[%s9019_s2 + $0x238] sm:$0xff] }
 0x4bc   : > { %9304 = vst [vmem:[#allocation22_spill] sm:$0xff] %v8219_v35  ;;  %4245 = vmatpush.bf16.msra.mxu1 %v5550_v2 }
 0x4bd   : > { %v3746_v34 = vadd.f32 %v3745_v48, %v3657_v59  ;;  %v5535_v48 = vld [vmem:[%s9019_s2 + $0x1c0] sm:$0xff]  ;;  %4073 = vmatpush.bf16.msra.mxu3 %v5528_v37 }
 0x4be   : > { %3611 = vmatmul.bf16.gmra.mxu1 %v7936_v27  ;;  %4163 = vmatpush.bf16.msra.mxu0 %v5535_v48 }
 0x4bf   : > { %v3747_v63 = vpop.f32.mrf.mxu3  ;;  %3984 = vmatpush.bf16.msra.mxu2 %v5520_v1  ;;  %v3064_v1 = vrot.slane %v7949_v15, 1 }
 0x4c1   : > { %v3839_v22 = vpop.f32.mrf.mxu0  ;;  %4074 = vmatpush.bf16.msra.mxu3 %v5527_v4  ;;  %v3065_v4 = vrot.slane %v7976_v20, 1 }
 0x4c2   : > { %v3658_v52 = vpop.f32.mrf.mxu2 }
 0x4c3   : > { %v3659_v5 = vadd.f32 %v3658_v52, %v3569_v60  ;;  %v3574_v53 = vpop.f32.mrf.mxu1  ;;  %v5519_v60 = vld [vmem:[%s9019_s2 + $0x140] sm:$0xff]  ;;  %v8247_v2 = vsel %vm415_vm0, %v3064_v1, %v3065_v4 }
 0x4c4   : > { %3789 = vmatmul.bf16.gmra.mxu3 %v8219_v35  ;;  %3878 = vmatmul.bf16.gmra.mxu0 %v7949_v15  ;;  %v8241_v35 = vadd.f32 %v8133_v12, %v3743_v14  ;;  %9305 = vst [vmem:[#allocation25_spill] sm:$0xff] %v8247_v2  ;;  %v8252_v12 = vadd.f32 %v8160_v10, %v3746_v34 }
 0x4c5   : > { %v3748_v59 = vadd.f32 %v3747_v63, %v3659_v5  ;;  %3985 = vmatpush.bf16.msra.mxu2 %v5519_v60 }
 0x4c7   : > { %v3750_v37 = vpop.f32.mrf.mxu3  ;;  %3700 = vmatmul.bf16.gmra.mxu2 %v7988_v0 }
 0x4c9   : > { %v3841_v25 = vpop.f32.mrf.mxu0 }
 0x4ca   : > { %v3661_v48 = vpop.f32.mrf.mxu2 }
 0x4cb   : > { %v3662_v52 = vadd.f32 %v3661_v48, %v3572_v18  ;;  %v3577_v46 = vpop.f32.mrf.mxu1 }
 0x4cd   : > { %v3751_v39 = vadd.f32 %v3750_v37, %v3662_v52  ;;  %v8256_v52 = vadd.f32 %v8189_v21, %v3748_v59 }
 0x4ce   : > { %3616 = vmatmul.bf16.gmra.mxu1 %v7949_v15 }
 0x4cf   : > { %v3752_v63 = vpop.f32.mrf.mxu3  ;;  %v8264_v10 = vadd.f32 %v3839_v22, %v3751_v39 }
 0x4d1   : > { %v3844_v5 = vpop.f32.mrf.mxu0 }
 0x4d2   : > { %v3663_v27 = vpop.f32.mrf.mxu2 }
 0x4d3   : > { %v3664_v0 = vadd.f32 %v3663_v27, %v3574_v53  ;;  %v3579_v18 = vpop.f32.mrf.mxu1 }
 0x4d4   : > { %3794 = vmatmul.bf16.gmra.mxu3 %v8247_v2  ;;  %3883 = vmatmul.bf16.gmra.mxu0 %v7994_v51 }
 0x4d5   : > { %v3753_v14 = vadd.f32 %v3752_v63, %v3664_v0  ;;  %v5549_v0 = vld [vmem:[%s9019_s2 + $0x230] sm:$0xff] }
 0x4d6   : > { %4246 = vmatpush.bf16.msra.mxu1 %v5549_v0 }
 0x4d7   : > { %v3755_v37 = vpop.f32.mrf.mxu3  ;;  %3705 = vmatmul.bf16.gmra.mxu2 %v8010_v38 }
 0x4d9   : > { %v3846_v60 = vpop.f32.mrf.mxu0 }
 0x4da   : > { %v3666_v20 = vpop.f32.mrf.mxu2 }
 0x4db   : > { %v3667_v48 = vadd.f32 %v3666_v20, %v3577_v46  ;;  %v3582_v27 = vpop.f32.mrf.mxu1  ;;  %v8267_v20 = vadd.f32 %v3841_v25, %v3753_v14 }
 0x4dd   : > { %v3756_v1 = vadd.f32 %v3755_v37, %v3667_v48 }
 0x4de   : > { %3897 = vmatmul.bf16.vlgmr.msrb.gmra.mxu1 %v7796_v16 }
 0x4df   : > { %v3757_v53 = vpop.f32.mrf.mxu3 }
 0x4e1   : > { %v3849_v4 = vpop.f32.mrf.mxu0 }
 0x4e2   : > { %v3668_v2 = vpop.f32.mrf.mxu2 }
 0x4e3   : > { %v3669_v34 = vadd.f32 %v3668_v2, %v3579_v18  ;;  %v3584_v59 = vpop.f32.mrf.mxu1 }
 0x4e4   : > { %4075 = vmatmul.bf16.vlgmr.msra.gmra.mxu3 %v7651_v11  ;;  %4164 = vmatmul.bf16.vlgmr.msra.gmra.mxu0 %v7694_v42 }
 0x4e5   : > { %v3758_v21 = vadd.f32 %v3757_v53, %v3669_v34  ;;  %v8272_v34 = vadd.f32 %v3844_v5, %v3756_v1  ;;  %v5548_v5 = vld [vmem:[%s9019_s2 + $0x228] sm:$0xff] }
 0x4e6   : > { %4247 = vmatpush.bf16.msra.mxu1 %v5548_v5 }
 0x4e7   : > { %v3760_v46 = vpop.f32.mrf.mxu3  ;;  %3986 = vmatmul.bf16.vlgmr.msra.gmra.mxu2 %v7771_v44 }
 0x4e9   : > { %v3851_v16 = vpop.f32.mrf.mxu0 }
 0x4ea   : > { %v3671_v63 = vpop.f32.mrf.mxu2 }
 0x4eb   : > { %v3672_v37 = vadd.f32 %v3671_v63, %v3582_v27  ;;  %v3587_v18 = vpop.f32.mrf.mxu1  ;;  %v8275_v63 = vadd.f32 %v3846_v60, %v3758_v21 }
 0x4ed   : > { %v3761_v2 = vadd.f32 %v3760_v46, %v3672_v37 }
 0x4ee   : > { %3902 = vmatmul.bf16.gmra.mxu1 %v7694_v42 }
 0x4ef   : > { %v3762_v11 = vpop.f32.mrf.mxu3 }
 0x4f1   : > { %v3854_v48 = vpop.f32.mrf.mxu0 }
 0x4f2   : > { %v3673_v51 = vpop.f32.mrf.mxu2 }
 0x4f3   : > { %v3674_v22 = vadd.f32 %v3673_v51, %v3584_v59  ;;  %v3589_v53 = vpop.f32.mrf.mxu1 }
 0x4f4   : > { %4080 = vmatmul.bf16.gmra.mxu3 %v7889_v32  ;;  %4169 = vmatmul.bf16.gmra.mxu0 %v8005_v57 }
 0x4f5   : > { %v3763_v39 = vadd.f32 %v3762_v11, %v3674_v22  ;;  %v8283_v11 = vadd.f32 %v3849_v4, %v3761_v2 }
 0x4f7   : > { %v3765_v44 = vpop.f32.mrf.mxu3  ;;  %3991 = vmatmul.bf16.gmra.mxu2 %v7667_v19 }
 0x4f9   : > { %v3856_v27 = vpop.f32.mrf.mxu0 }
 0x4fa   : > { %v3676_v0 = vpop.f32.mrf.mxu2 }
 0x4fb   : > { %v3677_v25 = vadd.f32 %v3676_v0, %v3587_v18  ;;  %v3592_v46 = vpop.f32.mrf.mxu1 }
 0x4fd   : > { %v3766_v14 = vadd.f32 %v3765_v44, %v3677_v25  ;;  %v8286_v44 = vadd.f32 %v3851_v16, %v3763_v39 }
 0x4fe   : > { %3907 = vmatmul.bf16.gmra.mxu1 %v8005_v57 }
 0x4ff   : > { %v3767_v42 = vpop.f32.mrf.mxu3 }
 0x501   : > { %v3859_v32 = vpop.f32.mrf.mxu0 }
 0x502   : > { %v3678_v51 = vpop.f32.mrf.mxu2 }
 0x503   : > { %v3679_v59 = vadd.f32 %v3678_v51, %v3589_v53  ;;  %v3594_v37 = vpop.f32.mrf.mxu1 }
 0x504   : > { %4085 = vmatmul.bf16.gmra.mxu3 %v7700_v50  ;;  %4174 = vmatmul.bf16.gmra.mxu0 %v7754_v62 }
 0x505   : > { %v3768_v1 = vadd.f32 %v3767_v42, %v3679_v59  ;;  %v8291_v59 = vadd.f32 %v3854_v48, %v3766_v14  ;;  %v5547_v48 = vld [vmem:[%s9019_s2 + $0x220] sm:$0xff] }
 0x506   : > { %4248 = vmatpush.bf16.msra.mxu1 %v5547_v48 }
 0x507   : > { %v3770_v18 = vpop.f32.mrf.mxu3  ;;  %3996 = vmatmul.bf16.gmra.mxu2 %v7985_v31 }
 0x509   : > { %v3861_v57 = vpop.f32.mrf.mxu0 }
 0x50a   : > { %v3681_v60 = vpop.f32.mrf.mxu2 }
 0x50b   : > { %v3682_v21 = vadd.f32 %v3681_v60, %v3592_v46  ;;  %v3597_v53 = vpop.f32.mrf.mxu1  ;;  %v8294_v60 = vadd.f32 %v3856_v27, %v3768_v1 }
 0x50d   : > { %v3771_v22 = vadd.f32 %v3770_v18, %v3682_v21 }
 0x50e   : > { %3912 = vmatmul.bf16.gmra.mxu1 %v7754_v62 }
 0x50f   : > { %v3772_v50 = vpop.f32.mrf.mxu3 }
 0x511   : > { %v3864_v0 = vpop.f32.mrf.mxu0 }
 0x512   : > { %v3683_v25 = vpop.f32.mrf.mxu2 }
 0x513   : > { %v3684_v42 = vadd.f32 %v3683_v25, %v3594_v37  ;;  %v3599_v2 = vpop.f32.mrf.mxu1  ;;  %v8302_v25 = vadd.f32 %v3859_v32, %v3771_v22 }
 0x514   : > { %4090 = vmatmul.bf16.gmra.mxu3 %v7719_v61  ;;  %4179 = vmatmul.bf16.gmra.mxu0 %v7776_v3 }
 0x515   : > { %v3773_v4 = vadd.f32 %v3772_v50, %v3684_v42 }
 0x517   : > { %v3775_v51 = vpop.f32.mrf.mxu3  ;;  %4001 = vmatmul.bf16.gmra.mxu2 %v8019_v33 }
 0x519   : > { %v3866_v46 = vpop.f32.mrf.mxu0 }
 0x51a   : > { %v3686_v5 = vpop.f32.mrf.mxu2 }
 0x51b   : > { %v3687_v16 = vadd.f32 %v3686_v5, %v3597_v53  ;;  %v3602_v18 = vpop.f32.mrf.mxu1 }
 0x51d   : > { %v3776_v39 = vadd.f32 %v3775_v51, %v3687_v16  ;;  %v8305_v51 = vadd.f32 %v3861_v57, %v3773_v4 }
 0x51e   : > { %3917 = vmatmul.bf16.gmra.mxu1 %v7776_v3 }
 0x51f   : > { %v3777_v62 = vpop.f32.mrf.mxu3 }
 0x521   : > { %v3869_v61 = vpop.f32.mrf.mxu0 }
 0x522   : > { %v3688_v37 = vpop.f32.mrf.mxu2 }
 0x523   : > { %v3689_v21 = vadd.f32 %v3688_v37, %v3599_v2  ;;  %v3604_v53 = vpop.f32.mrf.mxu1 }
 0x524   : > { %4095 = vmatmul.bf16.gmra.mxu3 %v7738_v58  ;;  %4184 = vmatmul.bf16.gmra.mxu0 %v7803_v43 }
 0x525   : > { %v3778_v14 = vadd.f32 %v3777_v62, %v3689_v21  ;;  %v8310_v21 = vadd.f32 %v3864_v0, %v3776_v39  ;;  %v5546_v0 = vld [vmem:[%s9019_s2 + $0x218] sm:$0xff] }
 0x526   : > { %4249 = vmatpush.bf16.msra.mxu1 %v5546_v0 }
 0x527   : > { %v3780_v50 = vpop.f32.mrf.mxu3  ;;  %4006 = vmatmul.bf16.gmra.mxu2 %v8031_v56 }
 0x529   : > { %v3871_v3 = vpop.f32.mrf.mxu0 }
 0x52a   : > { %v3691_v27 = vpop.f32.mrf.mxu2 }
 0x52b   : > { %v3692_v1 = vadd.f32 %v3691_v27, %v3602_v18  ;;  %v3607_v2 = vpop.f32.mrf.mxu1  ;;  %v8313_v27 = vadd.f32 %v3866_v46, %v3778_v14 }
 0x52d   : > { %v3781_v42 = vadd.f32 %v3780_v50, %v3692_v1 }
 0x52e   : > { %3922 = vmatmul.bf16.gmra.mxu1 %v7803_v43 }
 0x52f   : > { %v3782_v58 = vpop.f32.mrf.mxu3 }
 0x531   : > { %v3874_v5 = vpop.f32.mrf.mxu0 }
 0x532   : > { %v3693_v16 = vpop.f32.mrf.mxu2 }
 0x533   : > { %v3694_v62 = vadd.f32 %v3693_v16, %v3604_v53  ;;  %v3609_v22 = vpop.f32.mrf.mxu1  ;;  %v8321_v16 = vadd.f32 %v3869_v61, %v3781_v42 }
 0x534   : > { %4100 = vmatmul.bf16.gmra.mxu3 %v7759_v8  ;;  %4189 = vmatmul.bf16.gmra.mxu0 %v7826_v55 }
 0x535   : > { %v3783_v32 = vadd.f32 %v3782_v58, %v3694_v62 }
 0x537   : > { %v3785_v37 = vpop.f32.mrf.mxu3  ;;  %4011 = vmatmul.bf16.gmra.mxu2 %v8040_v28 }
 0x539   : > { %v3876_v18 = vpop.f32.mrf.mxu0 }
 0x53a   : > { %v3696_v48 = vpop.f32.mrf.mxu2 }
 0x53b   : > { %v3697_v57 = vadd.f32 %v3696_v48, %v3607_v2  ;;  %v3612_v50 = vpop.f32.mrf.mxu1 }
 0x53d   : > { %v3786_v4 = vadd.f32 %v3785_v37, %v3697_v57  ;;  %v8324_v37 = vadd.f32 %v3871_v3, %v3783_v32 }
 0x53e   : > { %3927 = vmatmul.bf16.gmra.mxu1 %v7826_v55 }
 0x53f   : > { %v3787_v43 = vpop.f32.mrf.mxu3  ;;  %v8329_v0 = vadd.f32 %v3874_v5, %v3786_v4  ;;  %v5545_v5 = vld [vmem:[%s9019_s2 + $0x210] sm:$0xff] }
 0x540   : > { %4250 = vmatpush.bf16.msra.mxu1 %v5545_v5  ;;  %v9310_v5 = vld [vmem:[#allocation10_spill] sm:$0xff] }
 0x541   : > { %v3879_v8 = vpop.f32.mrf.mxu0 }
 0x542   : > { %v3698_v53 = vpop.f32.mrf.mxu2 }
 0x543   : > { %v3699_v1 = vadd.f32 %v3698_v53, %v3609_v22  ;;  %v3614_v2 = vpop.f32.mrf.mxu1  ;;  %v9306_v53 = vld [vmem:[#allocation7_spill] sm:$0xff] }
 0x544   : > { %4105 = vmatmul.bf16.gmra.mxu3 %v7782_v29  ;;  %4194 = vmatmul.bf16.gmra.mxu0 %v7856_v30 }
 0x545   : > { %v3788_v39 = vadd.f32 %v3787_v43, %v3699_v1 }
 0x547   : > { %v3790_v58 = vpop.f32.mrf.mxu3  ;;  %4016 = vmatmul.bf16.gmra.mxu2 %v8052_v24 }
 0x549   : > { %v3881_v55 = vpop.f32.mrf.mxu0 }
 0x54a   : > { %v3701_v46 = vpop.f32.mrf.mxu2 }
 0x54b   : > { %v3702_v14 = vadd.f32 %v3701_v46, %v3612_v50  ;;  %v3617_v22 = vpop.f32.mrf.mxu1  ;;  %v9307_v50 = vld [vmem:[#allocation33_spill] sm:$0xff] }
 0x54d   : > { %v3791_v62 = vadd.f32 %v3790_v58, %v3702_v14 }
 0x54e   : > { %3932 = vmatmul.bf16.gmra.mxu1 %v7856_v30 }
 0x54f   : > { %v3792_v29 = vpop.f32.mrf.mxu3 }
 0x551   : > { %v3884_v48 = vpop.f32.mrf.mxu0 }
 0x552   : > { %v3703_v57 = vpop.f32.mrf.mxu2 }
 0x553   : > { %v3704_v43 = vadd.f32 %v3703_v57, %v3614_v2  ;;  %v3619_v42 = vpop.f32.mrf.mxu1  ;;  %v8333_v2 = vadd.f32 %v3876_v18, %v3788_v39  ;;  %v8342_v18 = vadd.f32 %v3879_v8, %v3791_v62 }
 0x554   : > { %4110 = vmatmul.bf16.gmra.mxu3 %v9306_v53  ;;  %4199 = vmatmul.bf16.gmra.mxu0 %v7878_v54  ;;  %v9308_v53 = vld [vmem:[#allocation46_spill] sm:$0xff] }
 0x555   : > { %v3793_v61 = vadd.f32 %v3792_v29, %v3704_v43 }
 0x557   : > { %v3795_v1 = vpop.f32.mrf.mxu3  ;;  %4021 = vmatmul.bf16.gmra.mxu2 %v9307_v50  ;;  %v8346_v50 = vadd.f32 %v3881_v55, %v3793_v61 }
 0x559   : > { %v3886_v58 = vpop.f32.mrf.mxu0 }
 0x55a   : > { %v3706_v46 = vpop.f32.mrf.mxu2 }
 0x55b   : > { %v3707_v3 = vadd.f32 %v3706_v46, %v3617_v22  ;;  %v3898_v14 = vpop.f32.mrf.mxu1 }
 0x55c   : > { %v3899_v30 = vadd.f32 %v3898_v14, %v8089_v36 }
 0x55d   : > { %v3796_v32 = vadd.f32 %v3795_v1, %v3707_v3 }
 0x55e   : > { %3937 = vmatmul.bf16.gmra.mxu1 %v7878_v54  ;;  %v9309_v54 = vld [vmem:[#allocation34_spill] sm:$0xff] }
 0x55f   : > { %v3797_v24 = vpop.f32.mrf.mxu3 }
 0x561   : > { %v4165_v57 = vpop.f32.mrf.mxu0 }
 0x562   : > { %v3708_v29 = vpop.f32.mrf.mxu2 }
 0x563   : > { %v3709_v43 = vadd.f32 %v3708_v29, %v3619_v42  ;;  %v3900_v22 = vpop.f32.mrf.mxu1 }
 0x564   : > { %4115 = vmatmul.bf16.gmra.mxu3 %v9308_v53  ;;  %4204 = vmatmul.bf16.gmra.mxu0 %v7911_v17  ;;  %v3901_v36 = vadd.f32 %v3900_v22, %v8092_v40 }
 0x565   : > { %v3798_v4 = vadd.f32 %v3797_v24, %v3709_v43 }
 0x567   : > { %v4076_v1 = vpop.f32.mrf.mxu3  ;;  %4026 = vmatmul.bf16.gmra.mxu2 %v9309_v54 }
 0x569   : > { %v4167_v39 = vpop.f32.mrf.mxu0 }
 0x56a   : > { %v3987_v42 = vpop.f32.mrf.mxu2 }
 0x56b   : > { %v3988_v46 = vadd.f32 %v3987_v42, %v3899_v30  ;;  %v3903_v14 = vpop.f32.mrf.mxu1 }
 0x56c   : > { %v3904_v29 = vadd.f32 %v3903_v14, %v8104_v47  ;;  %v9311_v47 = vld [vmem:[#allocation23_spill] sm:$0xff] }
 0x56d   : > { %v4077_v3 = vadd.f32 %v4076_v1, %v3988_v46  ;;  %v8352_v1 = vadd.f32 %v3884_v48, %v3796_v32 }
 0x56e   : > { %3942 = vmatmul.bf16.gmra.mxu1 %v7911_v17 }
 0x56f   : > { %v4078_v53 = vpop.f32.mrf.mxu3 }
 0x571   : > { %v4170_v24 = vpop.f32.mrf.mxu0 }
 0x572   : > { %v3989_v40 = vpop.f32.mrf.mxu2 }
 0x573   : > { %v3990_v43 = vadd.f32 %v3989_v40, %v3901_v36  ;;  %v3905_v62 = vpop.f32.mrf.mxu1  ;;  %v8356_v40 = vadd.f32 %v3886_v58, %v3798_v4  ;;  %v8365_v58 = vadd.f32 %v4165_v57, %v4077_v3  ;;  %v9314_v57 = vld [vmem:[#allocation19_spill] sm:$0xff] }
 0x574   : > { %4120 = vmatmul.bf16.gmra.mxu3 %v9310_v5  ;;  %4209 = vmatmul.bf16.gmra.mxu0 %v7930_v26  ;;  %v3906_v30 = vadd.f32 %v3905_v62, %v8109_v6  ;;  %v5544_v6 = vld [vmem:[%s9019_s2 + $0x208] sm:$0xff] }
 0x575   : > { %v4079_v8 = vadd.f32 %v4078_v53, %v3990_v43  ;;  %4251 = vmatpush.bf16.msra.mxu1 %v5544_v6 }
 0x577   : > { %v4081_v22 = vpop.f32.mrf.mxu3  ;;  %4031 = vmatmul.bf16.gmra.mxu2 %v9311_v47 }
 0x579   : > { %v4172_v61 = vpop.f32.mrf.mxu0 }
 0x57a   : > { %v3992_v55 = vpop.f32.mrf.mxu2 }
 0x57b   : > { %v3993_v42 = vadd.f32 %v3992_v55, %v3904_v29  ;;  %v3908_v46 = vpop.f32.mrf.mxu1 }
 0x57c   : > { %v3909_v36 = vadd.f32 %v3908_v46, %v8127_v45 }
 0x57d   : > { %v4082_v17 = vadd.f32 %v4081_v22, %v3993_v42  ;;  %v8369_v42 = vadd.f32 %v4167_v39, %v4079_v8 }
 0x57e   : > { %3947 = vmatmul.bf16.gmra.mxu1 %v7930_v26  ;;  %v9312_v26 = vld [vmem:[#allocation21_spill] sm:$0xff] }
 0x57f   : > { %v4083_v14 = vpop.f32.mrf.mxu3 }
 0x581   : > { %v4175_v48 = vpop.f32.mrf.mxu0 }
 0x582   : > { %v3994_v53 = vpop.f32.mrf.mxu2 }
 0x583   : > { %v3995_v43 = vadd.f32 %v3994_v53, %v3906_v30  ;;  %v3910_v29 = vpop.f32.mrf.mxu1  ;;  %v9313_v53 = vld [vmem:[#allocation11_spill] sm:$0xff] }
 0x584   : > { %4125 = vmatmul.bf16.gmra.mxu3 %v7884_v7  ;;  %4214 = vmatmul.bf16.gmra.mxu0 %v7958_v23  ;;  %v3911_v45 = vadd.f32 %v3910_v29, %v8147_v49  ;;  %v8375_v29 = vadd.f32 %v4170_v24, %v4082_v17  ;;  %v9317_v24 = vld [vmem:[#allocation12_spill] sm:$0xff]  ;;  %v5543_v17 = vld [vmem:[%s9019_s2 + $0x200] sm:$0xff] }
 0x585   : > { %v4084_v32 = vadd.f32 %v4083_v14, %v3995_v43  ;;  %4252 = vmatpush.bf16.msra.mxu1 %v5543_v17 }
 0x587   : > { %v4086_v5 = vpop.f32.mrf.mxu3  ;;  %4036 = vmatmul.bf16.gmra.mxu2 %v9312_v26 }
 0x589   : > { %v4177_v46 = vpop.f32.mrf.mxu0 }
 0x58a   : > { %v3997_v4 = vpop.f32.mrf.mxu2 }
 0x58b   : > { %v3998_v62 = vadd.f32 %v3997_v4, %v3909_v36  ;;  %v3913_v30 = vpop.f32.mrf.mxu1 }
 0x58c   : > { %v3914_v22 = vadd.f32 %v3913_v30, %v8180_v9  ;;  %v9315_v9 = vld [vmem:[#allocation16_spill] sm:$0xff]  ;;  %v8379_v30 = vadd.f32 %v4172_v61, %v4084_v32 }
 0x58d   : > { %v4087_v7 = vadd.f32 %v4086_v5, %v3998_v62  ;;  %v9318_v32 = vld [vmem:[#allocation24_spill] sm:$0xff] }
 0x58e   : > { %3952 = vmatmul.bf16.gmra.mxu1 %v7958_v23 }
 0x58f   : > { %v4088_v55 = vpop.f32.mrf.mxu3  ;;  %v8388_v61 = vadd.f32 %v4175_v48, %v4087_v7 }
 0x591   : > { %v4180_v39 = vpop.f32.mrf.mxu0 }
 0x592   : > { %v3999_v14 = vpop.f32.mrf.mxu2 }
 0x593   : > { %v4000_v49 = vadd.f32 %v3999_v14, %v3911_v45  ;;  %v3915_v43 = vpop.f32.mrf.mxu1 }
 0x594   : > { %4130 = vmatmul.bf16.gmra.mxu3 %v9313_v53  ;;  %4219 = vmatmul.bf16.gmra.mxu0 %v9314_v57  ;;  %v3916_v36 = vadd.f32 %v3915_v43, %v8204_v41 }
 0x595   : > { %v4089_v3 = vadd.f32 %v4088_v55, %v4000_v49  ;;  %v9316_v49 = vld [vmem:[#allocation18_spill] sm:$0xff] }
 0x597   : > { %v4091_v6 = vpop.f32.mrf.mxu3  ;;  %4041 = vmatmul.bf16.gmra.mxu2 %v9315_v9 }
 0x599   : > { %v4182_v14 = vpop.f32.mrf.mxu0 }
 0x59a   : > { %v4002_v8 = vpop.f32.mrf.mxu2 }
 0x59b   : > { %v4003_v5 = vadd.f32 %v4002_v8, %v3914_v22  ;;  %v3918_v23 = vpop.f32.mrf.mxu1 }
 0x59c   : > { %v3919_v45 = vadd.f32 %v3918_v23, %v8234_v13 }
 0x59d   : > { %v4092_v4 = vadd.f32 %v4091_v6, %v4003_v5 }
 0x59e   : > { %3957 = vmatmul.bf16.gmra.mxu1 %v9314_v57 }
 0x59f   : > { %v4093_v62 = vpop.f32.mrf.mxu3  ;;  %v8398_v17 = vadd.f32 %v4180_v39, %v4092_v4  ;;  %v9321_v39 = vld [vmem:[#allocation15_spill] sm:$0xff] }
 0x5a1   : > { %v4185_v6 = vpop.f32.mrf.mxu0 }
 0x5a2   : > { %v4004_v55 = vpop.f32.mrf.mxu2 }
 0x5a3   : > { %v4005_v41 = vadd.f32 %v4004_v55, %v3916_v36  ;;  %v3920_v53 = vpop.f32.mrf.mxu1 }
 0x5a4   : > { %4135 = vmatmul.bf16.gmra.mxu3 %v9316_v49  ;;  %4224 = vmatmul.bf16.gmra.mxu0 %v9317_v24  ;;  %v3921_v13 = vadd.f32 %v3920_v53, %v8241_v35  ;;  %v8392_v49 = vadd.f32 %v4177_v46, %v4089_v3 }
 0x5a5   : > { %v4094_v22 = vadd.f32 %v4093_v62, %v4005_v41 }
 0x5a7   : > { %v4096_v43 = vpop.f32.mrf.mxu3  ;;  %4046 = vmatmul.bf16.gmra.mxu2 %v9318_v32 }
 0x5a9   : > { %v4187_v53 = vpop.f32.mrf.mxu0 }
 0x5aa   : > { %v4007_v57 = vpop.f32.mrf.mxu2 }
 0x5ab   : > { %v4008_v36 = vadd.f32 %v4007_v57, %v3919_v45  ;;  %v3923_v5 = vpop.f32.mrf.mxu1 }
 0x5ac   : > { %v3924_v23 = vadd.f32 %v3923_v5, %v8252_v12  ;;  %v9319_v12 = vld [vmem:[#allocation22_spill] sm:$0xff] }
 0x5ad   : > { %v4097_v8 = vadd.f32 %v4096_v43, %v4008_v36  ;;  %v8402_v36 = vadd.f32 %v4182_v14, %v4094_v22 }
 0x5ae   : > { %3962 = vmatmul.bf16.gmra.mxu1 %v9317_v24 }
 0x5af   : > { %v4098_v55 = vpop.f32.mrf.mxu3 }
 0x5b1   : > { %v4190_v5 = vpop.f32.mrf.mxu0 }
 0x5b2   : > { %v4009_v62 = vpop.f32.mrf.mxu2 }
 0x5b3   : > { %v4010_v35 = vadd.f32 %v4009_v62, %v3921_v13  ;;  %v3925_v7 = vpop.f32.mrf.mxu1  ;;  %v9320_v62 = vld [vmem:[#allocation13_spill] sm:$0xff] }
 0x5b4   : > { %4140 = vmatmul.bf16.gmra.mxu3 %v7949_v15  ;;  %4229 = vmatmul.bf16.gmra.mxu0 %v8010_v38  ;;  %v3926_v45 = vadd.f32 %v3925_v7, %v8256_v52 }
 0x5b5   : > { %v4099_v48 = vadd.f32 %v4098_v55, %v4010_v35 }
 0x5b7   : > { %v4101_v41 = vpop.f32.mrf.mxu3  ;;  %4051 = vmatmul.bf16.gmra.mxu2 %v9319_v12  ;;  %v8412_v12 = vadd.f32 %v4187_v53, %v4099_v48 }
 0x5b9   : > { %v4192_v22 = vpop.f32.mrf.mxu0 }
 0x5ba   : > { %v4012_v46 = vpop.f32.mrf.mxu2 }
 0x5bb   : > { %v4013_v3 = vadd.f32 %v4012_v46, %v3924_v23  ;;  %v3928_v24 = vpop.f32.mrf.mxu1 }
 0x5bc   : > { %v3929_v13 = vadd.f32 %v3928_v24, %v8264_v10  ;;  %v9322_v10 = vld [vmem:[#allocation25_spill] sm:$0xff] }
 0x5bd   : > { %v4102_v43 = vadd.f32 %v4101_v41, %v4013_v3  ;;  %v8408_v41 = vadd.f32 %v4185_v6, %v4097_v8  ;;  %v9323_v6 = vld [vmem:[#allocation14_spill] sm:$0xff] }
 0x5be   : > { %3967 = vmatmul.bf16.gmra.mxu1 %v8010_v38  ;;  %v3098_v8 = vrot.slane %v9323_v6, 1 }
 0x5bf   : > { %v4103_v57 = vpop.f32.mrf.mxu3  ;;  %v8423_v53 = vadd.f32 %v4190_v5, %v4102_v43 }
 0x5c2   : > { %v4014_v55 = vpop.f32.mrf.mxu2 }
 0x5c3   : > { %v4015_v52 = vadd.f32 %v4014_v55, %v3926_v45  ;;  %v3930_v35 = vpop.f32.mrf.mxu1 }
 0x5c4   : > { %4145 = vmatmul.bf16.gmra.mxu3 %v9320_v62  ;;  %4234 = vmatmul.bf16.gmra.mxu0 %v9321_v39  ;;  %v3931_v23 = vadd.f32 %v3930_v35, %v8267_v20  ;;  %v3097_v20 = vrot.slane %v9320_v62, 1 }
 0x5c5   : > { %v4104_v4 = vadd.f32 %v4103_v57, %v4015_v52 }
 0x5c6   : > { %v8421_v48 = vsel %vm415_vm0, %v3097_v20, %v3098_v8 }
 0x5c7   : > { %v4106_v7 = vpop.f32.mrf.mxu3  ;;  %4056 = vmatmul.bf16.gmra.mxu2 %v9322_v10 }
 0x5ca   : > { %v4017_v14 = vpop.f32.mrf.mxu2 }
 0x5cb   : > { %v4018_v46 = vadd.f32 %v4017_v14, %v3929_v13  ;;  %v3933_v24 = vpop.f32.mrf.mxu1  ;;  %v4195_v13 = vpop.f32.mrf.mxu0 }
 0x5cc   : > { %v3934_v45 = vadd.f32 %v3933_v24, %v8272_v34  ;;  %v8427_v24 = vadd.f32 %v4192_v22, %v4104_v4 }
 0x5cd   : > { %v4107_v3 = vadd.f32 %v4106_v7, %v4018_v46 }
 0x5ce   : > { %3972 = vmatmul.bf16.gmra.mxu1 %v9321_v39 }
 0x5cf   : > { %v4108_v55 = vpop.f32.mrf.mxu3  ;;  %v8431_v6 = vadd.f32 %v4195_v13, %v4107_v3 }
 0x5d2   : > { %v4019_v57 = vpop.f32.mrf.mxu2 }
 0x5d3   : > { %v4020_v52 = vadd.f32 %v4019_v57, %v3931_v23  ;;  %v3935_v7 = vpop.f32.mrf.mxu1 }
 0x5d4   : > { %4150 = vmatmul.bf16.gmra.mxu3 %v7949_v15  ;;  %4239 = vmatmul.bf16.gmra.mxu0 %v8010_v38  ;;  %v3936_v34 = vadd.f32 %v3935_v7, %v8275_v63 }
 0x5d5   : > { %v4109_v35 = vadd.f32 %v4108_v55, %v4020_v52  ;;  %v4197_v55 = vpop.f32.mrf.mxu0 }
 0x5d7   : > { %v4111_v14 = vpop.f32.mrf.mxu3  ;;  %4061 = vmatmul.bf16.gmra.mxu2 %v8421_v48 }
 0x5da   : > { %v4022_v62 = vpop.f32.mrf.mxu2 }
 0x5db   : > { %v4023_v39 = vadd.f32 %v4022_v62, %v3934_v45  ;;  %v3938_v23 = vpop.f32.mrf.mxu1  ;;  %v8434_v62 = vadd.f32 %v4197_v55, %v4109_v35 }
 0x5dc   : > { %v3939_v38 = vadd.f32 %v3938_v23, %v8283_v11 }
 0x5dd   : > { %v4112_v15 = vadd.f32 %v4111_v14, %v4023_v39  ;;  %v4200_v45 = vpop.f32.mrf.mxu0 }
 0x5de   : > { %4253 = vmatmul.bf16.vlgmr.msra.gmra.mxu1 %v7667_v19 }
 0x5df   : > { %v4113_v46 = vpop.f32.mrf.mxu3  ;;  %v8438_v13 = vadd.f32 %v4200_v45, %v4112_v15 }
 0x5e2   : > { %v4024_v63 = vpop.f32.mrf.mxu2 }
 0x5e3   : > { %v4025_v57 = vadd.f32 %v4024_v63, %v3936_v34  ;;  %v3940_v52 = vpop.f32.mrf.mxu1 }
 0x5e4   : > { %v3941_v43 = vadd.f32 %v3940_v52, %v8286_v44 }
 0x5e5   : > { %v4114_v20 = vadd.f32 %v4113_v46, %v4025_v57  ;;  %v4202_v34 = vpop.f32.mrf.mxu0 }
 0x5e7   : > { %v4116_v5 = vpop.f32.mrf.mxu3  ;;  %v8441_v55 = vadd.f32 %v4202_v34, %v4114_v20 }
 0x5ea   : > { %v4027_v8 = vpop.f32.mrf.mxu2 }
 0x5eb   : > { %v4028_v7 = vadd.f32 %v4027_v8, %v3939_v38  ;;  %v3943_v11 = vpop.f32.mrf.mxu1 }
 0x5ec   : > { %v3944_v4 = vadd.f32 %v3943_v11, %v8291_v59 }
 0x5ed   : > { %v4117_v14 = vadd.f32 %v4116_v5, %v4028_v7  ;;  %v4205_v57 = vpop.f32.mrf.mxu0 }
 0x5ee   : > { %4258 = vmatmul.bf16.gmra.mxu1 %v7985_v31 }
 0x5ef   : > { %v4118_v22 = vpop.f32.mrf.mxu3  ;;  %v8447_v15 = vadd.f32 %v4205_v57, %v4117_v14 }
 0x5f2   : > { %v4029_v19 = vpop.f32.mrf.mxu2 }
 0x5f3   : > { %v4030_v39 = vadd.f32 %v4029_v19, %v3941_v43  ;;  %v3945_v44 = vpop.f32.mrf.mxu1 }
 0x5f4   : > { %v3946_v3 = vadd.f32 %v3945_v44, %v8294_v60 }
 0x5f5   : > { %v4119_v23 = vadd.f32 %v4118_v22, %v4030_v39  ;;  %v4207_v45 = vpop.f32.mrf.mxu0 }
 0x5f7   : > { %v4121_v46 = vpop.f32.mrf.mxu3 }
 0x5fa   : > { %v4032_v38 = vpop.f32.mrf.mxu2 }
 0x5fb   : > { %v4033_v63 = vadd.f32 %v4032_v38, %v3944_v4  ;;  %v3948_v59 = vpop.f32.mrf.mxu1 }
 0x5fc   : > { %v3949_v35 = vadd.f32 %v3948_v59, %v8302_v25 }
 0x5fd   : > { %v4122_v52 = vadd.f32 %v4121_v46, %v4033_v63  ;;  %v4210_v34 = vpop.f32.mrf.mxu0 }
 0x5fe   : > { %4263 = vmatmul.bf16.gmra.mxu1 %v8019_v33  ;;  %v8452_v33 = vadd.f32 %v4207_v45, %v4119_v23 }
 0x5ff   : > { %v4123_v31 = vpop.f32.mrf.mxu3  ;;  %v8458_v14 = vadd.f32 %v4210_v34, %v4122_v52  ;;  %v9324_v52 = vld [vmem:[#allocation17_spill] sm:$0xff] }
 0x602   : > { %v4034_v43 = vpop.f32.mrf.mxu2 }
 0x603   : > { %v4035_v5 = vadd.f32 %v4034_v43, %v3946_v3  ;;  %v3950_v7 = vpop.f32.mrf.mxu1 }
 0x604   : > { %v8445_v60 = vadd.f32 %v3950_v7, %v8305_v51 }
 0x605   : > { %v4124_v8 = vadd.f32 %v4123_v31, %v4035_v5  ;;  %v4212_v44 = vpop.f32.mrf.mxu0  ;;  %v9325_v31 = vld [vmem:[#allocation33_spill] sm:$0xff] }
 0x607   : > { %v4126_v22 = vpop.f32.mrf.mxu3  ;;  %v8463_v38 = vadd.f32 %v4212_v44, %v4124_v8 }
 0x60a   : > { %v4037_v11 = vpop.f32.mrf.mxu2 }
 0x60b   : > { %v4038_v4 = vadd.f32 %v4037_v11, %v3949_v35  ;;  %v3953_v25 = vpop.f32.mrf.mxu1 }
 0x60c   : > { %v8450_v20 = vadd.f32 %v3953_v25, %v8310_v21  ;;  %v9326_v25 = vld [vmem:[#allocation22_spill] sm:$0xff] }
 0x60d   : > { %v4127_v19 = vadd.f32 %v4126_v22, %v4038_v4  ;;  %v4215_v21 = vpop.f32.mrf.mxu0 }
 0x60e   : > { %4268 = vmatmul.bf16.gmra.mxu1 %v8031_v56 }
 0x60f   : > { %v8469_v63 = vadd.f32 %v4215_v21, %v4127_v19 }
 0x613   : > { %v3955_v39 = vpop.f32.mrf.mxu1 }
 0x614   : > { %v8456_v51 = vadd.f32 %v3955_v39, %v8313_v27 }
 0x61b   : > { %v3958_v3 = vpop.f32.mrf.mxu1 }
 0x61c   : > { %v8461_v46 = vadd.f32 %v3958_v3, %v8321_v16 }
 0x61e   : > { %4273 = vmatmul.bf16.gmra.mxu1 %v8040_v28 }
 0x623   : > { %v3960_v23 = vpop.f32.mrf.mxu1 }
 0x624   : > { %v8467_v56 = vadd.f32 %v3960_v23, %v8324_v37 }
 0x62b   : > { %v3963_v27 = vpop.f32.mrf.mxu1 }
 0x62c   : > { %v8472_v57 = vadd.f32 %v3963_v27, %v8329_v0  ;;  %v4039_v27 = vpop.f32.mrf.mxu2 }
 0x62e   : > { %4278 = vmatmul.bf16.gmra.mxu1 %v9324_v52 }
 0x633   : > { %v3965_v59 = vpop.f32.mrf.mxu1 }
 0x634   : > { %v8476_v16 = vadd.f32 %v3965_v59, %v8333_v2 }
 0x63b   : > { %v3968_v35 = vpop.f32.mrf.mxu1 }
 0x63c   : > { %v8479_v28 = vadd.f32 %v3968_v35, %v8342_v18  ;;  %v4217_v35 = vpop.f32.mrf.mxu0 }
 0x63e   : > { %4283 = vmatmul.bf16.gmra.mxu1 %v9325_v31 }
 0x643   : > { %v3970_v37 = vpop.f32.mrf.mxu1 }
 0x644   : > { %v8483_v43 = vadd.f32 %v3970_v37, %v8346_v50 }
 0x64b   : > { %v3973_v5 = vpop.f32.mrf.mxu1 }
 0x64c   : > { %v8486_v0 = vadd.f32 %v3973_v5, %v8352_v1  ;;  %v4220_v5 = vpop.f32.mrf.mxu0 }
 0x64e   : > { %4288 = vmatmul.bf16.gmra.mxu1 %v9309_v54 }
 0x653   : > { %v3975_v8 = vpop.f32.mrf.mxu1 }
 0x654   : > { %v8490_v2 = vadd.f32 %v3975_v8, %v8356_v40 }
 0x65b   : > { %v4254_v7 = vpop.f32.mrf.mxu1 }
 0x65c   : > { %v8493_v18 = vadd.f32 %v4254_v7, %v8365_v58 }
 0x65e   : > { %4293 = vmatmul.bf16.gmra.mxu1 %v9311_v47 }
 0x663   : > { %v4256_v45 = vpop.f32.mrf.mxu1 }
 0x664   : > { %v8497_v50 = vadd.f32 %v4256_v45, %v8369_v42  ;;  %v4222_v45 = vpop.f32.mrf.mxu0 }
 0x66b   : > { %v4259_v11 = vpop.f32.mrf.mxu1 }
 0x66c   : > { %v8500_v1 = vadd.f32 %v4259_v11, %v8375_v29 }
 0x66e   : > { %4298 = vmatmul.bf16.gmra.mxu1 %v9312_v26 }
 0x673   : > { %v4261_v54 = vpop.f32.mrf.mxu1 }
 0x674   : > { %v8504_v40 = vadd.f32 %v4261_v54, %v8379_v30  ;;  %v4334_v54 = vadd.f32 %v8497_v50, %v8493_v18 }
 0x67b   : > { %v4264_v4 = vpop.f32.mrf.mxu1 }
 0x67c   : > { %v8507_v58 = vadd.f32 %v4264_v4, %v8388_v61  ;;  %v4335_v4 = vadd.f32 %v4334_v54, %v8500_v1 }
 0x67e   : > { %4303 = vmatmul.bf16.gmra.mxu1 %v9315_v9 }
 0x683   : > { %v4266_v47 = vpop.f32.mrf.mxu1 }
 0x684   : > { %v8511_v42 = vadd.f32 %v4266_v47, %v8392_v49  ;;  %v4336_v47 = vadd.f32 %v4335_v4, %v8504_v40 }
 0x68b   : > { %v4269_v22 = vpop.f32.mrf.mxu1 }
 0x68c   : > { %v8514_v29 = vadd.f32 %v4269_v22, %v8398_v17 }
 0x68e   : > { %4308 = vmatmul.bf16.gmra.mxu1 %v9318_v32 }
 0x693   : > { %v4271_v26 = vpop.f32.mrf.mxu1 }
 0x694   : > { %v8518_v30 = vadd.f32 %v4271_v26, %v8402_v36  ;;  %v4225_v26 = vpop.f32.mrf.mxu0 }
 0x69b   : > { %v4274_v19 = vpop.f32.mrf.mxu1 }
 0x69c   : > { %v8521_v61 = vadd.f32 %v4274_v19, %v8408_v41 }
 0x69e   : > { %4313 = vmatmul.bf16.gmra.mxu1 %v9326_v25 }
 0x6a3   : > { %v4276_v9 = vpop.f32.mrf.mxu1 }
 0x6a4   : > { %v8525_v49 = vadd.f32 %v4276_v9, %v8412_v12 }
 0x6ab   : > { %v4279_v34 = vpop.f32.mrf.mxu1 }
 0x6ac   : > { %v8528_v17 = vadd.f32 %v4279_v34, %v8423_v53 }
 0x6ae   : > { %9327 = vst [vmem:[#allocation26_spill] sm:$0xff] %v8528_v17  ;;  %4318 = vmatmul.bf16.gmra.mxu1 %v9322_v10 }
 0x6b3   : > { %v4281_v32 = vpop.f32.mrf.mxu1 }
 0x6b4   : > { %v8532_v36 = vadd.f32 %v4281_v32, %v8427_v24 }
 0x6bb   : > { %v4284_v39 = vpop.f32.mrf.mxu1 }
 0x6bc   : > { %v8535_v41 = vadd.f32 %v4284_v39, %v8431_v6 }
 0x6be   : > { %9328 = vst [vmem:[#allocation37_spill] sm:$0xff] %v8535_v41  ;;  %4323 = vmatmul.bf16.gmra.mxu1 %v8421_v48 }
 0x6c3   : > { %v4286_v44 = vpop.f32.mrf.mxu1 }
 0x6c4   : > { %v8539_v12 = vadd.f32 %v4286_v44, %v8434_v62  ;;  %v4128_v62 = vpop.f32.mrf.mxu3 }
 0x6c6   : > { %9329 = vst [vmem:[#allocation38_spill] sm:$0xff] %v8539_v12 }
 0x6cb   : > { %v4289_v3 = vpop.f32.mrf.mxu1 }
 0x6cc   : > { %v8542_v53 = vadd.f32 %v4289_v3, %v8438_v13  ;;  %v4131_v31 = vpop.f32.mrf.mxu3 }
 0x6ce   : > { %4328 = vmatmul.bf16.gmra.mxu1 %v9322_v10  ;;  %v4042_v10 = vpop.f32.mrf.mxu2 }
 0x6d3   : > { %v4291_v21 = vpop.f32.mrf.mxu1 }
 0x6d4   : > { %v8546_v24 = vadd.f32 %v4291_v21, %v8441_v55  ;;  %v4227_v21 = vpop.f32.mrf.mxu0 }
 0x6db   : > { %v4294_v23 = vpop.f32.mrf.mxu1 }
 0x6dc   : > { %v8549_v6 = vadd.f32 %v4294_v23, %v8447_v15  ;;  %v4044_v15 = vpop.f32.mrf.mxu2 }
 0x6e3   : > { %v4296_v48 = vpop.f32.mrf.mxu1 }
 0x6e4   : > { %v8552_v52 = vadd.f32 %v4296_v48, %v8452_v33  ;;  %v4133_v33 = vpop.f32.mrf.mxu3  ;;  %v4047_v11 = vpop.f32.mrf.mxu2 }
 0x6eb   : > { %v4299_v59 = vpop.f32.mrf.mxu1 }
 0x6ec   : > { %v8555_v13 = vadd.f32 %v4299_v59, %v8458_v14  ;;  %v4136_v22 = vpop.f32.mrf.mxu3  ;;  %v4049_v25 = vpop.f32.mrf.mxu2 }
 0x6f3   : > { %v4301_v37 = vpop.f32.mrf.mxu1 }
 0x6f4   : > { %v8558_v55 = vadd.f32 %v4301_v37, %v8463_v38  ;;  %v4337_v38 = vadd.f32 %v4336_v47, %v8507_v58  ;;  %v4138_v39 = vpop.f32.mrf.mxu3  ;;  %v4052_v48 = vpop.f32.mrf.mxu2  ;;  %v4040_v47 = vadd.f32 %v4039_v27, %v8445_v60  ;;  %v4050_v27 = vadd.f32 %v4049_v25, %v8467_v56 }
 0x6f6   : > { %v4338_v19 = vadd.f32 %v4337_v38, %v8511_v42 }
 0x6f8   : > { %v4339_v9 = vadd.f32 %v4338_v19, %v8514_v29  ;;  %v4043_v19 = vadd.f32 %v4042_v10, %v8450_v20 }
 0x6fa   : > { %v4340_v34 = vadd.f32 %v4339_v9, %v8518_v30  ;;  %v4230_v9 = vpop.f32.mrf.mxu0 }
 0x6fb   : > { %v4304_v8 = vpop.f32.mrf.mxu1 }
 0x6fc   : > { %v8561_v7 = vadd.f32 %v4304_v8, %v8469_v63  ;;  %v4341_v32 = vadd.f32 %v4340_v34, %v8521_v61  ;;  %v4141_v54 = vpop.f32.mrf.mxu3 }
 0x6fe   : > { %v4342_v44 = vadd.f32 %v4341_v32, %v8525_v49  ;;  %v4054_v32 = vpop.f32.mrf.mxu2 }
 0x700   : > { %v4343_v23 = vadd.f32 %v4342_v44, %v8528_v17  ;;  %v4129_v44 = vadd.f32 %v4128_v62, %v4040_v47  ;;  %v4045_v17 = vadd.f32 %v4044_v15, %v8456_v51  ;;  %v4139_v47 = vadd.f32 %v4138_v39, %v4050_v27 }
 0x702   : > { %v4344_v59 = vadd.f32 %v4343_v23, %v8532_v36  ;;  %v4134_v60 = vadd.f32 %v4133_v33, %v4045_v17  ;;  %v4218_v10 = vadd.f32 %v4217_v35, %v4129_v44  ;;  %v4228_v39 = vadd.f32 %v4227_v21, %v4139_v47 }
 0x703   : > { %v4306_v14 = vpop.f32.mrf.mxu1 }
 0x704   : > { %v4345_v37 = vadd.f32 %v4344_v59, %v8535_v41  ;;  %v4132_v59 = vadd.f32 %v4131_v31, %v4043_v19  ;;  %v8589_v15 = vadd.f32 %v4306_v14, %v4218_v10  ;;  %v4223_v17 = vadd.f32 %v4222_v45, %v4134_v60 }
 0x706   : > { %v4346_v8 = vadd.f32 %v4345_v37, %v8539_v12  ;;  %v4048_v37 = vadd.f32 %v4047_v11, %v8461_v46  ;;  %v4221_v31 = vadd.f32 %v4220_v5, %v4132_v59  ;;  %v4232_v46 = vpop.f32.mrf.mxu0  ;;  %v4057_v33 = vpop.f32.mrf.mxu2 }
 0x708   : > { %v4347_v38 = vadd.f32 %v4346_v8, %v8542_v53  ;;  %v4053_v8 = vadd.f32 %v4052_v48, %v8472_v57  ;;  %v4137_v62 = vadd.f32 %v4136_v22, %v4048_v37 }
 0x70a   : > { %v4348_v34 = vadd.f32 %v4347_v38, %v8546_v24  ;;  %v4143_v38 = vpop.f32.mrf.mxu3  ;;  %v4142_v56 = vadd.f32 %v4141_v54, %v4053_v8  ;;  %v4226_v22 = vadd.f32 %v4225_v26, %v4137_v62 }
 0x70b   : > { %v4309_v63 = vpop.f32.mrf.mxu1 }
 0x70c   : > { %v4349_v23 = vadd.f32 %v4348_v34, %v8549_v6  ;;  %v8592_v19 = vadd.f32 %v4309_v63, %v4221_v31  ;;  %v4231_v45 = vadd.f32 %v4230_v9, %v4142_v56 }
 0x70e   : > { %v4350_v12 = vadd.f32 %v4349_v23, %v8552_v52  ;;  %v4235_v44 = vpop.f32.mrf.mxu0  ;;  %v4059_v59 = vpop.f32.mrf.mxu2 }
 0x710   : > { %v4351_v20 = vadd.f32 %v4350_v12, %v8555_v13  ;;  %v4055_v12 = vadd.f32 %v4054_v32, %v8476_v16 }
 0x712   : > { %v4352_v51 = vadd.f32 %v4351_v20, %v8558_v55  ;;  %v4144_v48 = vadd.f32 %v4143_v38, %v4055_v12  ;;  %v4146_v54 = vpop.f32.mrf.mxu3 }
 0x713   : > { %v4311_v3 = vpop.f32.mrf.mxu1 }
 0x714   : > { %v4353_v11 = vadd.f32 %v4352_v51, %v8561_v7  ;;  %v8596_v35 = vadd.f32 %v4311_v3, %v4223_v17  ;;  %v4058_v3 = vadd.f32 %v4057_v33, %v8479_v28  ;;  %v4233_v23 = vadd.f32 %v4232_v46, %v4144_v48 }
 0x716   : > { %v4354_v57 = vadd.f32 %v4353_v11, %v8589_v15  ;;  %v4147_v60 = vadd.f32 %v4146_v54, %v4058_v3  ;;  %v4237_v38 = vpop.f32.mrf.mxu0  ;;  %v4062_v62 = vpop.f32.mrf.mxu2 }
 0x717   : > { %v4063_v28 = vadd.f32 %v4062_v62, %v8486_v0 }
 0x718   : > { %v4355_v14 = vadd.f32 %v4354_v57, %v8592_v19  ;;  %v4236_v9 = vadd.f32 %v4235_v44, %v4147_v60  ;;  %v9330_v60 = vld [vmem:[#allocation31_spill] sm:$0xff] }
 0x71a   : > { %v4356_v63 = vadd.f32 %v4355_v14, %v8596_v35  ;;  %v4148_v20 = vpop.f32.mrf.mxu3 }
 0x71b   : > { %v4314_v4 = vpop.f32.mrf.mxu1 }
 0x71c   : > { %v8599_v5 = vadd.f32 %v4314_v4, %v4226_v22 }
 0x71e   : > { %v4357_v16 = vadd.f32 %v4356_v63, %v8599_v5  ;;  %v4240_v12 = vpop.f32.mrf.mxu0  ;;  %v4064_v57 = vpop.f32.mrf.mxu2 }
 0x71f   : > { %v4065_v22 = vadd.f32 %v4064_v57, %v8490_v2 }
 0x722   : > { %v4151_v46 = vpop.f32.mrf.mxu3 }
 0x723   : > { %v4316_v41 = vpop.f32.mrf.mxu1  ;;  %v4152_v56 = vadd.f32 %v4151_v46, %v4063_v28 }
 0x724   : > { %v8602_v34 = vadd.f32 %v4316_v41, %v4228_v39  ;;  %v4060_v41 = vadd.f32 %v4059_v59, %v8483_v43 }
 0x725   : > { %v4241_v43 = vadd.f32 %v4240_v12, %v4152_v56 }
 0x726   : > { %v4358_v26 = vadd.f32 %v4357_v16, %v8602_v34  ;;  %v4149_v51 = vadd.f32 %v4148_v20, %v4060_v41 }
 0x728   : > { %v4238_v47 = vadd.f32 %v4237_v38, %v4149_v51 }
 0x72a   : > { %v4153_v39 = vpop.f32.mrf.mxu3 }
 0x72b   : > { %v4319_v25 = vpop.f32.mrf.mxu1  ;;  %v4154_v48 = vadd.f32 %v4153_v39, %v4065_v22 }
 0x72c   : > { %v4320_v32 = vadd.f32 %v4319_v25, %v4231_v45  ;;  %v4242_v45 = vpop.f32.mrf.mxu0 }
 0x72d   : > { %v4243_v54 = vadd.f32 %v4242_v45, %v4154_v48 }
 0x72e   : > { %v4359_v37 = vadd.f32 %v4358_v26, %v4320_v32 }
 0x733   : > { %v4321_v4 = vpop.f32.mrf.mxu1 }
 0x734   : > { %v4322_v21 = vadd.f32 %v4321_v4, %v4233_v23 }
 0x736   : > { %v4360_v27 = vadd.f32 %v4359_v37, %v4322_v21 }
 0x73b   : > { %v4324_v10 = vpop.f32.mrf.mxu1 }
 0x73c   : > { %v4325_v8 = vadd.f32 %v4324_v10, %v4236_v9 }
 0x73e   : > { %v4361_v31 = vadd.f32 %v4360_v27, %v4325_v8 }
 0x743   : > { %v4326_v11 = vpop.f32.mrf.mxu1 }
 0x744   : > { %v4327_v17 = vadd.f32 %v4326_v11, %v4238_v47 }
 0x746   : > { %v4362_v33 = vadd.f32 %v4361_v31, %v4327_v17 }
 0x74b   : > { %v4329_v25 = vpop.f32.mrf.mxu1 }
 0x74c   : > { %v4330_v14 = vadd.f32 %v4329_v25, %v4241_v43  ;;  %v9331_v43 = vld [vmem:[#allocation26_spill] sm:$0xff] }
 0x74e   : > { %v4363_v63 = vadd.f32 %v4362_v33, %v4330_v14 }
 0x753   : > { %v4331_v16 = vpop.f32.mrf.mxu1 }
 0x754   : > { %v4332_v0 = vadd.f32 %v4331_v16, %v4243_v54 }
 0x756   : > { %v4364_v44 = vadd.f32 %v4363_v63, %v4332_v0  ;;  %v9332_v63 = vld [vmem:[#allocation37_spill] sm:$0xff] }
 0x758   : > { %v4365_v3 = vrot.slane %v4364_v44, 4 }
 0x75a   : > { %v4366_v26 = vadd.f32 %v4365_v3, %v4364_v44 }
 0x75c   : > { %v4367_v23 = vrot.slane %v4366_v26, 2 }
 0x75e   : > { %v4368_v59 = vadd.f32 %v4367_v23, %v4366_v26 }
 0x760   : > { %v4369_v4 = vrot.slane %v4368_v59, 1 }
 0x762   : > { %v4370_v37 = vadd.f32 %v4369_v4, %v4368_v59 }
 0x764   : > { %v8611_v27 = vmul.f32 %v4370_v37, %v9330_v60 }
 0x766   : > { %v8614_v2 = vsub.f32 %v4320_v32, %v8611_v27  ;;  %v8617_v20 = vsub.f32 %v4322_v21, %v8611_v27  ;;  %v8620_v41 = vsub.f32 %v4325_v8, %v8611_v27  ;;  %v8623_v9 = vsub.f32 %v4327_v17, %v8611_v27 }
 0x767   : > { %v8626_v10 = vsub.f32 %v4330_v14, %v8611_v27  ;;  %v8629_v38 = vsub.f32 %v4332_v0, %v8611_v27  ;;  %v8633_v62 = vsub.f32 %v8493_v18, %v8611_v27  ;;  %v8637_v32 = vsub.f32 %v8497_v50, %v8611_v27  ;;  %v9333_v0 = vld [vmem:[#allocation38_spill] sm:$0xff] }
 0x768   : > { %v8641_v21 = vsub.f32 %v8500_v1, %v8611_v27  ;;  %v8649_v31 = vsub.f32 %v8504_v40, %v8611_v27  ;;  %v8653_v18 = vsub.f32 %v8507_v58, %v8611_v27  ;;  %v8659_v1 = vsub.f32 %v8511_v42, %v8611_v27 }
 0x769   : > { %v4404_v8 = vmul.f32 %v8633_v62, %v8633_v62  ;;  %v4405_v51 = vmul.f32 %v8637_v32, %v8637_v32  ;;  %v8665_v40 = vsub.f32 %v8514_v29, %v8611_v27  ;;  %v8671_v17 = vsub.f32 %v8518_v30, %v8611_v27 }
 0x76a   : > { %v4406_v50 = vmul.f32 %v8641_v21, %v8641_v21  ;;  %v4407_v47 = vmul.f32 %v8649_v31, %v8649_v31  ;;  %v4408_v58 = vmul.f32 %v8653_v18, %v8653_v18  ;;  %v4409_v42 = vmul.f32 %v8659_v1, %v8659_v1 }
 0x76b   : > { %v4436_v28 = vadd.f32 %v4405_v51, %v4404_v8  ;;  %v8677_v33 = vsub.f32 %v8521_v61, %v8611_v27  ;;  %v4410_v29 = vmul.f32 %v8665_v40, %v8665_v40  ;;  %v8683_v57 = vsub.f32 %v8525_v49, %v8611_v27 }
 0x76c   : > { %v4411_v30 = vmul.f32 %v8671_v17, %v8671_v17  ;;  %v8689_v25 = vsub.f32 %v9331_v43, %v8611_v27  ;;  %v8695_v39 = vsub.f32 %v8532_v36, %v8611_v27  ;;  %v8701_v45 = vsub.f32 %v9332_v63, %v8611_v27 }
 0x76d   : > { %v4437_v46 = vadd.f32 %v4436_v28, %v4406_v50  ;;  %v4412_v61 = vmul.f32 %v8677_v33, %v8677_v33  ;;  %v4413_v49 = vmul.f32 %v8683_v57, %v8683_v57  ;;  %v8707_v44 = vsub.f32 %v9333_v0, %v8611_v27 }
 0x76e   : > { %v4414_v54 = vmul.f32 %v8689_v25, %v8689_v25  ;;  %v4415_v36 = vmul.f32 %v8695_v39, %v8695_v39  ;;  %v8713_v26 = vsub.f32 %v8542_v53, %v8611_v27  ;;  %v4416_v23 = vmul.f32 %v8701_v45, %v8701_v45 }
 0x76f   : > { %v4438_v11 = vadd.f32 %v4437_v46, %v4407_v47  ;;  %v8719_v4 = vsub.f32 %v8546_v24, %v8611_v27  ;;  %v4417_v37 = vmul.f32 %v8707_v44, %v8707_v44  ;;  %v8725_v51 = vsub.f32 %v8549_v6, %v8611_v27 }
 0x770   : > { %v4418_v53 = vmul.f32 %v8713_v26, %v8713_v26  ;;  %v8731_v28 = vsub.f32 %v8552_v52, %v8611_v27  ;;  %v8737_v46 = vsub.f32 %v8555_v13, %v8611_v27  ;;  %v8779_v63 = vsub.f32 %v8602_v34, %v8611_v27 }
 0x771   : > { %v4439_v56 = vadd.f32 %v4438_v11, %v4408_v58  ;;  %v4419_v24 = vmul.f32 %v8719_v4, %v8719_v4  ;;  %v4420_v6 = vmul.f32 %v8725_v51, %v8725_v51  ;;  %v8743_v11 = vsub.f32 %v8558_v55, %v8611_v27 }
 0x772   : > { %v4421_v52 = vmul.f32 %v8731_v28, %v8731_v28  ;;  %v4422_v13 = vmul.f32 %v8737_v46, %v8737_v46  ;;  %v4431_v34 = vmul.f32 %v8617_v20, %v8617_v20 }
 0x773   : > { %v4440_v12 = vadd.f32 %v4439_v56, %v4409_v42  ;;  %v8749_v56 = vsub.f32 %v8561_v7, %v8611_v27  ;;  %v4423_v55 = vmul.f32 %v8743_v11, %v8743_v11 }
 0x775   : > { %v4441_v22 = vadd.f32 %v4440_v12, %v4410_v29  ;;  %v8755_v12 = vsub.f32 %v8589_v15, %v8611_v27  ;;  %v4424_v7 = vmul.f32 %v8749_v56, %v8749_v56 }
 0x777   : > { %v4442_v14 = vadd.f32 %v4441_v22, %v4411_v30  ;;  %v8761_v22 = vsub.f32 %v8592_v19, %v8611_v27  ;;  %v4425_v15 = vmul.f32 %v8755_v12, %v8755_v12 }
 0x779   : > { %v4443_v48 = vadd.f32 %v4442_v14, %v4412_v61  ;;  %v8767_v61 = vsub.f32 %v8596_v35, %v8611_v27  ;;  %v4426_v19 = vmul.f32 %v8761_v22, %v8761_v22 }
 0x77b   : > { %v4444_v16 = vadd.f32 %v4443_v48, %v4413_v49  ;;  %v8773_v49 = vsub.f32 %v8599_v5, %v8611_v27  ;;  %v4427_v35 = vmul.f32 %v8767_v61, %v8767_v61  ;;  %v4429_v5 = vmul.f32 %v8779_v63, %v8779_v63 }
 0x77d   : > { %v4445_v3 = vadd.f32 %v4444_v16, %v4414_v54  ;;  %v4428_v16 = vmul.f32 %v8773_v49, %v8773_v49 }
 0x77f   : > { %v4446_v59 = vadd.f32 %v4445_v3, %v4415_v36  ;;  %v4430_v3 = vmul.f32 %v8614_v2, %v8614_v2 }
 0x781   : > { %v4447_v8 = vadd.f32 %v4446_v59, %v4416_v23  ;;  %v4432_v59 = vmul.f32 %v8620_v41, %v8620_v41 }
 0x783   : > { %v4448_v50 = vadd.f32 %v4447_v8, %v4417_v37  ;;  %v4433_v8 = vmul.f32 %v8623_v9, %v8623_v9 }
 0x785   : > { %v4449_v47 = vadd.f32 %v4448_v50, %v4418_v53  ;;  %v4434_v50 = vmul.f32 %v8626_v10, %v8626_v10 }
 0x787   : > { %v4450_v58 = vadd.f32 %v4449_v47, %v4419_v24  ;;  %v4435_v47 = vmul.f32 %v8629_v38, %v8629_v38 }
 0x789   : > { %v4451_v42 = vadd.f32 %v4450_v58, %v4420_v6 }
 0x78b   : > { %v4452_v29 = vadd.f32 %v4451_v42, %v4421_v52 }
 0x78d   : > { %v4453_v30 = vadd.f32 %v4452_v29, %v4422_v13 }
 0x78f   : > { %v4454_v43 = vadd.f32 %v4453_v30, %v4423_v55 }
 0x791   : > { %v4455_v14 = vadd.f32 %v4454_v43, %v4424_v7 }
 0x793   : > { %v4456_v48 = vadd.f32 %v4455_v14, %v4425_v15 }
 0x795   : > { %v4457_v54 = vadd.f32 %v4456_v48, %v4426_v19 }
 0x797   : > { %v4458_v0 = vadd.f32 %v4457_v54, %v4427_v35 }
 0x799   : > { %v4459_v36 = vadd.f32 %v4458_v0, %v4428_v16 }
 0x79b   : > { %v4460_v23 = vadd.f32 %v4459_v36, %v4429_v5 }
 0x79d   : > { %v4461_v27 = vadd.f32 %v4460_v23, %v4430_v3  ;;  %v5617_v23 = vld [vmem:[%s5835_s30 + $0x190] sm:$0x3] }
 0x79f   : > { %v4462_v37 = vadd.f32 %v4461_v27, %v4431_v34  ;;  %v5618_v27 = vld [vmem:[%s5835_s30 + $0x188] sm:$0xff] }
 0x7a1   : > { %v4463_v53 = vadd.f32 %v4462_v37, %v4432_v59  ;;  %v5619_v37 = vld [vmem:[%s5835_s30 + $0x180] sm:$0xff] }
 0x7a3   : > { %v4464_v24 = vadd.f32 %v4463_v53, %v4433_v8 }
 0x7a5   : > { %v4465_v6 = vadd.f32 %v4464_v24, %v4434_v50 }
 0x7a7   : > { %v4466_v58 = vadd.f32 %v4465_v6, %v4435_v47 }
 0x7a9   : > { %v4467_v52 = vrot.slane %v4466_v58, 4 }
 0x7ab   : > { %v4468_v42 = vadd.f32 %v4467_v52, %v4466_v58 }
 0x7ad   : > { %v4469_v13 = vrot.slane %v4468_v42, 2 }
 0x7af   : > { %v4470_v29 = vadd.f32 %v4469_v13, %v4468_v42 }
 0x7b1   : > { %v4471_v55 = vrot.slane %v4470_v29, 1 }
 0x7b3   : > { %v4472_v30 = vadd.f32 %v4471_v55, %v4470_v29  ;;  %v5620_v55 = vld [vmem:[%s5835_s30 + $0x18] sm:$0xff] }
 0x7b5   : > { %v4473_v7 = vmul.f32 %v4472_v30, %v9330_v60  ;;  %v5621_v30 = vld [vmem:[%s5835_s30 + $0x20] sm:$0xff] }
 0x7b7   : > { %v4474_v43 = vadd.f32 1e-05, %v4473_v7  ;;  %v5622_v7 = vld [vmem:[%s5835_s30 + $0x28] sm:$0x3] }
 0x7b9   : > { %5615 = vrsqrt.f32 %v4474_v43  ;;  %vm4481_vm11 = vweird.f32 %v4474_v43 }
 0x7bf   : > { %v5616_v15 = vpop.eup %5615 }
 0x7c0   : > { %v4476_v14 = vmul.f32 %v5616_v15, %v4474_v43  ;;  %vm4482_vm10 = vweird.f32 %v5616_v15 }
 0x7c1   : > { %vm4483_vm12 = vmor %vm4481_vm11, %vm4482_vm10 }
 0x7c2   : > { %v4477_v19 = vmul.f32 %v5616_v15, %v4476_v14 }
 0x7c4   : > { %v4478_v48 = vmul.f32 0.5, %v4477_v19  ;;  %v5623_v19 = vld [vmem:[%s5835_s30 + $0x30] sm:$0xff] }
 0x7c6   : > { %v4479_v35 = vsub.f32 1.5, %v4478_v48 }
 0x7c8   : > { %v4480_v54 = vmul.f32 %v5616_v15, %v4479_v35  ;;  %v5624_v35 = vld [vmem:[%s5835_s30 + $0x38] sm:$0xff] }
 0x7ca   : > { %v8801_v16 = vsel %vm4483_vm12, %v5616_v15, %v4480_v54 }
 0x7cb   : > { %v4515_v60 = vmul.f32 %v8801_v16, %v8626_v10  ;;  %v4516_v0 = vmul.f32 %v8801_v16, %v8629_v38  ;;  %v4485_v10 = vmul.f32 %v8801_v16, %v8633_v62  ;;  %v4486_v38 = vmul.f32 %v8801_v16, %v8637_v32 }
 0x7cc   : > { %v4487_v53 = vmul.f32 %v8801_v16, %v8641_v21  ;;  %v4488_v50 = vmul.f32 %v8801_v16, %v8649_v31  ;;  %v4489_v6 = vmul.f32 %v8801_v16, %v8653_v18  ;;  %v4490_v62 = vmul.f32 %v8801_v16, %v8659_v1 }
 0x7cd   : > { %v4595_v5 = vrot.slane %v4515_v60, 7  ;;  %v4596_v36 = vrot.slane %v4516_v0, 7  ;;  %v4550_v24 = vrot.slane %v4485_v10, 7  ;;  %v4551_v47 = vrot.slane %v4486_v38, 7  ;;  %v5625_v0 = vld [vmem:[%s5835_s30 + $0x40] sm:$0x3] }
 0x7ce   : > { %v4553_v32 = vrot.slane %v4487_v53, 7  ;;  %v4554_v58 = vrot.slane %v4488_v50, 7  ;;  %v4491_v21 = vmul.f32 %v8801_v16, %v8665_v40  ;;  %v4492_v31 = vmul.f32 %v8801_v16, %v8671_v17  ;;  %v5628_v38 = vld [vmem:[%s5835_s30 + $0x58] sm:$0x3]  ;;  %v5629_v50 = vld [vmem:[%s5835_s30 + $0x60] sm:$0xff] }
 0x7cf   : > { %v4597_v3 = vsel %vm2616_vm6, %v4595_v5, %v4596_v36  ;;  %v4693_v34 = vadd.f32 %v5617_v23, %v4596_v36  ;;  %v4691_v8 = vadd.f32 %v5619_v37, %v4595_v5  ;;  %v4552_v52 = vsel %vm2616_vm6, %v4550_v24, %v4551_v47  ;;  %v5626_v23 = vld [vmem:[%s5835_s30 + $0x48] sm:$0xff] }
 0x7d0   : > { %v4692_v59 = vadd.f32 %v5618_v27, %v4597_v3  ;;  %v4556_v42 = vrot.slane %v4489_v6, 7  ;;  %v4557_v13 = vrot.slane %v4490_v62, 7  ;;  %v4493_v18 = vmul.f32 %v8801_v16, %v8677_v33  ;;  %v5630_v6 = vld [vmem:[%s5835_s30 + $0x68] sm:$0xff] }
 0x7d1   : > { %4741 = vst [vmem:[%s8812_s28 + $0xff] sm:$0x1] %v4693_v34  ;;  %v4555_v1 = vsel %vm2616_vm6, %v4553_v32, %v4554_v58  ;;  %v4494_v29 = vmul.f32 %v8801_v16, %v8683_v57  ;;  %v4646_v40 = vadd.f32 %v5620_v55, %v4550_v24  ;;  %v4647_v17 = vadd.f32 %v5621_v30, %v4552_v52  ;;  %v5632_v52 = vld [vmem:[%s5835_s30 + $0x78] sm:$0xff] }
 0x7d2   : > { %4740 = vst [vmem:[%s8812_s28 + $0xf7] sm:$0xff] %v4692_v59  ;;  %v4648_v43 = vadd.f32 %v5622_v7, %v4551_v47  ;;  %v4559_v15 = vrot.slane %v4491_v21, 7  ;;  %v4560_v14 = vrot.slane %v4492_v31, 7  ;;  %v4649_v33 = vadd.f32 %v5623_v19, %v4553_v32  ;;  %v5627_v59 = vld [vmem:[%s5835_s30 + $0x50] sm:$0xff]  ;;  %v5637_v19 = vld [vmem:[%s5835_s30 + $0xa0] sm:$0x3] }
 0x7d3   : > { %4739 = vst [vmem:[%s8812_s28 + $0xef] sm:$0xfe] %v4691_v8  ;;  %v4558_v48 = vsel %vm2616_vm6, %v4556_v42, %v4557_v13  ;;  %v4650_v57 = vadd.f32 %v5624_v35, %v4555_v1  ;;  %v4495_v54 = vmul.f32 %v8801_v16, %v8689_v25  ;;  %v4496_v60 = vmul.f32 %v8801_v16, %v8695_v39  ;;  %v5631_v32 = vld [vmem:[%s5835_s30 + $0x70] sm:$0x3] }
 0x7d4   : > { %4694 = vst [vmem:[%s8812_s28 - $0x1] sm:$0xfe] %v4646_v40  ;;  %v4651_v5 = vadd.f32 %v5625_v0, %v4554_v58  ;;  %v4562_v36 = vrot.slane %v4493_v18, 7  ;;  %v4563_v3 = vrot.slane %v4494_v29, 7  ;;  %v4652_v34 = vadd.f32 %v5626_v23, %v4556_v42  ;;  %v5633_v18 = vld [vmem:[%s5835_s30 + $0x80] sm:$0xff]  ;;  %v5639_v0 = vld [vmem:[%s5835_s30 + $0xb0] sm:$0xff] }
 0x7d5   : > { %4695 = vst [vmem:[%s8812_s28 + $0x7] sm:$0xff] %v4647_v17  ;;  %v4561_v27 = vsel %vm2616_vm6, %v4559_v15, %v4560_v14  ;;  %v4653_v25 = vadd.f32 %v5627_v59, %v4558_v48  ;;  %v4497_v39 = vmul.f32 %v8801_v16, %v8701_v45  ;;  %v4498_v10 = vmul.f32 %v8801_v16, %v8707_v44  ;;  %v5634_v29 = vld [vmem:[%s5835_s30 + $0x88] sm:$0x3]  ;;  %v5635_v17 = vld [vmem:[%s5835_s30 + $0x90] sm:$0xff] }
 0x7d6   : > { %4696 = vst [vmem:[%s8812_s28 + $0xf] sm:$0x1] %v4648_v43  ;;  %v4654_v37 = vadd.f32 %v5628_v38, %v4557_v13  ;;  %v4565_v8 = vrot.slane %v4495_v54, 7  ;;  %v4566_v53 = vrot.slane %v4496_v60, 7  ;;  %v4655_v24 = vadd.f32 %v5629_v50, %v4559_v15  ;;  %v5636_v15 = vld [vmem:[%s5835_s30 + $0x98] sm:$0xff] }
 0x7d7   : > { %4697 = vst [vmem:[%s8812_s28 + $0xf] sm:$0xfe] %v4649_v33  ;;  %v4564_v47 = vsel %vm2616_vm6, %v4562_v36, %v4563_v3  ;;  %v4656_v45 = vadd.f32 %v5630_v6, %v4561_v27  ;;  %v4499_v44 = vmul.f32 %v8801_v16, %v8713_v26  ;;  %v4500_v62 = vmul.f32 %v8801_v16, %v8719_v4  ;;  %v5641_v27 = vld [vmem:[%s5835_s30 + $0xc0] sm:$0xff]  ;;  %v5643_v38 = vld [vmem:[%s5835_s30 + $0xd0] sm:$0x3]  ;;  %v5644_v50 = vld [vmem:[%s5835_s30 + $0xd8] sm:$0xff] }
 0x7d8   : > { %4698 = vst [vmem:[%s8812_s28 + $0x17] sm:$0xff] %v4650_v57  ;;  %v4657_v58 = vadd.f32 %v5631_v32, %v4560_v14  ;;  %v4568_v21 = vrot.slane %v4497_v39, 7  ;;  %v4569_v31 = vrot.slane %v4498_v10, 7  ;;  %v4658_v42 = vadd.f32 %v5632_v52, %v4562_v36  ;;  %v5638_v57 = vld [vmem:[%s5835_s30 + $0xa8] sm:$0xff]  ;;  %v5640_v36 = vld [vmem:[%s5835_s30 + $0xb8] sm:$0x3] }
 0x7d9   : > { %4699 = vst [vmem:[%s8812_s28 + $0x1f] sm:$0x1] %v4651_v5  ;;  %v4567_v13 = vsel %vm2616_vm6, %v4565_v8, %v4566_v53  ;;  %v4659_v26 = vadd.f32 %v5633_v18, %v4564_v47  ;;  %v4501_v4 = vmul.f32 %v8801_v16, %v8725_v51  ;;  %v4502_v1 = vmul.f32 %v8801_v16, %v8731_v28  ;;  %v5642_v39 = vld [vmem:[%s5835_s30 + $0xc8] sm:$0xff]  ;;  %v5645_v6 = vld [vmem:[%s5835_s30 + $0xe0] sm:$0xff] }
 0x7da   : > { %4700 = vst [vmem:[%s8812_s28 + $0x1f] sm:$0xfe] %v4652_v34  ;;  %v4660_v55 = vadd.f32 %v5634_v29, %v4563_v3  ;;  %v4571_v40 = vrot.slane %v4499_v44, 7  ;;  %v4572_v30 = vrot.slane %v4500_v62, 7  ;;  %v4661_v7 = vadd.f32 %v5635_v17, %v4565_v8  ;;  %v5646_v44 = vld [vmem:[%s5835_s30 + $0xe8] sm:$0x3] }
 0x7db   : > { %4701 = vst [vmem:[%s8812_s28 + $0x27] sm:$0xff] %v4653_v25  ;;  %v4570_v43 = vsel %vm2616_vm6, %v4568_v21, %v4569_v31  ;;  %v4662_v51 = vadd.f32 %v5636_v15, %v4567_v13  ;;  %v4503_v28 = vmul.f32 %v8801_v16, %v8737_v46  ;;  %v4504_v14 = vmul.f32 %v8801_v16, %v8743_v11  ;;  %v5649_v18 = vld [vmem:[%s5835_s30 + $0x100] sm:$0x3]  ;;  %v5650_v29 = vld [vmem:[%s5835_s30 + $0x108] sm:$0xff] }
 0x7dc   : > { %4702 = vst [vmem:[%s8812_s28 + $0x2f] sm:$0x1] %v4654_v37  ;;  %v4663_v33 = vadd.f32 %v5637_v19, %v4566_v53  ;;  %v4574_v48 = vrot.slane %v4501_v4, 7  ;;  %v4575_v35 = vrot.slane %v4502_v1, 7  ;;  %v4664_v54 = vadd.f32 %v5638_v57, %v4568_v21  ;;  %v5647_v21 = vld [vmem:[%s5835_s30 + $0xf0] sm:$0xff]  ;;  %v5656_v57 = vld [vmem:[%s5835_s30 + $0x138] sm:$0xff] }
 0x7dd   : > { %4703 = vst [vmem:[%s8812_s28 + $0x2f] sm:$0xfe] %v4655_v24  ;;  %v4573_v60 = vsel %vm2616_vm6, %v4571_v40, %v4572_v30  ;;  %v4665_v46 = vadd.f32 %v5639_v0, %v4570_v43  ;;  %v4505_v11 = vmul.f32 %v8801_v16, %v8749_v56  ;;  %v4506_v5 = vmul.f32 %v8801_v16, %v8755_v12  ;;  %v5657_v0 = vld [vmem:[%s5835_s30 + $0x140] sm:$0xff] }
 0x7de   : > { %4704 = vst [vmem:[%s8812_s28 + $0x37] sm:$0xff] %v4656_v45  ;;  %v4666_v3 = vadd.f32 %v5640_v36, %v4569_v31  ;;  %v4577_v23 = vrot.slane %v4503_v28, 7  ;;  %v4578_v34 = vrot.slane %v4504_v14, 7  ;;  %v4667_v59 = vadd.f32 %v5641_v27, %v4571_v40  ;;  %v5653_v28 = vld [vmem:[%s5835_s30 + $0x120] sm:$0xff]  ;;  %v5659_v36 = vld [vmem:[%s5835_s30 + $0x150] sm:$0xff] }
 0x7df   : > { %4705 = vst [vmem:[%s8812_s28 + $0x3f] sm:$0x1] %v4657_v58  ;;  %v4576_v25 = vsel %vm2616_vm6, %v4574_v48, %v4575_v35  ;;  %v4668_v56 = vadd.f32 %v5642_v39, %v4573_v60  ;;  %v4507_v12 = vmul.f32 %v8801_v16, %v8761_v22  ;;  %v4508_v10 = vmul.f32 %v8801_v16, %v8767_v61  ;;  %v5662_v39 = vld [vmem:[%s5835_s30 + $0x168] sm:$0xff] }
 0x7e0   : > { %4706 = vst [vmem:[%s8812_s28 + $0x3f] sm:$0xfe] %v4658_v42  ;;  %v4669_v37 = vadd.f32 %v5643_v38, %v4572_v30  ;;  %v4580_v8 = vrot.slane %v4505_v11, 7  ;;  %v4581_v53 = vrot.slane %v4506_v5, 7  ;;  %v4670_v24 = vadd.f32 %v5644_v50, %v4574_v48  ;;  %v5648_v42 = vld [vmem:[%s5835_s30 + $0xf8] sm:$0xff]  ;;  %v5651_v30 = vld [vmem:[%s5835_s30 + $0x110] sm:$0xff] }
 0x7e1   : > { %4707 = vst [vmem:[%s8812_s28 + $0x47] sm:$0xff] %v4659_v26  ;;  %v4579_v47 = vsel %vm2616_vm6, %v4577_v23, %v4578_v34  ;;  %v4671_v22 = vadd.f32 %v5645_v6, %v4576_v25  ;;  %v4509_v61 = vmul.f32 %v8801_v16, %v8773_v49  ;;  %v4510_v45 = vmul.f32 %v8801_v16, %v8779_v63  ;;  %v5658_v11 = vld [vmem:[%s5835_s30 + $0x148] sm:$0x3]  ;;  %v5664_v38 = vld [vmem:[%s5835_s30 + $0x178] sm:$0x3] }
 0x7e2   : > { %4708 = vst [vmem:[%s8812_s28 + $0x4f] sm:$0x1] %v4660_v55  ;;  %v4672_v62 = vadd.f32 %v5646_v44, %v4575_v35  ;;  %v4583_v32 = vrot.slane %v4507_v12, 7  ;;  %v4584_v58 = vrot.slane %v4508_v10, 7  ;;  %v4673_v31 = vadd.f32 %v5647_v21, %v4577_v23  ;;  %v5663_v12 = vld [vmem:[%s5835_s30 + $0x170] sm:$0xff] }
 0x7e3   : > { %4709 = vst [vmem:[%s8812_s28 + $0x4f] sm:$0xfe] %v4661_v7  ;;  %v4582_v52 = vsel %vm2616_vm6, %v4580_v8, %v4581_v53  ;;  %v4674_v49 = vadd.f32 %v5648_v42, %v4579_v47  ;;  %v4511_v63 = vmul.f32 %v8801_v16, %v8614_v2  ;;  %v4512_v13 = vmul.f32 %v8801_v16, %v8617_v20  ;;  %v5652_v7 = vld [vmem:[%s5835_s30 + $0x118] sm:$0x3] }
 0x7e4   : > { %4710 = vst [vmem:[%s8812_s28 + $0x57] sm:$0xff] %v4662_v51  ;;  %v4675_v26 = vadd.f32 %v5649_v18, %v4578_v34  ;;  %v4586_v4 = vrot.slane %v4509_v61, 7  ;;  %v4587_v1 = vrot.slane %v4510_v45, 7  ;;  %v4676_v55 = vadd.f32 %v5650_v29, %v4580_v8  ;;  %v5660_v34 = vld [vmem:[%s5835_s30 + $0x158] sm:$0xff] }
 0x7e5   : > { %4711 = vst [vmem:[%s8812_s28 + $0x5f] sm:$0x1] %v4663_v33  ;;  %v4585_v40 = vsel %vm2616_vm6, %v4583_v32, %v4584_v58  ;;  %v4677_v2 = vadd.f32 %v5651_v30, %v4582_v52  ;;  %v4513_v20 = vmul.f32 %v8801_v16, %v8620_v41  ;;  %v4514_v17 = vmul.f32 %v8801_v16, %v8623_v9  ;;  %v5654_v41 = vld [vmem:[%s5835_s30 + $0x128] sm:$0xff]  ;;  %v5655_v9 = vld [vmem:[%s5835_s30 + $0x130] sm:$0x3] }
 0x7e6   : > { %4712 = vst [vmem:[%s8812_s28 + $0x5f] sm:$0xfe] %v4664_v54  ;;  %v4678_v43 = vadd.f32 %v5652_v7, %v4581_v53  ;;  %v4589_v15 = vrot.slane %v4511_v63, 7  ;;  %v4590_v51 = vrot.slane %v4512_v13, 7  ;;  %v4679_v14 = vadd.f32 %v5653_v28, %v4583_v32 }
 0x7e7   : > { %4713 = vst [vmem:[%s8812_s28 + $0x67] sm:$0xff] %v4665_v46  ;;  %v4588_v19 = vsel %vm2616_vm6, %v4586_v4, %v4587_v1  ;;  %v4680_v33 = vadd.f32 %v5654_v41, %v4585_v40  ;;  %v4681_v16 = vadd.f32 %v5655_v9, %v4584_v58  ;;  %v4592_v48 = vrot.slane %v4513_v20, 7 }
 0x7e8   : > { %4714 = vst [vmem:[%s8812_s28 + $0x6f] sm:$0x1] %v4666_v3  ;;  %v4593_v35 = vrot.slane %v4514_v17, 7  ;;  %v4682_v54 = vadd.f32 %v5656_v57, %v4586_v4  ;;  %v4591_v60 = vsel %vm2616_vm6, %v4589_v15, %v4590_v51  ;;  %v4683_v46 = vadd.f32 %v5657_v0, %v4588_v19 }
 0x7e9   : > { %4715 = vst [vmem:[%s8812_s28 + $0x6f] sm:$0xfe] %v4667_v59  ;;  %v4684_v5 = vadd.f32 %v5658_v11, %v4587_v1  ;;  %v4685_v3 = vadd.f32 %v5659_v36, %v4589_v15  ;;  %v4686_v27 = vadd.f32 %v5660_v34, %v4591_v60  ;;  %v5661_v59 = vld [vmem:[%s5835_s30 + $0x160] sm:$0x3]  ;;  %s5685_s30 = scalar_lea.hbm %s9020_s3, 512 }
 0x7ea   : > { %4716 = vst [vmem:[%s8812_s28 + $0x77] sm:$0xff] %v4668_v56  ;;  %v4594_v23 = vsel %vm2616_vm6, %v4592_v48, %v4593_v35  ;;  %v4687_v25 = vadd.f32 %v5661_v59, %v4590_v51  ;;  %v4688_v56 = vadd.f32 %v5662_v39, %v4592_v48  ;;  %p5687_p1 = scmp.lt.s32.totalorder %s5685_s30, %s5681_s10 }
 0x7eb   : > { %4717 = vst [vmem:[%s8812_s28 + $0x7f] sm:$0x1] %v4669_v37  ;;  %v4689_v10 = vadd.f32 %v5663_v12, %v4594_v23  ;;  %v4690_v37 = vadd.f32 %v5664_v38, %v4593_v35 }
 0x7ec   : > { %4718 = vst [vmem:[%s8812_s28 + $0x7f] sm:$0xfe] %v4670_v24  ;;  %p5688_p2 = por %p5687_p1, %p5686_p0 }
 0x7ed   : > { %4719 = vst [vmem:[%s8812_s28 + $0x87] sm:$0xff] %v4671_v22 }
 0x7ee   : > { %4720 = vst [vmem:[%s8812_s28 + $0x8f] sm:$0x1] %v4672_v62  ;;  %p5689_p3 = pnand %p5688_p2, %p5684_p13 }
 0x7ef   : > { %4721 = vst [vmem:[%s8812_s28 + $0x8f] sm:$0xfe] %v4673_v31 }
 0x7f0   : > { %4722 = vst [vmem:[%s8812_s28 + $0x97] sm:$0xff] %v4674_v49 }
 0x7f1   : > { %4723 = vst [vmem:[%s8812_s28 + $0x9f] sm:$0x1] %v4675_v26 }
 0x7f2   : > { %4724 = vst [vmem:[%s8812_s28 + $0x9f] sm:$0xfe] %v4676_v55 }
 0x7f3   : > { %4725 = vst [vmem:[%s8812_s28 + $0xa7] sm:$0xff] %v4677_v2 }
 0x7f4   : > { %4726 = vst [vmem:[%s8812_s28 + $0xaf] sm:$0x1] %v4678_v43 }
 0x7f5   : > { %4727 = vst [vmem:[%s8812_s28 + $0xaf] sm:$0xfe] %v4679_v14 }
 0x7f6   : > { %4728 = vst [vmem:[%s8812_s28 + $0xb7] sm:$0xff] %v4680_v33 }
 0x7f7   : > { %4729 = vst [vmem:[%s8812_s28 + $0xbf] sm:$0x1] %v4681_v16 }
 0x7f8   : > { %4730 = vst [vmem:[%s8812_s28 + $0xbf] sm:$0xfe] %v4682_v54 }
 0x7f9   : > { %4731 = vst [vmem:[%s8812_s28 + $0xc7] sm:$0xff] %v4683_v46 }
 0x7fa   : > { %4732 = vst [vmem:[%s8812_s28 + $0xcf] sm:$0x1] %v4684_v5 }
 0x7fb   : > { %4733 = vst [vmem:[%s8812_s28 + $0xcf] sm:$0xfe] %v4685_v3 }
 0x7fc   : > { %4734 = vst [vmem:[%s8812_s28 + $0xd7] sm:$0xff] %v4686_v27 }
 0x7fd   : > { %4735 = vst [vmem:[%s8812_s28 + $0xdf] sm:$0x1] %v4687_v25 }
 0x7fe   : > { %4736 = vst [vmem:[%s8812_s28 + $0xdf] sm:$0xfe] %v4688_v56 }
 0x7ff   : > { %4737 = vst [vmem:[%s8812_s28 + $0xe7] sm:$0xff] %v4689_v10 }
 0x800   : > { %4738 = vst [vmem:[%s8812_s28 + $0xef] sm:$0x1] %v4690_v37 }
 0x801   : > { %5692 = shalt.err (!%p5689_p3)
}
 0x802   : > { %s5730_s24 = smov 128   ;;  %s5731_s25 = smov 8  }
 0x803   : > { %5569 = dma.vmem_to_hbm [thread:$0]  (%p5790_p5), %s4756_s6, 4096, %s4758_s7, %s4743_s8, %s5730_s24, %s5730_s24, %s5731_s25  }
 0x804 PF: > { %p5575_p4 = scmp.ge.s32.totalorder %s5727_s15, 2  ;;  %s4772_s26 = sand.u32 1, %s5715_s12  }
 0x805   : > { %s4773_s27 = scalar_lea.sflag [#allocation3], %s4772_s26 }
 0x806   : > { %p5572_p7 = pnand %p5575_p4, %p5794_p6 }
 0x808   : > { %p5573_p8 = pneg %p5572_p7 }
 0x80a   : > { %5710 = dma.done.wait (%p5573_p8), %s4773_s27, 4096  }
 0x80b   : > { %5712 = vsyncadd (%p5573_p8), %s4773_s27, 4294963200  ;;  %p13_p9 = scmp.ge.s32.totalorder %s5777_s18, 4   ;;  %s9334_s12 = smov %s5719_s13 }
 0x80c   : > { %s9335_s13 = smov %s5723_s14  ;;  %s9336_s14 = smov %s5788_s21 }
 0x80d   : > { %s9337_s15 = smov %s5777_s18  ;;  %15 = sbr.rel (!%p13_p9) target bundleno = 3 (0x3), region = 67 }
 0x812   :  { %4779 = vsyncpa [#allocation3], 1 }
 0x813   :  { %4781 = vsyncpa [#allocation3 + $0x1], 1 }

</bundles_post_ra>
